<compile_context>
chip_gen: v6e
topology: v6e:2x2x1
jax: 0.10.0
libtpu: 0.0.40
codegen_flags: <defaults>
</compile_context>

<pallas_src>
import functools

import jax
import jax.numpy as jnp
from jax.experimental import pallas as pl
from jax.experimental.pallas import tpu as pltpu


def _layernorm(v, w, b, eps=1e-5):
    """LayerNorm over the last axis; w/b have shape (1, E) and broadcast."""
    mu = jnp.mean(v, axis=-1, keepdims=True)
    var = jnp.mean(jnp.square(v - mu), axis=-1, keepdims=True)
    return (v - mu) * jax.lax.rsqrt(var + eps) * w + b


def transformer_block_kernel(
    # scalar prefetch
    lens_ref,
    # inputs
    xq_ref, xkv_ref,
    ln1w_ref, ln1b_ref,
    wq_ref, wkv_ref, wout_ref,
    ln2w_ref, ln2b_ref,
    w1_ref, b1_ref, w2_ref, b2_ref,
    # outputs
    out_ref,
    # scratch
    x0q_scr, q_scr, k_cache, v_cache, m_scr, l_scr, acc_scr,
    *, H: int, A: int, TQ: int, TK: int,
):
    E = H * A
    b = pl.program_id(0)
    qi = pl.program_id(1)
    ki = pl.program_id(2)
    nk = pl.num_programs(2)

    ln1w = ln1w_ref[...]   # (1, E) f32
    ln1b = ln1b_ref[...]

    # ---- per-batch K/V cache fill (only while the first q tile is active) ----
    @pl.when(qi == 0)
    def _project_kv():
        x0k = _layernorm(xkv_ref[0], ln1w, ln1b)                    # (TK, E) f32
        kv2d = jnp.dot(x0k.astype(jnp.bfloat16), wkv_ref[...],
                       preferred_element_type=jnp.float32)          # (TK, 2E)
        kv2d = kv2d.astype(jnp.bfloat16)
        for h in range(H):                                          # static loop
            k_cache[ki, h] = kv2d[:, h * A:(h + 1) * A]             # (TK, A)
            v_cache[ki, h] = kv2d[:, E + h * A:E + (h + 1) * A]

    # ---- per-(b, qi) init: LN1 of the q tile, Q projection, flash state ----
    @pl.when(ki == 0)
    def _init_q():
        x0q = _layernorm(xq_ref[0], ln1w, ln1b)                     # (TQ, E) f32
        x0q_scr[...] = x0q
        # softmax scale is folded into wq in the wrapper
        q2d = jnp.dot(x0q.astype(jnp.bfloat16), wq_ref[...],
                      preferred_element_type=jnp.float32).astype(jnp.bfloat16)
        for h in range(H):
            q_scr[h] = q2d[:, h * A:(h + 1) * A]                    # (TQ, A)
        m_scr[...] = jnp.full((H, TQ, 1), -jnp.inf, jnp.float32)
        l_scr[...] = jnp.zeros((H, TQ, 1), jnp.float32)
        acc_scr[...] = jnp.zeros((H, TQ, A), jnp.float32)

    # ---- flash online-softmax update against cached K/V tile ki ----
    k_h = k_cache[ki]                                               # (H, TK, A) bf16
    v_h = v_cache[ki]
    s = jnp.einsum('hqa,hka->hqk', q_scr[...], k_h,
                   preferred_element_type=jnp.float32)              # (H, TQ, TK)

    m_prev = m_scr[...]
    m_new = jnp.maximum(m_prev, jnp.max(s, axis=-1, keepdims=True))
    alpha = jnp.exp(m_prev - m_new)
    p = jnp.exp(s - m_new)
    l_scr[...] = alpha * l_scr[...] + jnp.sum(p, axis=-1, keepdims=True)
    acc_scr[...] = alpha * acc_scr[...] + jnp.einsum(
        'hqk,hka->hqa', p.astype(jnp.bfloat16), v_h,
        preferred_element_type=jnp.float32)
    m_scr[...] = m_new

    # ---- finalize: out proj (head reduction fused), residual, LN2, MLP, mask ----
    @pl.when(ki == nk - 1)
    def _finalize():
        inv_l = pl.reciprocal(l_scr[...], approx=True)              # (H, TQ, 1)
        vals = (acc_scr[...] * inv_l).astype(jnp.bfloat16)          # (H, TQ, A)
        # lane-concat heads -> (TQ, E); single MXU matmul contracts over H*A
        vals_2d = jnp.concatenate([vals[h] for h in range(H)], axis=-1)
        x1 = jnp.dot(vals_2d, wout_ref[...],
                     preferred_element_type=jnp.float32)            # (TQ, E)

        x2 = _layernorm(x1 + x0q_scr[...], ln2w_ref[...], ln2b_ref[...])

        hdn = jnp.dot(x2.astype(jnp.bfloat16), w1_ref[...],
                      preferred_element_type=jnp.float32) + b1_ref[...]
        hdn = jnp.maximum(hdn, 0.0)
        x3 = jnp.dot(hdn.astype(jnp.bfloat16), w2_ref[...],
                     preferred_element_type=jnp.float32) + b2_ref[...]

        # suffix padding mask (valid-length based), applied as a multiply
        row = jax.lax.broadcasted_iota(jnp.int32, (TQ, 1), 0) + qi * TQ
        keep = (row < lens_ref[b]).astype(jnp.float32)              # (TQ, 1)
        out_ref[0] = x3 * keep + x2


def transformer_block(x, padding_mask, params, *, H: int):
    """x: (B, L, E) f32; padding_mask: (B, L, 1) bool (True = padded)."""
    B, L, E = x.shape
    assert E % H == 0
    A = E // H
    scale = float(A) ** -0.5

    # ---- generation-aware tiling and VMEM budget ----
    try:
        kind = jax.devices()[0].device_kind.lower()
    except Exception:
        kind = ""
    prefer_256 = ("v6" in kind) or ("v7" in kind)       # 256-wide MXU parts
    try:
        vmem_cap = int(pltpu.get_tpu_info().vmem_capacity_bytes)
    except Exception:
        vmem_cap = 64 * 2**20
    vmem_budget = int(vmem_cap * 0.85)                  # headroom for Mosaic internals

    def pick_tile():
        for t in ((256, 128) if prefer_256 else (128,)):
            if L >= t and L % t == 0:
                return t
        return L   # small / ragged L: single full-length tile

    def vmem_estimate(t, weight_buffers):
        nk_ = max(L // t, 1)
        lane = 128
        ap = max(A, lane)
        w = 2 * (E * E + 2 * E * E + E * E + 4 * E * E + 4 * E * E)  # bf16 weights
        w += 4 * 8 * (E + E + E + 4 * E + E)                          # LN / bias rows
        scr = (4 * t * E                       # x0q
               + 2 * H * t * ap                # q (bf16, lane-padded)
               + 2 * 2 * nk_ * H * t * ap      # K/V cache (bf16, lane-padded)
               + 4 * 2 * H * t * lane          # m, l (lane-padded to 128)
               + 4 * H * t * ap)               # acc
        act = 2 * 4 * (3 * t * E)              # double-buffered xq / xkv / out tiles
        tmp = 4 * (H * t * t + t * 2 * E + t * 4 * E + 3 * t * E)
        return weight_buffers * w + scr + act + 2 * tmp

    T = pick_tile()
    while T > 128 and L % (T // 2) == 0 and vmem_estimate(T, 1) > vmem_budget:
        T //= 2
    assert L % T == 0
    nq = nk = L // T

    # Per-batch valid lengths from the (suffix) padding mask.
    mask2d = padding_mask.reshape(B, L).astype(jnp.int32)
    lens = (L - jnp.sum(mask2d, axis=1)).astype(jnp.int32)           # (B,)

    # ---- 2-D weight layouts (done once, outside the kernel), bf16 ----
    bf16 = jnp.bfloat16
    wqkv3 = params["w_qkv"].reshape(E, H, 3 * A)
    wq2d = (wqkv3[:, :, 0 * A:1 * A].reshape(E, E) * scale).astype(bf16)  # scale folded
    wk2d = wqkv3[:, :, 1 * A:2 * A].reshape(E, E)
    wv2d = wqkv3[:, :, 2 * A:3 * A].reshape(E, E)
    wkv2d = jnp.concatenate([wk2d, wv2d], axis=1).astype(bf16)            # (E, 2E)
    wout2d = params["w_out"].astype(bf16)                                 # (E, E)
    w1 = params["w1"].astype(bf16)
    w2 = params["w2"].astype(bf16)

    kernel = functools.partial(transformer_block_kernel, H=H, A=A, TQ=T, TK=T)

    # Cost estimate (no K/V recompute; x streamed ~once for q and ~once for kv).
    flops = int(B * (24 * L * E * E + 4 * L * L * E))
    transcendentals = int(B * H * L * L + 4 * B * L)
    bytes_accessed = int(3 * B * L * E * 4 + 2 * 12 * E * E + 4 * 10 * E + 4 * B)
    cost = pl.CostEstimate(flops=flops, transcendentals=transcendentals,
                           bytes_accessed=bytes_accessed)

    def run(weight_mode):
        wkw = {} if weight_mode is None else {"pipeline_mode": weight_mode}
        weight_buffers = 1 if weight_mode is not None else 2
        vmem_limit = int(min(max(2 * vmem_estimate(T, weight_buffers), 32 * 2**20),
                             vmem_budget))
        const2 = lambda b, qi, ki, lens: (0, 0)

        def wspec(shape):
            return pl.BlockSpec(shape, const2, **wkw)

        grid_spec = pltpu.PrefetchScalarGridSpec(
            num_scalar_prefetch=1,
            grid=(B, nq, nk),
            in_specs=[
                # queries: one tile per (b, qi); constant over ki -> fetched once
                pl.BlockSpec((1, T, E), lambda b, qi, ki, lens: (b, qi, 0)),
                # keys/values: real tiles only while qi == 0; afterwards pinned to
                # (b, 0) so consecutive identical indices elide the DMA entirely.
                pl.BlockSpec((1, T, E),
                             lambda b, qi, ki, lens: (b, jnp.where(qi == 0, ki, 0), 0)),
                wspec((1, E)), wspec((1, E)),                 # ln1 w, b
                wspec((E, E)), wspec((E, 2 * E)), wspec((E, E)),  # Wq, Wk|Wv, Wout
                wspec((1, E)), wspec((1, E)),                 # ln2 w, b
                wspec((E, 4 * E)), wspec((1, 4 * E)),         # W1, b1
                wspec((4 * E, E)), wspec((1, E)),             # W2, b2
            ],
            out_specs=pl.BlockSpec((1, T, E), lambda b, qi, ki, lens: (b, qi, 0)),
            scratch_shapes=[
                pltpu.VMEM((T, E), jnp.float32),              # x0 (post-LN1) q tile
                pltpu.VMEM((H, T, A), jnp.bfloat16),          # scaled Q, head-batched
                pltpu.VMEM((nk, H, T, A), jnp.bfloat16),      # projected K cache
                pltpu.VMEM((nk, H, T, A), jnp.bfloat16),      # projected V cache
                pltpu.VMEM((H, T, 1), jnp.float32),           # online-softmax max
                pltpu.VMEM((H, T, 1), jnp.float32),           # online-softmax denom
                pltpu.VMEM((H, T, A), jnp.float32),           # attention accumulator
            ],
        )
        return pl.pallas_call(
            kernel,
            out_shape=jax.ShapeDtypeStruct((B, L, E), jnp.float32),
            grid_spec=grid_spec,
            compiler_params=pltpu.CompilerParams(
                # qi must run sequentially on a core: the per-core K/V VMEM cache
                # is filled at qi == 0.  Only the batch axis is megacore-parallel
                # (keep B >= 2 on v7x to feed both TensorCores).
                dimension_semantics=("parallel", "arbitrary", "arbitrary"),
                vmem_limit_bytes=vmem_limit),
            cost_estimate=cost,
        )(
            lens,
            x, x,
            params["ln1_w"], params["ln1_b"],
            wq2d, wkv2d, wout2d,
            params["ln2_w"], params["ln2_b"],
            w1, params["b1"], w2, params["b2"],
        )

    # Prefer single-buffered (resident) weights; fall back for jax versions
    # where pipeline_mode on the top-level pallas_call grid is unsupported.
    modes = []
    if hasattr(pl, "Buffered"):
        modes.append(pl.Buffered(1))
    modes.append(None)
    last_err = None
    for mode in modes:
        try:
            return run(mode)
        except Exception as e:  # pragma: no cover - portability fallback
            last_err = e
    raise last_err


def reference_block(x, padding_mask, params, *, H: int):
    """Pure-JAX f32 reference matching the PyTorch forward (dropout = identity)."""
    B, L, E = x.shape
    A = E // H
    scale = float(A) ** -0.5

    x0 = _layernorm(x, params["ln1_w"], params["ln1_b"])
    qkv = x0 @ params["w_qkv"]                                   # (B, L, 3E)
    qkv = qkv.reshape(B, L, H, 3 * A).transpose(0, 2, 1, 3)
    q, k, v = qkv[..., :A], qkv[..., A:2 * A], qkv[..., 2 * A:]
    attn = jnp.einsum("bhqa,bhka->bhqk", q, k) * scale
    attn = jax.nn.softmax(attn, axis=-1)
    vals = jnp.einsum("bhqk,bhka->bhqa", attn, v)
    vals = vals.transpose(0, 2, 1, 3).reshape(B, L, E)
    x1 = vals @ params["w_out"]

    x2 = _layernorm(x1 + x0, params["ln2_w"], params["ln2_b"])
    hdn = jnp.maximum(x2 @ params["w1"] + params["b1"], 0.0)
    x3 = hdn @ params["w2"] + params["b2"]
    x3 = jnp.where(padding_mask, 0.0, x3)
    return x3 + x2


def init_params(key, E):
    ks = jax.random.split(key, 6)
    s = 0.05
    return {
        "ln1_w": jnp.ones((1, E), jnp.float32),
        "ln1_b": jnp.zeros((1, E), jnp.float32),
        "w_qkv": s * jax.random.normal(ks[0], (E, 3 * E), jnp.float32),
        "w_out": s * jax.random.normal(ks[1], (E, E), jnp.float32),
        "ln2_w": jnp.ones((1, E), jnp.float32),
        "ln2_b": jnp.zeros((1, E), jnp.float32),
        "w1": s * jax.random.normal(ks[2], (E, 4 * E), jnp.float32),
        "b1": s * jax.random.normal(ks[3], (1, 4 * E), jnp.float32),
        "w2": s * jax.random.normal(ks[4], (4 * E, E), jnp.float32),
        "b2": s * jax.random.normal(ks[5], (1, E), jnp.float32),
    }


if __name__ == "__main__":
    def run_case(B, L, E, H, n_pad, key, tol):
        k_x, k_p = jax.random.split(key)
        x = jax.random.normal(k_x, (B, L, E), jnp.float32)
        # Standard suffix padding mask: last n_pad positions padded.
        pad = jnp.arange(L)[None, :, None] >= (L - n_pad)
        padding_mask = jnp.broadcast_to(pad, (B, L, 1))
        params = init_params(k_p, E)

        out = jax.block_until_ready(transformer_block(x, padding_mask, params, H=H))
        ref = reference_block(x, padding_mask, params, H=H)
        assert out.shape == (B, L, E)
        # bf16 matmuls with f32 accumulation vs. an all-f32 reference.
        assert jnp.allclose(out, ref, rtol=tol, atol=tol), (
            f"shape ({B},{L},{E}) max abs err {jnp.max(jnp.abs(out - ref))}")

    key = jax.random.PRNGKey(0)
    k1, k2 = jax.random.split(key)
    # Small smoke test (full-array single-tile path).
    run_case(B=2, L=8, E=32, H=4, n_pad=2, key=k1, tol=2e-2)
    # Tiled path: exercises (8,128) tiling, the flash loop and the K/V VMEM cache.
    run_case(B=2, L=512, E=256, H=4, n_pad=5, key=k2, tol=4e-2)

    print("KERNEL_OK")
</pallas_src>

<mosaic_0001>
module attributes {stable_mosaic.version = 11 : i64} {
  func.func @transformer_block_kernel(%arg0: i32, %arg1: i32, %arg2: i32, %arg3: memref<2xi32, #tpu.memory_space<smem>>, %arg4: memref<1x8x32xf32, #tpu.memory_space<vmem>>, %arg5: memref<1x8x32xf32, #tpu.memory_space<vmem>>, %arg6: memref<1x32xf32, #tpu.memory_space<vmem>>, %arg7: memref<1x32xf32, #tpu.memory_space<vmem>>, %arg8: memref<32x32xbf16, #tpu.memory_space<vmem>>, %arg9: memref<32x64xbf16, #tpu.memory_space<vmem>>, %arg10: memref<32x32xbf16, #tpu.memory_space<vmem>>, %arg11: memref<1x32xf32, #tpu.memory_space<vmem>>, %arg12: memref<1x32xf32, #tpu.memory_space<vmem>>, %arg13: memref<32x128xbf16, #tpu.memory_space<vmem>>, %arg14: memref<1x128xf32, #tpu.memory_space<vmem>>, %arg15: memref<128x32xbf16, #tpu.memory_space<vmem>>, %arg16: memref<1x32xf32, #tpu.memory_space<vmem>>, %arg17: memref<1x8x32xf32, #tpu.memory_space<vmem>>, %arg18: memref<8x32xf32, #tpu.memory_space<vmem>>, %arg19: memref<4x8x8xbf16, #tpu.memory_space<vmem>>, %arg20: memref<1x4x8x8xbf16, #tpu.memory_space<vmem>>, %arg21: memref<1x4x8x8xbf16, #tpu.memory_space<vmem>>, %arg22: memref<4x8x1xf32, #tpu.memory_space<vmem>>, %arg23: memref<4x8x1xf32, #tpu.memory_space<vmem>>, %arg24: memref<4x8x8xf32, #tpu.memory_space<vmem>>) attributes {dimension_semantics = [#tpu.dimension_semantics<parallel>, #tpu.dimension_semantics<arbitrary>, #tpu.dimension_semantics<arbitrary>], iteration_bounds = array<i64: 2, 1, 1>, scalar_prefetch = 1 : i64, scratch_operands = 7 : i64, tpu.core_type = #tpu.core_type<tc>, window_params = [{transform_indices = @transform_0, window_bounds = array<i64: 1, 8, 32>}, {transform_indices = @transform_1, window_bounds = array<i64: 1, 8, 32>}, {pipeline_mode = #tpu.pipeline_mode<synchronous>, transform_indices = @transform_2, window_bounds = array<i64: 1, 32>}, {pipeline_mode = #tpu.pipeline_mode<synchronous>, transform_indices = @transform_3, window_bounds = array<i64: 1, 32>}, {pipeline_mode = #tpu.pipeline_mode<synchronous>, transform_indices = @transform_4, window_bounds = array<i64: 32, 32>}, {pipeline_mode = #tpu.pipeline_mode<synchronous>, transform_indices = @transform_5, window_bounds = array<i64: 32, 64>}, {pipeline_mode = #tpu.pipeline_mode<synchronous>, transform_indices = @transform_6, window_bounds = array<i64: 32, 32>}, {pipeline_mode = #tpu.pipeline_mode<synchronous>, transform_indices = @transform_7, window_bounds = array<i64: 1, 32>}, {pipeline_mode = #tpu.pipeline_mode<synchronous>, transform_indices = @transform_8, window_bounds = array<i64: 1, 32>}, {pipeline_mode = #tpu.pipeline_mode<synchronous>, transform_indices = @transform_9, window_bounds = array<i64: 32, 128>}, {pipeline_mode = #tpu.pipeline_mode<synchronous>, transform_indices = @transform_10, window_bounds = array<i64: 1, 128>}, {pipeline_mode = #tpu.pipeline_mode<synchronous>, transform_indices = @transform_11, window_bounds = array<i64: 128, 32>}, {pipeline_mode = #tpu.pipeline_mode<synchronous>, transform_indices = @transform_12, window_bounds = array<i64: 1, 32>}, {transform_indices = @transform_13, window_bounds = array<i64: 1, 8, 32>}]} {
    %c0 = arith.constant 0 : index
    %c0_0 = arith.constant 0 : index
    %0 = vector.load %arg6[%c0, %c0_0] : memref<1x32xf32, #tpu.memory_space<vmem>>, vector<1x32xf32>
    %c0_1 = arith.constant 0 : index
    %c0_2 = arith.constant 0 : index
    %1 = vector.load %arg7[%c0_1, %c0_2] : memref<1x32xf32, #tpu.memory_space<vmem>>, vector<1x32xf32>
    %c0_i32 = arith.constant 0 : i32
    %2 = arith.cmpi eq, %arg1, %c0_i32 : i32
    %3 = arith.extui %2 : i1 to i32
    %c0_i32_3 = arith.constant 0 : i32
    %4 = arith.cmpi ne, %3, %c0_i32_3 : i32
    scf.if %4 {
      %c0_38 = arith.constant 0 : index
      %c0_39 = arith.constant 0 : index
      %c0_40 = arith.constant 0 : index
      %42 = vector.load %arg5[%c0_38, %c0_39, %c0_40] : memref<1x8x32xf32, #tpu.memory_space<vmem>>, vector<1x8x32xf32>
      %43 = vector.shape_cast %42 : vector<1x8x32xf32> to vector<8x32xf32>
      %cst_41 = arith.constant dense<0.000000e+00> : vector<8xf32>
      %44 = vector.multi_reduction <add>, %43, %cst_41 [1] : vector<8x32xf32> to vector<8xf32>
      %45 = vector.shape_cast %44 : vector<8xf32> to vector<8x1xf32>
      %cst_42 = arith.constant 3.200000e+01 : f32
      %46 = vector.broadcast %cst_42 : f32 to vector<8x1xf32>
      %47 = arith.divf %45, %46 : vector<8x1xf32>
      %48 = vector.broadcast %47 : vector<8x1xf32> to vector<8x32xf32>
      %49 = arith.subf %43, %48 : vector<8x32xf32>
      %50 = arith.mulf %49, %49 : vector<8x32xf32>
      %cst_43 = arith.constant dense<0.000000e+00> : vector<8xf32>
      %51 = vector.multi_reduction <add>, %50, %cst_43 [1] : vector<8x32xf32> to vector<8xf32>
      %52 = vector.shape_cast %51 : vector<8xf32> to vector<8x1xf32>
      %cst_44 = arith.constant 3.200000e+01 : f32
      %53 = vector.broadcast %cst_44 : f32 to vector<8x1xf32>
      %54 = arith.divf %52, %53 : vector<8x1xf32>
      %55 = vector.broadcast %47 : vector<8x1xf32> to vector<8x32xf32>
      %56 = arith.subf %43, %55 : vector<8x32xf32>
      %cst_45 = arith.constant 9.99999974E-6 : f32
      %57 = vector.broadcast %cst_45 : f32 to vector<8x1xf32>
      %58 = arith.addf %54, %57 : vector<8x1xf32>
      %59 = math.rsqrt %58 : vector<8x1xf32>
      %60 = vector.broadcast %59 : vector<8x1xf32> to vector<8x32xf32>
      %61 = arith.mulf %56, %60 : vector<8x32xf32>
      %62 = vector.broadcast %0 : vector<1x32xf32> to vector<8x32xf32>
      %63 = arith.mulf %61, %62 : vector<8x32xf32>
      %64 = vector.broadcast %1 : vector<1x32xf32> to vector<8x32xf32>
      %65 = arith.addf %63, %64 : vector<8x32xf32>
      %66 = arith.truncf %65 : vector<8x32xf32> to vector<8x32xbf16>
      %c0_46 = arith.constant 0 : index
      %c0_47 = arith.constant 0 : index
      %67 = vector.load %arg9[%c0_46, %c0_47] : memref<32x64xbf16, #tpu.memory_space<vmem>>, vector<32x64xbf16>
      %cst_48 = arith.constant dense<0.000000e+00> : vector<8x64xf32>
      %68 = tpu.matmul %66, %67, %cst_48 {dimension_numbers = #tpu.dot_dimension_numbers<[1], [0], [0], [1], [0, 0, 1, 1], [], []>} : vector<8x32xbf16>, vector<32x64xbf16>, vector<8x64xf32> -> vector<8x64xf32>
      %69 = arith.truncf %68 : vector<8x64xf32> to vector<8x64xbf16>
      %70 = vector.extract_strided_slice %69 {offsets = [0, 0], sizes = [8, 8], strides = [1, 1]} : vector<8x64xbf16> to vector<8x8xbf16>
      %71 = arith.index_cast %arg2 : i32 to index
      %c0_49 = arith.constant 0 : index
      %c0_50 = arith.constant 0 : index
      %c0_51 = arith.constant 0 : index
      %72 = vector.load %arg20[%71, %c0_49, %c0_50, %c0_51] : memref<1x4x8x8xbf16, #tpu.memory_space<vmem>>, vector<1x1x8x8xbf16>
      %73 = vector.shape_cast %72 : vector<1x1x8x8xbf16> to vector<8x8xbf16>
      %74 = vector.shape_cast %70 : vector<8x8xbf16> to vector<1x1x8x8xbf16>
      tpu.vector_store %arg20[%71, %c0_49, %c0_50, %c0_51], %74 {strides = array<i32>} : memref<1x4x8x8xbf16, #tpu.memory_space<vmem>>, vector<1x1x8x8xbf16>,
      %75 = vector.extract_strided_slice %69 {offsets = [0, 32], sizes = [8, 8], strides = [1, 1]} : vector<8x64xbf16> to vector<8x8xbf16>
      %76 = arith.index_cast %arg2 : i32 to index
      %c0_52 = arith.constant 0 : index
      %c0_53 = arith.constant 0 : index
      %c0_54 = arith.constant 0 : index
      %77 = vector.load %arg21[%76, %c0_52, %c0_53, %c0_54] : memref<1x4x8x8xbf16, #tpu.memory_space<vmem>>, vector<1x1x8x8xbf16>
      %78 = vector.shape_cast %77 : vector<1x1x8x8xbf16> to vector<8x8xbf16>
      %79 = vector.shape_cast %75 : vector<8x8xbf16> to vector<1x1x8x8xbf16>
      tpu.vector_store %arg21[%76, %c0_52, %c0_53, %c0_54], %79 {strides = array<i32>} : memref<1x4x8x8xbf16, #tpu.memory_space<vmem>>, vector<1x1x8x8xbf16>,
      %80 = vector.extract_strided_slice %69 {offsets = [0, 8], sizes = [8, 8], strides = [1, 1]} : vector<8x64xbf16> to vector<8x8xbf16>
      %81 = arith.index_cast %arg2 : i32 to index
      %c1 = arith.constant 1 : index
      %c0_55 = arith.constant 0 : index
      %c0_56 = arith.constant 0 : index
      %82 = vector.load %arg20[%81, %c1, %c0_55, %c0_56] : memref<1x4x8x8xbf16, #tpu.memory_space<vmem>>, vector<1x1x8x8xbf16>
      %83 = vector.shape_cast %82 : vector<1x1x8x8xbf16> to vector<8x8xbf16>
      %84 = vector.shape_cast %80 : vector<8x8xbf16> to vector<1x1x8x8xbf16>
      tpu.vector_store %arg20[%81, %c1, %c0_55, %c0_56], %84 {strides = array<i32>} : memref<1x4x8x8xbf16, #tpu.memory_space<vmem>>, vector<1x1x8x8xbf16>,
      %85 = vector.extract_strided_slice %69 {offsets = [0, 40], sizes = [8, 8], strides = [1, 1]} : vector<8x64xbf16> to vector<8x8xbf16>
      %86 = arith.index_cast %arg2 : i32 to index
      %c1_57 = arith.constant 1 : index
      %c0_58 = arith.constant 0 : index
      %c0_59 = arith.constant 0 : index
      %87 = vector.load %arg21[%86, %c1_57, %c0_58, %c0_59] : memref<1x4x8x8xbf16, #tpu.memory_space<vmem>>, vector<1x1x8x8xbf16>
      %88 = vector.shape_cast %87 : vector<1x1x8x8xbf16> to vector<8x8xbf16>
      %89 = vector.shape_cast %85 : vector<8x8xbf16> to vector<1x1x8x8xbf16>
      tpu.vector_store %arg21[%86, %c1_57, %c0_58, %c0_59], %89 {strides = array<i32>} : memref<1x4x8x8xbf16, #tpu.memory_space<vmem>>, vector<1x1x8x8xbf16>,
      %90 = vector.extract_strided_slice %69 {offsets = [0, 16], sizes = [8, 8], strides = [1, 1]} : vector<8x64xbf16> to vector<8x8xbf16>
      %91 = arith.index_cast %arg2 : i32 to index
      %c2 = arith.constant 2 : index
      %c0_60 = arith.constant 0 : index
      %c0_61 = arith.constant 0 : index
      %92 = vector.load %arg20[%91, %c2, %c0_60, %c0_61] : memref<1x4x8x8xbf16, #tpu.memory_space<vmem>>, vector<1x1x8x8xbf16>
      %93 = vector.shape_cast %92 : vector<1x1x8x8xbf16> to vector<8x8xbf16>
      %94 = vector.shape_cast %90 : vector<8x8xbf16> to vector<1x1x8x8xbf16>
      tpu.vector_store %arg20[%91, %c2, %c0_60, %c0_61], %94 {strides = array<i32>} : memref<1x4x8x8xbf16, #tpu.memory_space<vmem>>, vector<1x1x8x8xbf16>,
      %95 = vector.extract_strided_slice %69 {offsets = [0, 48], sizes = [8, 8], strides = [1, 1]} : vector<8x64xbf16> to vector<8x8xbf16>
      %96 = arith.index_cast %arg2 : i32 to index
      %c2_62 = arith.constant 2 : index
      %c0_63 = arith.constant 0 : index
      %c0_64 = arith.constant 0 : index
      %97 = vector.load %arg21[%96, %c2_62, %c0_63, %c0_64] : memref<1x4x8x8xbf16, #tpu.memory_space<vmem>>, vector<1x1x8x8xbf16>
      %98 = vector.shape_cast %97 : vector<1x1x8x8xbf16> to vector<8x8xbf16>
      %99 = vector.shape_cast %95 : vector<8x8xbf16> to vector<1x1x8x8xbf16>
      tpu.vector_store %arg21[%96, %c2_62, %c0_63, %c0_64], %99 {strides = array<i32>} : memref<1x4x8x8xbf16, #tpu.memory_space<vmem>>, vector<1x1x8x8xbf16>,
      %100 = vector.extract_strided_slice %69 {offsets = [0, 24], sizes = [8, 8], strides = [1, 1]} : vector<8x64xbf16> to vector<8x8xbf16>
      %101 = arith.index_cast %arg2 : i32 to index
      %c3 = arith.constant 3 : index
      %c0_65 = arith.constant 0 : index
      %c0_66 = arith.constant 0 : index
      %102 = vector.load %arg20[%101, %c3, %c0_65, %c0_66] : memref<1x4x8x8xbf16, #tpu.memory_space<vmem>>, vector<1x1x8x8xbf16>
      %103 = vector.shape_cast %102 : vector<1x1x8x8xbf16> to vector<8x8xbf16>
      %104 = vector.shape_cast %100 : vector<8x8xbf16> to vector<1x1x8x8xbf16>
      tpu.vector_store %arg20[%101, %c3, %c0_65, %c0_66], %104 {strides = array<i32>} : memref<1x4x8x8xbf16, #tpu.memory_space<vmem>>, vector<1x1x8x8xbf16>,
      %105 = vector.extract_strided_slice %69 {offsets = [0, 56], sizes = [8, 8], strides = [1, 1]} : vector<8x64xbf16> to vector<8x8xbf16>
      %106 = arith.index_cast %arg2 : i32 to index
      %c3_67 = arith.constant 3 : index
      %c0_68 = arith.constant 0 : index
      %c0_69 = arith.constant 0 : index
      %107 = vector.load %arg21[%106, %c3_67, %c0_68, %c0_69] : memref<1x4x8x8xbf16, #tpu.memory_space<vmem>>, vector<1x1x8x8xbf16>
      %108 = vector.shape_cast %107 : vector<1x1x8x8xbf16> to vector<8x8xbf16>
      %109 = vector.shape_cast %105 : vector<8x8xbf16> to vector<1x1x8x8xbf16>
      tpu.vector_store %arg21[%106, %c3_67, %c0_68, %c0_69], %109 {strides = array<i32>} : memref<1x4x8x8xbf16, #tpu.memory_space<vmem>>, vector<1x1x8x8xbf16>,
    } else {
    }
    %c0_i32_4 = arith.constant 0 : i32
    %5 = arith.cmpi eq, %arg2, %c0_i32_4 : i32
    %6 = arith.extui %5 : i1 to i32
    %c0_i32_5 = arith.constant 0 : i32
    %7 = arith.cmpi ne, %6, %c0_i32_5 : i32
    scf.if %7 {
      %c0_38 = arith.constant 0 : index
      %c0_39 = arith.constant 0 : index
      %c0_40 = arith.constant 0 : index
      %42 = vector.load %arg4[%c0_38, %c0_39, %c0_40] : memref<1x8x32xf32, #tpu.memory_space<vmem>>, vector<1x8x32xf32>
      %43 = vector.shape_cast %42 : vector<1x8x32xf32> to vector<8x32xf32>
      %cst_41 = arith.constant dense<0.000000e+00> : vector<8xf32>
      %44 = vector.multi_reduction <add>, %43, %cst_41 [1] : vector<8x32xf32> to vector<8xf32>
      %45 = vector.shape_cast %44 : vector<8xf32> to vector<8x1xf32>
      %cst_42 = arith.constant 3.200000e+01 : f32
      %46 = vector.broadcast %cst_42 : f32 to vector<8x1xf32>
      %47 = arith.divf %45, %46 : vector<8x1xf32>
      %48 = vector.broadcast %47 : vector<8x1xf32> to vector<8x32xf32>
      %49 = arith.subf %43, %48 : vector<8x32xf32>
      %50 = arith.mulf %49, %49 : vector<8x32xf32>
      %cst_43 = arith.constant dense<0.000000e+00> : vector<8xf32>
      %51 = vector.multi_reduction <add>, %50, %cst_43 [1] : vector<8x32xf32> to vector<8xf32>
      %52 = vector.shape_cast %51 : vector<8xf32> to vector<8x1xf32>
      %cst_44 = arith.constant 3.200000e+01 : f32
      %53 = vector.broadcast %cst_44 : f32 to vector<8x1xf32>
      %54 = arith.divf %52, %53 : vector<8x1xf32>
      %55 = vector.broadcast %47 : vector<8x1xf32> to vector<8x32xf32>
      %56 = arith.subf %43, %55 : vector<8x32xf32>
      %cst_45 = arith.constant 9.99999974E-6 : f32
      %57 = vector.broadcast %cst_45 : f32 to vector<8x1xf32>
      %58 = arith.addf %54, %57 : vector<8x1xf32>
      %59 = math.rsqrt %58 : vector<8x1xf32>
      %60 = vector.broadcast %59 : vector<8x1xf32> to vector<8x32xf32>
      %61 = arith.mulf %56, %60 : vector<8x32xf32>
      %62 = vector.broadcast %0 : vector<1x32xf32> to vector<8x32xf32>
      %63 = arith.mulf %61, %62 : vector<8x32xf32>
      %64 = vector.broadcast %1 : vector<1x32xf32> to vector<8x32xf32>
      %65 = arith.addf %63, %64 : vector<8x32xf32>
      %c0_46 = arith.constant 0 : index
      %c0_47 = arith.constant 0 : index
      %66 = vector.load %arg18[%c0_46, %c0_47] : memref<8x32xf32, #tpu.memory_space<vmem>>, vector<8x32xf32>
      tpu.vector_store %arg18[%c0_46, %c0_47], %65 {strides = array<i32>} : memref<8x32xf32, #tpu.memory_space<vmem>>, vector<8x32xf32>,
      %67 = arith.truncf %65 : vector<8x32xf32> to vector<8x32xbf16>
      %c0_48 = arith.constant 0 : index
      %c0_49 = arith.constant 0 : index
      %68 = vector.load %arg8[%c0_48, %c0_49] : memref<32x32xbf16, #tpu.memory_space<vmem>>, vector<32x32xbf16>
      %cst_50 = arith.constant dense<0.000000e+00> : vector<8x32xf32>
      %69 = tpu.matmul %67, %68, %cst_50 {dimension_numbers = #tpu.dot_dimension_numbers<[1], [0], [0], [1], [0, 0, 1, 1], [], []>} : vector<8x32xbf16>, vector<32x32xbf16>, vector<8x32xf32> -> vector<8x32xf32>
      %70 = arith.truncf %69 : vector<8x32xf32> to vector<8x32xbf16>
      %71 = vector.extract_strided_slice %70 {offsets = [0, 0], sizes = [8, 8], strides = [1, 1]} : vector<8x32xbf16> to vector<8x8xbf16>
      %c0_51 = arith.constant 0 : index
      %c0_52 = arith.constant 0 : index
      %c0_53 = arith.constant 0 : index
      %72 = vector.load %arg19[%c0_51, %c0_52, %c0_53] : memref<4x8x8xbf16, #tpu.memory_space<vmem>>, vector<1x8x8xbf16>
      %73 = vector.shape_cast %72 : vector<1x8x8xbf16> to vector<8x8xbf16>
      %74 = vector.shape_cast %71 : vector<8x8xbf16> to vector<1x8x8xbf16>
      tpu.vector_store %arg19[%c0_51, %c0_52, %c0_53], %74 {strides = array<i32>} : memref<4x8x8xbf16, #tpu.memory_space<vmem>>, vector<1x8x8xbf16>,
      %75 = vector.extract_strided_slice %70 {offsets = [0, 8], sizes = [8, 8], strides = [1, 1]} : vector<8x32xbf16> to vector<8x8xbf16>
      %c1 = arith.constant 1 : index
      %c0_54 = arith.constant 0 : index
      %c0_55 = arith.constant 0 : index
      %76 = vector.load %arg19[%c1, %c0_54, %c0_55] : memref<4x8x8xbf16, #tpu.memory_space<vmem>>, vector<1x8x8xbf16>
      %77 = vector.shape_cast %76 : vector<1x8x8xbf16> to vector<8x8xbf16>
      %78 = vector.shape_cast %75 : vector<8x8xbf16> to vector<1x8x8xbf16>
      tpu.vector_store %arg19[%c1, %c0_54, %c0_55], %78 {strides = array<i32>} : memref<4x8x8xbf16, #tpu.memory_space<vmem>>, vector<1x8x8xbf16>,
      %79 = vector.extract_strided_slice %70 {offsets = [0, 16], sizes = [8, 8], strides = [1, 1]} : vector<8x32xbf16> to vector<8x8xbf16>
      %c2 = arith.constant 2 : index
      %c0_56 = arith.constant 0 : index
      %c0_57 = arith.constant 0 : index
      %80 = vector.load %arg19[%c2, %c0_56, %c0_57] : memref<4x8x8xbf16, #tpu.memory_space<vmem>>, vector<1x8x8xbf16>
      %81 = vector.shape_cast %80 : vector<1x8x8xbf16> to vector<8x8xbf16>
      %82 = vector.shape_cast %79 : vector<8x8xbf16> to vector<1x8x8xbf16>
      tpu.vector_store %arg19[%c2, %c0_56, %c0_57], %82 {strides = array<i32>} : memref<4x8x8xbf16, #tpu.memory_space<vmem>>, vector<1x8x8xbf16>,
      %83 = vector.extract_strided_slice %70 {offsets = [0, 24], sizes = [8, 8], strides = [1, 1]} : vector<8x32xbf16> to vector<8x8xbf16>
      %c3 = arith.constant 3 : index
      %c0_58 = arith.constant 0 : index
      %c0_59 = arith.constant 0 : index
      %84 = vector.load %arg19[%c3, %c0_58, %c0_59] : memref<4x8x8xbf16, #tpu.memory_space<vmem>>, vector<1x8x8xbf16>
      %85 = vector.shape_cast %84 : vector<1x8x8xbf16> to vector<8x8xbf16>
      %86 = vector.shape_cast %83 : vector<8x8xbf16> to vector<1x8x8xbf16>
      tpu.vector_store %arg19[%c3, %c0_58, %c0_59], %86 {strides = array<i32>} : memref<4x8x8xbf16, #tpu.memory_space<vmem>>, vector<1x8x8xbf16>,
      %cst_60 = arith.constant 0xFF800000 : f32
      %87 = vector.broadcast %cst_60 : f32 to vector<4x8x1xf32>
      %c0_61 = arith.constant 0 : index
      %c0_62 = arith.constant 0 : index
      %c0_63 = arith.constant 0 : index
      %88 = vector.load %arg22[%c0_61, %c0_62, %c0_63] : memref<4x8x1xf32, #tpu.memory_space<vmem>>, vector<4x8x1xf32>
      tpu.vector_store %arg22[%c0_61, %c0_62, %c0_63], %87 {strides = array<i32>} : memref<4x8x1xf32, #tpu.memory_space<vmem>>, vector<4x8x1xf32>,
      %cst_64 = arith.constant 0.000000e+00 : f32
      %89 = vector.broadcast %cst_64 : f32 to vector<4x8x1xf32>
      %c0_65 = arith.constant 0 : index
      %c0_66 = arith.constant 0 : index
      %c0_67 = arith.constant 0 : index
      %90 = vector.load %arg23[%c0_65, %c0_66, %c0_67] : memref<4x8x1xf32, #tpu.memory_space<vmem>>, vector<4x8x1xf32>
      tpu.vector_store %arg23[%c0_65, %c0_66, %c0_67], %89 {strides = array<i32>} : memref<4x8x1xf32, #tpu.memory_space<vmem>>, vector<4x8x1xf32>,
      %cst_68 = arith.constant 0.000000e+00 : f32
      %91 = vector.broadcast %cst_68 : f32 to vector<4x8x8xf32>
      %c0_69 = arith.constant 0 : index
      %c0_70 = arith.constant 0 : index
      %c0_71 = arith.constant 0 : index
      %92 = vector.load %arg24[%c0_69, %c0_70, %c0_71] : memref<4x8x8xf32, #tpu.memory_space<vmem>>, vector<4x8x8xf32>
      tpu.vector_store %arg24[%c0_69, %c0_70, %c0_71], %91 {strides = array<i32>} : memref<4x8x8xf32, #tpu.memory_space<vmem>>, vector<4x8x8xf32>,
    } else {
    }
    %8 = arith.index_cast %arg2 : i32 to index
    %c0_6 = arith.constant 0 : index
    %c0_7 = arith.constant 0 : index
    %c0_8 = arith.constant 0 : index
    %9 = vector.load %arg20[%8, %c0_6, %c0_7, %c0_8] : memref<1x4x8x8xbf16, #tpu.memory_space<vmem>>, vector<1x4x8x8xbf16>
    %10 = vector.shape_cast %9 : vector<1x4x8x8xbf16> to vector<4x8x8xbf16>
    %11 = arith.index_cast %arg2 : i32 to index
    %c0_9 = arith.constant 0 : index
    %c0_10 = arith.constant 0 : index
    %c0_11 = arith.constant 0 : index
    %12 = vector.load %arg21[%11, %c0_9, %c0_10, %c0_11] : memref<1x4x8x8xbf16, #tpu.memory_space<vmem>>, vector<1x4x8x8xbf16>
    %13 = vector.shape_cast %12 : vector<1x4x8x8xbf16> to vector<4x8x8xbf16>
    %c0_12 = arith.constant 0 : index
    %c0_13 = arith.constant 0 : index
    %c0_14 = arith.constant 0 : index
    %14 = vector.load %arg19[%c0_12, %c0_13, %c0_14] : memref<4x8x8xbf16, #tpu.memory_space<vmem>>, vector<4x8x8xbf16>
    "tpu.trace_start"() <{level = 10 : i32, message = "hqa,hka->hqk"}> : () -> ()
    %cst = arith.constant dense<0.000000e+00> : vector<4x8x8xf32>
    %15 = tpu.matmul %14, %10, %cst {dimension_numbers = #tpu.dot_dimension_numbers<[2], [2], [1], [1], [0, 0, 0, 1, 1, 1], [0], [0]>} : vector<4x8x8xbf16>, vector<4x8x8xbf16>, vector<4x8x8xf32> -> vector<4x8x8xf32>
    "tpu.trace_stop"() : () -> ()
    %c0_15 = arith.constant 0 : index
    %c0_16 = arith.constant 0 : index
    %c0_17 = arith.constant 0 : index
    %16 = vector.load %arg22[%c0_15, %c0_16, %c0_17] : memref<4x8x1xf32, #tpu.memory_space<vmem>>, vector<4x8x1xf32>
    %cst_18 = arith.constant dense<0xFF800000> : vector<4x8xf32>
    %17 = vector.multi_reduction <maximumf>, %15, %cst_18 [2] : vector<4x8x8xf32> to vector<4x8xf32>
    %18 = vector.shape_cast %17 : vector<4x8xf32> to vector<4x8x1xf32>
    %19 = arith.maximumf %16, %18 : vector<4x8x1xf32>
    %20 = arith.subf %16, %19 : vector<4x8x1xf32>
    %21 = math.exp %20 : vector<4x8x1xf32>
    %22 = vector.broadcast %19 : vector<4x8x1xf32> to vector<4x8x8xf32>
    %23 = arith.subf %15, %22 : vector<4x8x8xf32>
    %24 = math.exp %23 : vector<4x8x8xf32>
    %c0_19 = arith.constant 0 : index
    %c0_20 = arith.constant 0 : index
    %c0_21 = arith.constant 0 : index
    %25 = vector.load %arg23[%c0_19, %c0_20, %c0_21] : memref<4x8x1xf32, #tpu.memory_space<vmem>>, vector<4x8x1xf32>
    %26 = arith.mulf %21, %25 : vector<4x8x1xf32>
    %cst_22 = arith.constant dense<0.000000e+00> : vector<4x8xf32>
    %27 = vector.multi_reduction <add>, %24, %cst_22 [2] : vector<4x8x8xf32> to vector<4x8xf32>
    %28 = vector.shape_cast %27 : vector<4x8xf32> to vector<4x8x1xf32>
    %29 = arith.addf %26, %28 : vector<4x8x1xf32>
    %c0_23 = arith.constant 0 : index
    %c0_24 = arith.constant 0 : index
    %c0_25 = arith.constant 0 : index
    %30 = vector.load %arg23[%c0_23, %c0_24, %c0_25] : memref<4x8x1xf32, #tpu.memory_space<vmem>>, vector<4x8x1xf32>
    tpu.vector_store %arg23[%c0_23, %c0_24, %c0_25], %29 {strides = array<i32>} : memref<4x8x1xf32, #tpu.memory_space<vmem>>, vector<4x8x1xf32>,
    %c0_26 = arith.constant 0 : index
    %c0_27 = arith.constant 0 : index
    %c0_28 = arith.constant 0 : index
    %31 = vector.load %arg24[%c0_26, %c0_27, %c0_28] : memref<4x8x8xf32, #tpu.memory_space<vmem>>, vector<4x8x8xf32>
    %32 = vector.broadcast %21 : vector<4x8x1xf32> to vector<4x8x8xf32>
    %33 = arith.mulf %32, %31 : vector<4x8x8xf32>
    %34 = arith.truncf %24 : vector<4x8x8xf32> to vector<4x8x8xbf16>
    "tpu.trace_start"() <{level = 10 : i32, message = "hqk,hka->hqa"}> : () -> ()
    %cst_29 = arith.constant dense<0.000000e+00> : vector<4x8x8xf32>
    %35 = tpu.matmul %34, %13, %cst_29 {dimension_numbers = #tpu.dot_dimension_numbers<[2], [1], [1], [2], [0, 0, 0, 1, 1, 2], [0], [0]>} : vector<4x8x8xbf16>, vector<4x8x8xbf16>, vector<4x8x8xf32> -> vector<4x8x8xf32>
    "tpu.trace_stop"() : () -> ()
    %36 = arith.addf %33, %35 : vector<4x8x8xf32>
    %c0_30 = arith.constant 0 : index
    %c0_31 = arith.constant 0 : index
    %c0_32 = arith.constant 0 : index
    %37 = vector.load %arg24[%c0_30, %c0_31, %c0_32] : memref<4x8x8xf32, #tpu.memory_space<vmem>>, vector<4x8x8xf32>
    tpu.vector_store %arg24[%c0_30, %c0_31, %c0_32], %36 {strides = array<i32>} : memref<4x8x8xf32, #tpu.memory_space<vmem>>, vector<4x8x8xf32>,
    %c0_33 = arith.constant 0 : index
    %c0_34 = arith.constant 0 : index
    %c0_35 = arith.constant 0 : index
    %38 = vector.load %arg22[%c0_33, %c0_34, %c0_35] : memref<4x8x1xf32, #tpu.memory_space<vmem>>, vector<4x8x1xf32>
    tpu.vector_store %arg22[%c0_33, %c0_34, %c0_35], %19 {strides = array<i32>} : memref<4x8x1xf32, #tpu.memory_space<vmem>>, vector<4x8x1xf32>,
    %c0_i32_36 = arith.constant 0 : i32
    %39 = arith.cmpi eq, %arg2, %c0_i32_36 : i32
    %40 = arith.extui %39 : i1 to i32
    %c0_i32_37 = arith.constant 0 : i32
    %41 = arith.cmpi ne, %40, %c0_i32_37 : i32
    scf.if %41 {
      %c0_38 = arith.constant 0 : index
      %c0_39 = arith.constant 0 : index
      %c0_40 = arith.constant 0 : index
      %42 = vector.load %arg23[%c0_38, %c0_39, %c0_40] : memref<4x8x1xf32, #tpu.memory_space<vmem>>, vector<4x8x1xf32>
      %43 = tpu.reciprocal %42 {approx = true} : vector<4x8x1xf32> -> vector<4x8x1xf32>
      %c0_41 = arith.constant 0 : index
      %c0_42 = arith.constant 0 : index
      %c0_43 = arith.constant 0 : index
      %44 = vector.load %arg24[%c0_41, %c0_42, %c0_43] : memref<4x8x8xf32, #tpu.memory_space<vmem>>, vector<4x8x8xf32>
      %45 = vector.broadcast %43 : vector<4x8x1xf32> to vector<4x8x8xf32>
      %46 = arith.mulf %44, %45 : vector<4x8x8xf32>
      %47 = arith.truncf %46 : vector<4x8x8xf32> to vector<4x8x8xbf16>
      %48 = vector.extract_strided_slice %47 {offsets = [0, 0, 0], sizes = [1, 8, 8], strides = [1, 1, 1]} : vector<4x8x8xbf16> to vector<1x8x8xbf16>
      %49 = vector.shape_cast %48 : vector<1x8x8xbf16> to vector<8x8xbf16>
      %50 = vector.extract_strided_slice %47 {offsets = [1, 0, 0], sizes = [1, 8, 8], strides = [1, 1, 1]} : vector<4x8x8xbf16> to vector<1x8x8xbf16>
      %51 = vector.shape_cast %50 : vector<1x8x8xbf16> to vector<8x8xbf16>
      %52 = vector.extract_strided_slice %47 {offsets = [2, 0, 0], sizes = [1, 8, 8], strides = [1, 1, 1]} : vector<4x8x8xbf16> to vector<1x8x8xbf16>
      %53 = vector.shape_cast %52 : vector<1x8x8xbf16> to vector<8x8xbf16>
      %54 = vector.extract_strided_slice %47 {offsets = [3, 0, 0], sizes = [1, 8, 8], strides = [1, 1, 1]} : vector<4x8x8xbf16> to vector<1x8x8xbf16>
      %55 = vector.shape_cast %54 : vector<1x8x8xbf16> to vector<8x8xbf16>
      %56 = tpu.concatenate %49, %51, %53, %55 in 1 : vector<8x8xbf16>, vector<8x8xbf16>, vector<8x8xbf16>, vector<8x8xbf16> -> vector<8x32xbf16>
      %c0_44 = arith.constant 0 : index
      %c0_45 = arith.constant 0 : index
      %57 = vector.load %arg10[%c0_44, %c0_45] : memref<32x32xbf16, #tpu.memory_space<vmem>>, vector<32x32xbf16>
      %cst_46 = arith.constant dense<0.000000e+00> : vector<8x32xf32>
      %58 = tpu.matmul %56, %57, %cst_46 {dimension_numbers = #tpu.dot_dimension_numbers<[1], [0], [0], [1], [0, 0, 1, 1], [], []>} : vector<8x32xbf16>, vector<32x32xbf16>, vector<8x32xf32> -> vector<8x32xf32>
      %c0_47 = arith.constant 0 : index
      %c0_48 = arith.constant 0 : index
      %59 = vector.load %arg18[%c0_47, %c0_48] : memref<8x32xf32, #tpu.memory_space<vmem>>, vector<8x32xf32>
      %60 = arith.addf %58, %59 : vector<8x32xf32>
      %c0_49 = arith.constant 0 : index
      %c0_50 = arith.constant 0 : index
      %61 = vector.load %arg11[%c0_49, %c0_50] : memref<1x32xf32, #tpu.memory_space<vmem>>, vector<1x32xf32>
      %c0_51 = arith.constant 0 : index
      %c0_52 = arith.constant 0 : index
      %62 = vector.load %arg12[%c0_51, %c0_52] : memref<1x32xf32, #tpu.memory_space<vmem>>, vector<1x32xf32>
      %cst_53 = arith.constant dense<0.000000e+00> : vector<8xf32>
      %63 = vector.multi_reduction <add>, %60, %cst_53 [1] : vector<8x32xf32> to vector<8xf32>
      %64 = vector.shape_cast %63 : vector<8xf32> to vector<8x1xf32>
      %cst_54 = arith.constant 3.200000e+01 : f32
      %65 = vector.broadcast %cst_54 : f32 to vector<8x1xf32>
      %66 = arith.divf %64, %65 : vector<8x1xf32>
      %67 = vector.broadcast %66 : vector<8x1xf32> to vector<8x32xf32>
      %68 = arith.subf %60, %67 : vector<8x32xf32>
      %69 = arith.mulf %68, %68 : vector<8x32xf32>
      %cst_55 = arith.constant dense<0.000000e+00> : vector<8xf32>
      %70 = vector.multi_reduction <add>, %69, %cst_55 [1] : vector<8x32xf32> to vector<8xf32>
      %71 = vector.shape_cast %70 : vector<8xf32> to vector<8x1xf32>
      %cst_56 = arith.constant 3.200000e+01 : f32
      %72 = vector.broadcast %cst_56 : f32 to vector<8x1xf32>
      %73 = arith.divf %71, %72 : vector<8x1xf32>
      %74 = vector.broadcast %66 : vector<8x1xf32> to vector<8x32xf32>
      %75 = arith.subf %60, %74 : vector<8x32xf32>
      %cst_57 = arith.constant 9.99999974E-6 : f32
      %76 = vector.broadcast %cst_57 : f32 to vector<8x1xf32>
      %77 = arith.addf %73, %76 : vector<8x1xf32>
      %78 = math.rsqrt %77 : vector<8x1xf32>
      %79 = vector.broadcast %78 : vector<8x1xf32> to vector<8x32xf32>
      %80 = arith.mulf %75, %79 : vector<8x32xf32>
      %81 = vector.broadcast %61 : vector<1x32xf32> to vector<8x32xf32>
      %82 = arith.mulf %80, %81 : vector<8x32xf32>
      %83 = vector.broadcast %62 : vector<1x32xf32> to vector<8x32xf32>
      %84 = arith.addf %82, %83 : vector<8x32xf32>
      %85 = arith.truncf %84 : vector<8x32xf32> to vector<8x32xbf16>
      %c0_58 = arith.constant 0 : index
      %c0_59 = arith.constant 0 : index
      %86 = vector.load %arg13[%c0_58, %c0_59] : memref<32x128xbf16, #tpu.memory_space<vmem>>, vector<32x128xbf16>
      %cst_60 = arith.constant dense<0.000000e+00> : vector<8x128xf32>
      %87 = tpu.matmul %85, %86, %cst_60 {dimension_numbers = #tpu.dot_dimension_numbers<[1], [0], [0], [1], [0, 0, 1, 1], [], []>} : vector<8x32xbf16>, vector<32x128xbf16>, vector<8x128xf32> -> vector<8x128xf32>
      %c0_61 = arith.constant 0 : index
      %c0_62 = arith.constant 0 : index
      %88 = vector.load %arg14[%c0_61, %c0_62] : memref<1x128xf32, #tpu.memory_space<vmem>>, vector<1x128xf32>
      %89 = vector.broadcast %88 : vector<1x128xf32> to vector<8x128xf32>
      %90 = arith.addf %87, %89 : vector<8x128xf32>
      %cst_63 = arith.constant 0.000000e+00 : f32
      %91 = vector.broadcast %cst_63 : f32 to vector<8x128xf32>
      %92 = arith.maximumf %90, %91 : vector<8x128xf32>
      %93 = arith.truncf %92 : vector<8x128xf32> to vector<8x128xbf16>
      %c0_64 = arith.constant 0 : index
      %c0_65 = arith.constant 0 : index
      %94 = vector.load %arg15[%c0_64, %c0_65] : memref<128x32xbf16, #tpu.memory_space<vmem>>, vector<128x32xbf16>
      %cst_66 = arith.constant dense<0.000000e+00> : vector<8x32xf32>
      %95 = tpu.matmul %93, %94, %cst_66 {dimension_numbers = #tpu.dot_dimension_numbers<[1], [0], [0], [1], [0, 0, 1, 1], [], []>} : vector<8x128xbf16>, vector<128x32xbf16>, vector<8x32xf32> -> vector<8x32xf32>
      %c0_67 = arith.constant 0 : index
      %c0_68 = arith.constant 0 : index
      %96 = vector.load %arg16[%c0_67, %c0_68] : memref<1x32xf32, #tpu.memory_space<vmem>>, vector<1x32xf32>
      %97 = vector.broadcast %96 : vector<1x32xf32> to vector<8x32xf32>
      %98 = arith.addf %95, %97 : vector<8x32xf32>
      %99 = tpu.iota {dimensions = array<i32: 0>} : vector<8x1xi32>
      %c8_i32 = arith.constant 8 : i32
      %100 = arith.muli %arg1, %c8_i32 : i32
      %101 = vector.broadcast %100 : i32 to vector<8x1xi32>
      %102 = arith.addi %99, %101 : vector<8x1xi32>
      %103 = arith.index_cast %arg0 : i32 to index
      %104 = memref.load %arg3[%103] : memref<2xi32, #tpu.memory_space<smem>>
      %105 = vector.broadcast %104 : i32 to vector<8x1xi32>
      %106 = arith.cmpi slt, %102, %105 : vector<8x1xi32>
      %107 = arith.extui %106 : vector<8x1xi1> to vector<8x1xi32>
      %108 = arith.sitofp %107 : vector<8x1xi32> to vector<8x1xf32>
      %109 = vector.broadcast %108 : vector<8x1xf32> to vector<8x32xf32>
      %110 = arith.mulf %98, %109 : vector<8x32xf32>
      %111 = arith.addf %110, %84 : vector<8x32xf32>
      %c0_69 = arith.constant 0 : index
      %c0_70 = arith.constant 0 : index
      %c0_71 = arith.constant 0 : index
      %112 = vector.load %arg17[%c0_69, %c0_70, %c0_71] : memref<1x8x32xf32, #tpu.memory_space<vmem>>, vector<1x8x32xf32>
      %113 = vector.shape_cast %112 : vector<1x8x32xf32> to vector<8x32xf32>
      %114 = vector.shape_cast %111 : vector<8x32xf32> to vector<1x8x32xf32>
      tpu.vector_store %arg17[%c0_69, %c0_70, %c0_71], %114 {strides = array<i32>} : memref<1x8x32xf32, #tpu.memory_space<vmem>>, vector<1x8x32xf32>,
    } else {
    }
    return
  }
  func.func @transform_0(%arg0: i32, %arg1: i32, %arg2: i32, %arg3: memref<2xi32, #tpu.memory_space<smem>>) -> (i32, i32, i32) {
    %c0_i32 = arith.constant 0 : i32
    %c0_i32_0 = arith.constant 0 : i32
    return %arg0, %arg1, %c0_i32 : i32, i32, i32
  }
  func.func @transform_1(%arg0: i32, %arg1: i32, %arg2: i32, %arg3: memref<2xi32, #tpu.memory_space<smem>>) -> (i32, i32, i32) {
    %c0_i32 = arith.constant 0 : i32
    %0 = arith.cmpi eq, %arg1, %c0_i32 : i32
    %c0_i32_0 = arith.constant 0 : i32
    %1 = arith.select %0, %arg2, %c0_i32_0 : i32
    %c0_i32_1 = arith.constant 0 : i32
    %c0_i32_2 = arith.constant 0 : i32
    return %arg0, %1, %c0_i32_1 : i32, i32, i32
  }
  func.func @transform_2(%arg0: i32, %arg1: i32, %arg2: i32, %arg3: memref<2xi32, #tpu.memory_space<smem>>) -> (i32, i32) {
    %c0_i32 = arith.constant 0 : i32
    %c0_i32_0 = arith.constant 0 : i32
    %c0_i32_1 = arith.constant 0 : i32
    return %c0_i32, %c0_i32_0 : i32, i32
  }
  func.func @transform_3(%arg0: i32, %arg1: i32, %arg2: i32, %arg3: memref<2xi32, #tpu.memory_space<smem>>) -> (i32, i32) {
    %c0_i32 = arith.constant 0 : i32
    %c0_i32_0 = arith.constant 0 : i32
    %c0_i32_1 = arith.constant 0 : i32
    return %c0_i32, %c0_i32_0 : i32, i32
  }
  func.func @transform_4(%arg0: i32, %arg1: i32, %arg2: i32, %arg3: memref<2xi32, #tpu.memory_space<smem>>) -> (i32, i32) {
    %c0_i32 = arith.constant 0 : i32
    %c0_i32_0 = arith.constant 0 : i32
    %c0_i32_1 = arith.constant 0 : i32
    return %c0_i32, %c0_i32_0 : i32, i32
  }
  func.func @transform_5(%arg0: i32, %arg1: i32, %arg2: i32, %arg3: memref<2xi32, #tpu.memory_space<smem>>) -> (i32, i32) {
    %c0_i32 = arith.constant 0 : i32
    %c0_i32_0 = arith.constant 0 : i32
    %c0_i32_1 = arith.constant 0 : i32
    return %c0_i32, %c0_i32_0 : i32, i32
  }
  func.func @transform_6(%arg0: i32, %arg1: i32, %arg2: i32, %arg3: memref<2xi32, #tpu.memory_space<smem>>) -> (i32, i32) {
    %c0_i32 = arith.constant 0 : i32
    %c0_i32_0 = arith.constant 0 : i32
    %c0_i32_1 = arith.constant 0 : i32
    return %c0_i32, %c0_i32_0 : i32, i32
  }
  func.func @transform_7(%arg0: i32, %arg1: i32, %arg2: i32, %arg3: memref<2xi32, #tpu.memory_space<smem>>) -> (i32, i32) {
    %c0_i32 = arith.constant 0 : i32
    %c0_i32_0 = arith.constant 0 : i32
    %c0_i32_1 = arith.constant 0 : i32
    return %c0_i32, %c0_i32_0 : i32, i32
  }
  func.func @transform_8(%arg0: i32, %arg1: i32, %arg2: i32, %arg3: memref<2xi32, #tpu.memory_space<smem>>) -> (i32, i32) {
    %c0_i32 = arith.constant 0 : i32
    %c0_i32_0 = arith.constant 0 : i32
    %c0_i32_1 = arith.constant 0 : i32
    return %c0_i32, %c0_i32_0 : i32, i32
  }
  func.func @transform_9(%arg0: i32, %arg1: i32, %arg2: i32, %arg3: memref<2xi32, #tpu.memory_space<smem>>) -> (i32, i32) {
    %c0_i32 = arith.constant 0 : i32
    %c0_i32_0 = arith.constant 0 : i32
    %c0_i32_1 = arith.constant 0 : i32
    return %c0_i32, %c0_i32_0 : i32, i32
  }
  func.func @transform_10(%arg0: i32, %arg1: i32, %arg2: i32, %arg3: memref<2xi32, #tpu.memory_space<smem>>) -> (i32, i32) {
    %c0_i32 = arith.constant 0 : i32
    %c0_i32_0 = arith.constant 0 : i32
    %c0_i32_1 = arith.constant 0 : i32
    return %c0_i32, %c0_i32_0 : i32, i32
  }
  func.func @transform_11(%arg0: i32, %arg1: i32, %arg2: i32, %arg3: memref<2xi32, #tpu.memory_space<smem>>) -> (i32, i32) {
    %c0_i32 = arith.constant 0 : i32
    %c0_i32_0 = arith.constant 0 : i32
    %c0_i32_1 = arith.constant 0 : i32
    return %c0_i32, %c0_i32_0 : i32, i32
  }
  func.func @transform_12(%arg0: i32, %arg1: i32, %arg2: i32, %arg3: memref<2xi32, #tpu.memory_space<smem>>) -> (i32, i32) {
    %c0_i32 = arith.constant 0 : i32
    %c0_i32_0 = arith.constant 0 : i32
    %c0_i32_1 = arith.constant 0 : i32
    return %c0_i32, %c0_i32_0 : i32, i32
  }
  func.func @transform_13(%arg0: i32, %arg1: i32, %arg2: i32, %arg3: memref<2xi32, #tpu.memory_space<smem>>) -> (i32, i32, i32) {
    %c0_i32 = arith.constant 0 : i32
    %c0_i32_0 = arith.constant 0 : i32
    return %arg0, %arg1, %c0_i32 : i32, i32, i32
  }
}

module attributes {stable_mosaic.version = 11 : i64} {
  func.func @transformer_block_kernel(%arg0: i32, %arg1: i32, %arg2: i32, %arg3: memref<2xi32, #tpu.memory_space<smem>>, %arg4: memref<1x8x32xf32, #tpu.memory_space<vmem>>, %arg5: memref<1x8x32xf32, #tpu.memory_space<vmem>>, %arg6: memref<1x32xf32, #tpu.memory_space<vmem>>, %arg7: memref<1x32xf32, #tpu.memory_space<vmem>>, %arg8: memref<32x32xbf16, #tpu.memory_space<vmem>>, %arg9: memref<32x64xbf16, #tpu.memory_space<vmem>>, %arg10: memref<32x32xbf16, #tpu.memory_space<vmem>>, %arg11: memref<1x32xf32, #tpu.memory_space<vmem>>, %arg12: memref<1x32xf32, #tpu.memory_space<vmem>>, %arg13: memref<32x128xbf16, #tpu.memory_space<vmem>>, %arg14: memref<1x128xf32, #tpu.memory_space<vmem>>, %arg15: memref<128x32xbf16, #tpu.memory_space<vmem>>, %arg16: memref<1x32xf32, #tpu.memory_space<vmem>>, %arg17: memref<1x8x32xf32, #tpu.memory_space<vmem>>, %arg18: memref<8x32xf32, #tpu.memory_space<vmem>>, %arg19: memref<4x8x8xbf16, #tpu.memory_space<vmem>>, %arg20: memref<1x4x8x8xbf16, #tpu.memory_space<vmem>>, %arg21: memref<1x4x8x8xbf16, #tpu.memory_space<vmem>>, %arg22: memref<4x8x1xf32, #tpu.memory_space<vmem>>, %arg23: memref<4x8x1xf32, #tpu.memory_space<vmem>>, %arg24: memref<4x8x8xf32, #tpu.memory_space<vmem>>) attributes {dimension_semantics = [#tpu.dimension_semantics<parallel>, #tpu.dimension_semantics<arbitrary>, #tpu.dimension_semantics<arbitrary>], iteration_bounds = array<i64: 2, 1, 1>, scalar_prefetch = 1 : i64, scratch_operands = 7 : i64, tpu.core_type = #tpu.core_type<tc>, window_params = [{transform_indices = @transform_0, window_bounds = array<i64: 1, 8, 32>}, {transform_indices = @transform_1, window_bounds = array<i64: 1, 8, 32>}, {pipeline_mode = #tpu.pipeline_mode<synchronous>, transform_indices = @transform_2, window_bounds = array<i64: 1, 32>}, {pipeline_mode = #tpu.pipeline_mode<synchronous>, transform_indices = @transform_3, window_bounds = array<i64: 1, 32>}, {pipeline_mode = #tpu.pipeline_mode<synchronous>, transform_indices = @transform_4, window_bounds = array<i64: 32, 32>}, {pipeline_mode = #tpu.pipeline_mode<synchronous>, transform_indices = @transform_5, window_bounds = array<i64: 32, 64>}, {pipeline_mode = #tpu.pipeline_mode<synchronous>, transform_indices = @transform_6, window_bounds = array<i64: 32, 32>}, {pipeline_mode = #tpu.pipeline_mode<synchronous>, transform_indices = @transform_7, window_bounds = array<i64: 1, 32>}, {pipeline_mode = #tpu.pipeline_mode<synchronous>, transform_indices = @transform_8, window_bounds = array<i64: 1, 32>}, {pipeline_mode = #tpu.pipeline_mode<synchronous>, transform_indices = @transform_9, window_bounds = array<i64: 32, 128>}, {pipeline_mode = #tpu.pipeline_mode<synchronous>, transform_indices = @transform_10, window_bounds = array<i64: 1, 128>}, {pipeline_mode = #tpu.pipeline_mode<synchronous>, transform_indices = @transform_11, window_bounds = array<i64: 128, 32>}, {pipeline_mode = #tpu.pipeline_mode<synchronous>, transform_indices = @transform_12, window_bounds = array<i64: 1, 32>}, {transform_indices = @transform_13, window_bounds = array<i64: 1, 8, 32>}]} {
    %c0 = arith.constant 0 : index
    %c0_0 = arith.constant 0 : index
    %0 = vector.load %arg6[%c0, %c0_0] : memref<1x32xf32, #tpu.memory_space<vmem>>, vector<1x32xf32>
    %c0_1 = arith.constant 0 : index
    %c0_2 = arith.constant 0 : index
    %1 = vector.load %arg7[%c0_1, %c0_2] : memref<1x32xf32, #tpu.memory_space<vmem>>, vector<1x32xf32>
    %c0_i32 = arith.constant 0 : i32
    %2 = arith.cmpi eq, %arg1, %c0_i32 : i32
    %3 = arith.extui %2 : i1 to i32
    %c0_i32_3 = arith.constant 0 : i32
    %4 = arith.cmpi ne, %3, %c0_i32_3 : i32
    scf.if %4 {
      %c0_38 = arith.constant 0 : index
      %c0_39 = arith.constant 0 : index
      %c0_40 = arith.constant 0 : index
      %42 = vector.load %arg5[%c0_38, %c0_39, %c0_40] : memref<1x8x32xf32, #tpu.memory_space<vmem>>, vector<1x8x32xf32>
      %43 = vector.shape_cast %42 : vector<1x8x32xf32> to vector<8x32xf32>
      %cst_41 = arith.constant dense<0.000000e+00> : vector<8xf32>
      %44 = vector.multi_reduction <add>, %43, %cst_41 [1] : vector<8x32xf32> to vector<8xf32>
      %45 = vector.shape_cast %44 : vector<8xf32> to vector<8x1xf32>
      %cst_42 = arith.constant 3.200000e+01 : f32
      %46 = vector.broadcast %cst_42 : f32 to vector<8x1xf32>
      %47 = arith.divf %45, %46 : vector<8x1xf32>
      %48 = vector.broadcast %47 : vector<8x1xf32> to vector<8x32xf32>
      %49 = arith.subf %43, %48 : vector<8x32xf32>
      %50 = arith.mulf %49, %49 : vector<8x32xf32>
      %cst_43 = arith.constant dense<0.000000e+00> : vector<8xf32>
      %51 = vector.multi_reduction <add>, %50, %cst_43 [1] : vector<8x32xf32> to vector<8xf32>
      %52 = vector.shape_cast %51 : vector<8xf32> to vector<8x1xf32>
      %cst_44 = arith.constant 3.200000e+01 : f32
      %53 = vector.broadcast %cst_44 : f32 to vector<8x1xf32>
      %54 = arith.divf %52, %53 : vector<8x1xf32>
      %55 = vector.broadcast %47 : vector<8x1xf32> to vector<8x32xf32>
      %56 = arith.subf %43, %55 : vector<8x32xf32>
      %cst_45 = arith.constant 9.99999974E-6 : f32
      %57 = vector.broadcast %cst_45 : f32 to vector<8x1xf32>
      %58 = arith.addf %54, %57 : vector<8x1xf32>
      %59 = math.rsqrt %58 : vector<8x1xf32>
      %60 = vector.broadcast %59 : vector<8x1xf32> to vector<8x32xf32>
      %61 = arith.mulf %56, %60 : vector<8x32xf32>
      %62 = vector.broadcast %0 : vector<1x32xf32> to vector<8x32xf32>
      %63 = arith.mulf %61, %62 : vector<8x32xf32>
      %64 = vector.broadcast %1 : vector<1x32xf32> to vector<8x32xf32>
      %65 = arith.addf %63, %64 : vector<8x32xf32>
      %66 = arith.truncf %65 : vector<8x32xf32> to vector<8x32xbf16>
      %c0_46 = arith.constant 0 : index
      %c0_47 = arith.constant 0 : index
      %67 = vector.load %arg9[%c0_46, %c0_47] : memref<32x64xbf16, #tpu.memory_space<vmem>>, vector<32x64xbf16>
      %cst_48 = arith.constant dense<0.000000e+00> : vector<8x64xf32>
      %68 = tpu.matmul %66, %67, %cst_48 {dimension_numbers = #tpu.dot_dimension_numbers<[1], [0], [0], [1], [0, 0, 1, 1], [], []>} : vector<8x32xbf16>, vector<32x64xbf16>, vector<8x64xf32> -> vector<8x64xf32>
      %69 = arith.truncf %68 : vector<8x64xf32> to vector<8x64xbf16>
      %70 = vector.extract_strided_slice %69 {offsets = [0, 0], sizes = [8, 8], strides = [1, 1]} : vector<8x64xbf16> to vector<8x8xbf16>
      %71 = arith.index_cast %arg2 : i32 to index
      %c0_49 = arith.constant 0 : index
      %c0_50 = arith.constant 0 : index
      %c0_51 = arith.constant 0 : index
      %72 = vector.load %arg20[%71, %c0_49, %c0_50, %c0_51] : memref<1x4x8x8xbf16, #tpu.memory_space<vmem>>, vector<1x1x8x8xbf16>
      %73 = vector.shape_cast %72 : vector<1x1x8x8xbf16> to vector<8x8xbf16>
      %74 = vector.shape_cast %70 : vector<8x8xbf16> to vector<1x1x8x8xbf16>
      tpu.vector_store %arg20[%71, %c0_49, %c0_50, %c0_51], %74 {strides = array<i32>} : memref<1x4x8x8xbf16, #tpu.memory_space<vmem>>, vector<1x1x8x8xbf16>,
      %75 = vector.extract_strided_slice %69 {offsets = [0, 32], sizes = [8, 8], strides = [1, 1]} : vector<8x64xbf16> to vector<8x8xbf16>
      %76 = arith.index_cast %arg2 : i32 to index
      %c0_52 = arith.constant 0 : index
      %c0_53 = arith.constant 0 : index
      %c0_54 = arith.constant 0 : index
      %77 = vector.load %arg21[%76, %c0_52, %c0_53, %c0_54] : memref<1x4x8x8xbf16, #tpu.memory_space<vmem>>, vector<1x1x8x8xbf16>
      %78 = vector.shape_cast %77 : vector<1x1x8x8xbf16> to vector<8x8xbf16>
      %79 = vector.shape_cast %75 : vector<8x8xbf16> to vector<1x1x8x8xbf16>
      tpu.vector_store %arg21[%76, %c0_52, %c0_53, %c0_54], %79 {strides = array<i32>} : memref<1x4x8x8xbf16, #tpu.memory_space<vmem>>, vector<1x1x8x8xbf16>,
      %80 = vector.extract_strided_slice %69 {offsets = [0, 8], sizes = [8, 8], strides = [1, 1]} : vector<8x64xbf16> to vector<8x8xbf16>
      %81 = arith.index_cast %arg2 : i32 to index
      %c1 = arith.constant 1 : index
      %c0_55 = arith.constant 0 : index
      %c0_56 = arith.constant 0 : index
      %82 = vector.load %arg20[%81, %c1, %c0_55, %c0_56] : memref<1x4x8x8xbf16, #tpu.memory_space<vmem>>, vector<1x1x8x8xbf16>
      %83 = vector.shape_cast %82 : vector<1x1x8x8xbf16> to vector<8x8xbf16>
      %84 = vector.shape_cast %80 : vector<8x8xbf16> to vector<1x1x8x8xbf16>
      tpu.vector_store %arg20[%81, %c1, %c0_55, %c0_56], %84 {strides = array<i32>} : memref<1x4x8x8xbf16, #tpu.memory_space<vmem>>, vector<1x1x8x8xbf16>,
      %85 = vector.extract_strided_slice %69 {offsets = [0, 40], sizes = [8, 8], strides = [1, 1]} : vector<8x64xbf16> to vector<8x8xbf16>
      %86 = arith.index_cast %arg2 : i32 to index
      %c1_57 = arith.constant 1 : index
      %c0_58 = arith.constant 0 : index
      %c0_59 = arith.constant 0 : index
      %87 = vector.load %arg21[%86, %c1_57, %c0_58, %c0_59] : memref<1x4x8x8xbf16, #tpu.memory_space<vmem>>, vector<1x1x8x8xbf16>
      %88 = vector.shape_cast %87 : vector<1x1x8x8xbf16> to vector<8x8xbf16>
      %89 = vector.shape_cast %85 : vector<8x8xbf16> to vector<1x1x8x8xbf16>
      tpu.vector_store %arg21[%86, %c1_57, %c0_58, %c0_59], %89 {strides = array<i32>} : memref<1x4x8x8xbf16, #tpu.memory_space<vmem>>, vector<1x1x8x8xbf16>,
      %90 = vector.extract_strided_slice %69 {offsets = [0, 16], sizes = [8, 8], strides = [1, 1]} : vector<8x64xbf16> to vector<8x8xbf16>
      %91 = arith.index_cast %arg2 : i32 to index
      %c2 = arith.constant 2 : index
      %c0_60 = arith.constant 0 : index
      %c0_61 = arith.constant 0 : index
      %92 = vector.load %arg20[%91, %c2, %c0_60, %c0_61] : memref<1x4x8x8xbf16, #tpu.memory_space<vmem>>, vector<1x1x8x8xbf16>
      %93 = vector.shape_cast %92 : vector<1x1x8x8xbf16> to vector<8x8xbf16>
      %94 = vector.shape_cast %90 : vector<8x8xbf16> to vector<1x1x8x8xbf16>
      tpu.vector_store %arg20[%91, %c2, %c0_60, %c0_61], %94 {strides = array<i32>} : memref<1x4x8x8xbf16, #tpu.memory_space<vmem>>, vector<1x1x8x8xbf16>,
      %95 = vector.extract_strided_slice %69 {offsets = [0, 48], sizes = [8, 8], strides = [1, 1]} : vector<8x64xbf16> to vector<8x8xbf16>
      %96 = arith.index_cast %arg2 : i32 to index
      %c2_62 = arith.constant 2 : index
      %c0_63 = arith.constant 0 : index
      %c0_64 = arith.constant 0 : index
      %97 = vector.load %arg21[%96, %c2_62, %c0_63, %c0_64] : memref<1x4x8x8xbf16, #tpu.memory_space<vmem>>, vector<1x1x8x8xbf16>
      %98 = vector.shape_cast %97 : vector<1x1x8x8xbf16> to vector<8x8xbf16>
      %99 = vector.shape_cast %95 : vector<8x8xbf16> to vector<1x1x8x8xbf16>
      tpu.vector_store %arg21[%96, %c2_62, %c0_63, %c0_64], %99 {strides = array<i32>} : memref<1x4x8x8xbf16, #tpu.memory_space<vmem>>, vector<1x1x8x8xbf16>,
      %100 = vector.extract_strided_slice %69 {offsets = [0, 24], sizes = [8, 8], strides = [1, 1]} : vector<8x64xbf16> to vector<8x8xbf16>
      %101 = arith.index_cast %arg2 : i32 to index
      %c3 = arith.constant 3 : index
      %c0_65 = arith.constant 0 : index
      %c0_66 = arith.constant 0 : index
      %102 = vector.load %arg20[%101, %c3, %c0_65, %c0_66] : memref<1x4x8x8xbf16, #tpu.memory_space<vmem>>, vector<1x1x8x8xbf16>
      %103 = vector.shape_cast %102 : vector<1x1x8x8xbf16> to vector<8x8xbf16>
      %104 = vector.shape_cast %100 : vector<8x8xbf16> to vector<1x1x8x8xbf16>
      tpu.vector_store %arg20[%101, %c3, %c0_65, %c0_66], %104 {strides = array<i32>} : memref<1x4x8x8xbf16, #tpu.memory_space<vmem>>, vector<1x1x8x8xbf16>,
      %105 = vector.extract_strided_slice %69 {offsets = [0, 56], sizes = [8, 8], strides = [1, 1]} : vector<8x64xbf16> to vector<8x8xbf16>
      %106 = arith.index_cast %arg2 : i32 to index
      %c3_67 = arith.constant 3 : index
      %c0_68 = arith.constant 0 : index
      %c0_69 = arith.constant 0 : index
      %107 = vector.load %arg21[%106, %c3_67, %c0_68, %c0_69] : memref<1x4x8x8xbf16, #tpu.memory_space<vmem>>, vector<1x1x8x8xbf16>
      %108 = vector.shape_cast %107 : vector<1x1x8x8xbf16> to vector<8x8xbf16>
      %109 = vector.shape_cast %105 : vector<8x8xbf16> to vector<1x1x8x8xbf16>
      tpu.vector_store %arg21[%106, %c3_67, %c0_68, %c0_69], %109 {strides = array<i32>} : memref<1x4x8x8xbf16, #tpu.memory_space<vmem>>, vector<1x1x8x8xbf16>,
    } else {
    }
    %c0_i32_4 = arith.constant 0 : i32
    %5 = arith.cmpi eq, %arg2, %c0_i32_4 : i32
    %6 = arith.extui %5 : i1 to i32
    %c0_i32_5 = arith.constant 0 : i32
    %7 = arith.cmpi ne, %6, %c0_i32_5 : i32
    scf.if %7 {
      %c0_38 = arith.constant 0 : index
      %c0_39 = arith.constant 0 : index
      %c0_40 = arith.constant 0 : index
      %42 = vector.load %arg4[%c0_38, %c0_39, %c0_40] : memref<1x8x32xf32, #tpu.memory_space<vmem>>, vector<1x8x32xf32>
      %43 = vector.shape_cast %42 : vector<1x8x32xf32> to vector<8x32xf32>
      %cst_41 = arith.constant dense<0.000000e+00> : vector<8xf32>
      %44 = vector.multi_reduction <add>, %43, %cst_41 [1] : vector<8x32xf32> to vector<8xf32>
      %45 = vector.shape_cast %44 : vector<8xf32> to vector<8x1xf32>
      %cst_42 = arith.constant 3.200000e+01 : f32
      %46 = vector.broadcast %cst_42 : f32 to vector<8x1xf32>
      %47 = arith.divf %45, %46 : vector<8x1xf32>
      %48 = vector.broadcast %47 : vector<8x1xf32> to vector<8x32xf32>
      %49 = arith.subf %43, %48 : vector<8x32xf32>
      %50 = arith.mulf %49, %49 : vector<8x32xf32>
      %cst_43 = arith.constant dense<0.000000e+00> : vector<8xf32>
      %51 = vector.multi_reduction <add>, %50, %cst_43 [1] : vector<8x32xf32> to vector<8xf32>
      %52 = vector.shape_cast %51 : vector<8xf32> to vector<8x1xf32>
      %cst_44 = arith.constant 3.200000e+01 : f32
      %53 = vector.broadcast %cst_44 : f32 to vector<8x1xf32>
      %54 = arith.divf %52, %53 : vector<8x1xf32>
      %55 = vector.broadcast %47 : vector<8x1xf32> to vector<8x32xf32>
      %56 = arith.subf %43, %55 : vector<8x32xf32>
      %cst_45 = arith.constant 9.99999974E-6 : f32
      %57 = vector.broadcast %cst_45 : f32 to vector<8x1xf32>
      %58 = arith.addf %54, %57 : vector<8x1xf32>
      %59 = math.rsqrt %58 : vector<8x1xf32>
      %60 = vector.broadcast %59 : vector<8x1xf32> to vector<8x32xf32>
      %61 = arith.mulf %56, %60 : vector<8x32xf32>
      %62 = vector.broadcast %0 : vector<1x32xf32> to vector<8x32xf32>
      %63 = arith.mulf %61, %62 : vector<8x32xf32>
      %64 = vector.broadcast %1 : vector<1x32xf32> to vector<8x32xf32>
      %65 = arith.addf %63, %64 : vector<8x32xf32>
      %c0_46 = arith.constant 0 : index
      %c0_47 = arith.constant 0 : index
      %66 = vector.load %arg18[%c0_46, %c0_47] : memref<8x32xf32, #tpu.memory_space<vmem>>, vector<8x32xf32>
      tpu.vector_store %arg18[%c0_46, %c0_47], %65 {strides = array<i32>} : memref<8x32xf32, #tpu.memory_space<vmem>>, vector<8x32xf32>,
      %67 = arith.truncf %65 : vector<8x32xf32> to vector<8x32xbf16>
      %c0_48 = arith.constant 0 : index
      %c0_49 = arith.constant 0 : index
      %68 = vector.load %arg8[%c0_48, %c0_49] : memref<32x32xbf16, #tpu.memory_space<vmem>>, vector<32x32xbf16>
      %cst_50 = arith.constant dense<0.000000e+00> : vector<8x32xf32>
      %69 = tpu.matmul %67, %68, %cst_50 {dimension_numbers = #tpu.dot_dimension_numbers<[1], [0], [0], [1], [0, 0, 1, 1], [], []>} : vector<8x32xbf16>, vector<32x32xbf16>, vector<8x32xf32> -> vector<8x32xf32>
      %70 = arith.truncf %69 : vector<8x32xf32> to vector<8x32xbf16>
      %71 = vector.extract_strided_slice %70 {offsets = [0, 0], sizes = [8, 8], strides = [1, 1]} : vector<8x32xbf16> to vector<8x8xbf16>
      %c0_51 = arith.constant 0 : index
      %c0_52 = arith.constant 0 : index
      %c0_53 = arith.constant 0 : index
      %72 = vector.load %arg19[%c0_51, %c0_52, %c0_53] : memref<4x8x8xbf16, #tpu.memory_space<vmem>>, vector<1x8x8xbf16>
      %73 = vector.shape_cast %72 : vector<1x8x8xbf16> to vector<8x8xbf16>
      %74 = vector.shape_cast %71 : vector<8x8xbf16> to vector<1x8x8xbf16>
      tpu.vector_store %arg19[%c0_51, %c0_52, %c0_53], %74 {strides = array<i32>} : memref<4x8x8xbf16, #tpu.memory_space<vmem>>, vector<1x8x8xbf16>,
      %75 = vector.extract_strided_slice %70 {offsets = [0, 8], sizes = [8, 8], strides = [1, 1]} : vector<8x32xbf16> to vector<8x8xbf16>
      %c1 = arith.constant 1 : index
      %c0_54 = arith.constant 0 : index
      %c0_55 = arith.constant 0 : index
      %76 = vector.load %arg19[%c1, %c0_54, %c0_55] : memref<4x8x8xbf16, #tpu.memory_space<vmem>>, vector<1x8x8xbf16>
      %77 = vector.shape_cast %76 : vector<1x8x8xbf16> to vector<8x8xbf16>
      %78 = vector.shape_cast %75 : vector<8x8xbf16> to vector<1x8x8xbf16>
      tpu.vector_store %arg19[%c1, %c0_54, %c0_55], %78 {strides = array<i32>} : memref<4x8x8xbf16, #tpu.memory_space<vmem>>, vector<1x8x8xbf16>,
      %79 = vector.extract_strided_slice %70 {offsets = [0, 16], sizes = [8, 8], strides = [1, 1]} : vector<8x32xbf16> to vector<8x8xbf16>
      %c2 = arith.constant 2 : index
      %c0_56 = arith.constant 0 : index
      %c0_57 = arith.constant 0 : index
      %80 = vector.load %arg19[%c2, %c0_56, %c0_57] : memref<4x8x8xbf16, #tpu.memory_space<vmem>>, vector<1x8x8xbf16>
      %81 = vector.shape_cast %80 : vector<1x8x8xbf16> to vector<8x8xbf16>
      %82 = vector.shape_cast %79 : vector<8x8xbf16> to vector<1x8x8xbf16>
      tpu.vector_store %arg19[%c2, %c0_56, %c0_57], %82 {strides = array<i32>} : memref<4x8x8xbf16, #tpu.memory_space<vmem>>, vector<1x8x8xbf16>,
      %83 = vector.extract_strided_slice %70 {offsets = [0, 24], sizes = [8, 8], strides = [1, 1]} : vector<8x32xbf16> to vector<8x8xbf16>
      %c3 = arith.constant 3 : index
      %c0_58 = arith.constant 0 : index
      %c0_59 = arith.constant 0 : index
      %84 = vector.load %arg19[%c3, %c0_58, %c0_59] : memref<4x8x8xbf16, #tpu.memory_space<vmem>>, vector<1x8x8xbf16>
      %85 = vector.shape_cast %84 : vector<1x8x8xbf16> to vector<8x8xbf16>
      %86 = vector.shape_cast %83 : vector<8x8xbf16> to vector<1x8x8xbf16>
      tpu.vector_store %arg19[%c3, %c0_58, %c0_59], %86 {strides = array<i32>} : memref<4x8x8xbf16, #tpu.memory_space<vmem>>, vector<1x8x8xbf16>,
      %cst_60 = arith.constant 0xFF800000 : f32
      %87 = vector.broadcast %cst_60 : f32 to vector<4x8x1xf32>
      %c0_61 = arith.constant 0 : index
      %c0_62 = arith.constant 0 : index
      %c0_63 = arith.constant 0 : index
      %88 = vector.load %arg22[%c0_61, %c0_62, %c0_63] : memref<4x8x1xf32, #tpu.memory_space<vmem>>, vector<4x8x1xf32>
      tpu.vector_store %arg22[%c0_61, %c0_62, %c0_63], %87 {strides = array<i32>} : memref<4x8x1xf32, #tpu.memory_space<vmem>>, vector<4x8x1xf32>,
      %cst_64 = arith.constant 0.000000e+00 : f32
      %89 = vector.broadcast %cst_64 : f32 to vector<4x8x1xf32>
      %c0_65 = arith.constant 0 : index
      %c0_66 = arith.constant 0 : index
      %c0_67 = arith.constant 0 : index
      %90 = vector.load %arg23[%c0_65, %c0_66, %c0_67] : memref<4x8x1xf32, #tpu.memory_space<vmem>>, vector<4x8x1xf32>
      tpu.vector_store %arg23[%c0_65, %c0_66, %c0_67], %89 {strides = array<i32>} : memref<4x8x1xf32, #tpu.memory_space<vmem>>, vector<4x8x1xf32>,
      %cst_68 = arith.constant 0.000000e+00 : f32
      %91 = vector.broadcast %cst_68 : f32 to vector<4x8x8xf32>
      %c0_69 = arith.constant 0 : index
      %c0_70 = arith.constant 0 : index
      %c0_71 = arith.constant 0 : index
      %92 = vector.load %arg24[%c0_69, %c0_70, %c0_71] : memref<4x8x8xf32, #tpu.memory_space<vmem>>, vector<4x8x8xf32>
      tpu.vector_store %arg24[%c0_69, %c0_70, %c0_71], %91 {strides = array<i32>} : memref<4x8x8xf32, #tpu.memory_space<vmem>>, vector<4x8x8xf32>,
    } else {
    }
    %8 = arith.index_cast %arg2 : i32 to index
    %c0_6 = arith.constant 0 : index
    %c0_7 = arith.constant 0 : index
    %c0_8 = arith.constant 0 : index
    %9 = vector.load %arg20[%8, %c0_6, %c0_7, %c0_8] : memref<1x4x8x8xbf16, #tpu.memory_space<vmem>>, vector<1x4x8x8xbf16>
    %10 = vector.shape_cast %9 : vector<1x4x8x8xbf16> to vector<4x8x8xbf16>
    %11 = arith.index_cast %arg2 : i32 to index
    %c0_9 = arith.constant 0 : index
    %c0_10 = arith.constant 0 : index
    %c0_11 = arith.constant 0 : index
    %12 = vector.load %arg21[%11, %c0_9, %c0_10, %c0_11] : memref<1x4x8x8xbf16, #tpu.memory_space<vmem>>, vector<1x4x8x8xbf16>
    %13 = vector.shape_cast %12 : vector<1x4x8x8xbf16> to vector<4x8x8xbf16>
    %c0_12 = arith.constant 0 : index
    %c0_13 = arith.constant 0 : index
    %c0_14 = arith.constant 0 : index
    %14 = vector.load %arg19[%c0_12, %c0_13, %c0_14] : memref<4x8x8xbf16, #tpu.memory_space<vmem>>, vector<4x8x8xbf16>
    "tpu.trace_start"() <{level = 10 : i32, message = "hqa,hka->hqk"}> : () -> ()
    %cst = arith.constant dense<0.000000e+00> : vector<4x8x8xf32>
    %15 = tpu.matmul %14, %10, %cst {dimension_numbers = #tpu.dot_dimension_numbers<[2], [2], [1], [1], [0, 0, 0, 1, 1, 1], [0], [0]>} : vector<4x8x8xbf16>, vector<4x8x8xbf16>, vector<4x8x8xf32> -> vector<4x8x8xf32>
    "tpu.trace_stop"() : () -> ()
    %c0_15 = arith.constant 0 : index
    %c0_16 = arith.constant 0 : index
    %c0_17 = arith.constant 0 : index
    %16 = vector.load %arg22[%c0_15, %c0_16, %c0_17] : memref<4x8x1xf32, #tpu.memory_space<vmem>>, vector<4x8x1xf32>
    %cst_18 = arith.constant dense<0xFF800000> : vector<4x8xf32>
    %17 = vector.multi_reduction <maximumf>, %15, %cst_18 [2] : vector<4x8x8xf32> to vector<4x8xf32>
    %18 = vector.shape_cast %17 : vector<4x8xf32> to vector<4x8x1xf32>
    %19 = arith.maximumf %16, %18 : vector<4x8x1xf32>
    %20 = arith.subf %16, %19 : vector<4x8x1xf32>
    %21 = math.exp %20 : vector<4x8x1xf32>
    %22 = vector.broadcast %19 : vector<4x8x1xf32> to vector<4x8x8xf32>
    %23 = arith.subf %15, %22 : vector<4x8x8xf32>
    %24 = math.exp %23 : vector<4x8x8xf32>
    %c0_19 = arith.constant 0 : index
    %c0_20 = arith.constant 0 : index
    %c0_21 = arith.constant 0 : index
    %25 = vector.load %arg23[%c0_19, %c0_20, %c0_21] : memref<4x8x1xf32, #tpu.memory_space<vmem>>, vector<4x8x1xf32>
    %26 = arith.mulf %21, %25 : vector<4x8x1xf32>
    %cst_22 = arith.constant dense<0.000000e+00> : vector<4x8xf32>
    %27 = vector.multi_reduction <add>, %24, %cst_22 [2] : vector<4x8x8xf32> to vector<4x8xf32>
    %28 = vector.shape_cast %27 : vector<4x8xf32> to vector<4x8x1xf32>
    %29 = arith.addf %26, %28 : vector<4x8x1xf32>
    %c0_23 = arith.constant 0 : index
    %c0_24 = arith.constant 0 : index
    %c0_25 = arith.constant 0 : index
    %30 = vector.load %arg23[%c0_23, %c0_24, %c0_25] : memref<4x8x1xf32, #tpu.memory_space<vmem>>, vector<4x8x1xf32>
    tpu.vector_store %arg23[%c0_23, %c0_24, %c0_25], %29 {strides = array<i32>} : memref<4x8x1xf32, #tpu.memory_space<vmem>>, vector<4x8x1xf32>,
    %c0_26 = arith.constant 0 : index
    %c0_27 = arith.constant 0 : index
    %c0_28 = arith.constant 0 : index
    %31 = vector.load %arg24[%c0_26, %c0_27, %c0_28] : memref<4x8x8xf32, #tpu.memory_space<vmem>>, vector<4x8x8xf32>
    %32 = vector.broadcast %21 : vector<4x8x1xf32> to vector<4x8x8xf32>
    %33 = arith.mulf %32, %31 : vector<4x8x8xf32>
    %34 = arith.truncf %24 : vector<4x8x8xf32> to vector<4x8x8xbf16>
    "tpu.trace_start"() <{level = 10 : i32, message = "hqk,hka->hqa"}> : () -> ()
    %cst_29 = arith.constant dense<0.000000e+00> : vector<4x8x8xf32>
    %35 = tpu.matmul %34, %13, %cst_29 {dimension_numbers = #tpu.dot_dimension_numbers<[2], [1], [1], [2], [0, 0, 0, 1, 1, 2], [0], [0]>} : vector<4x8x8xbf16>, vector<4x8x8xbf16>, vector<4x8x8xf32> -> vector<4x8x8xf32>
    "tpu.trace_stop"() : () -> ()
    %36 = arith.addf %33, %35 : vector<4x8x8xf32>
    %c0_30 = arith.constant 0 : index
    %c0_31 = arith.constant 0 : index
    %c0_32 = arith.constant 0 : index
    %37 = vector.load %arg24[%c0_30, %c0_31, %c0_32] : memref<4x8x8xf32, #tpu.memory_space<vmem>>, vector<4x8x8xf32>
    tpu.vector_store %arg24[%c0_30, %c0_31, %c0_32], %36 {strides = array<i32>} : memref<4x8x8xf32, #tpu.memory_space<vmem>>, vector<4x8x8xf32>,
    %c0_33 = arith.constant 0 : index
    %c0_34 = arith.constant 0 : index
    %c0_35 = arith.constant 0 : index
    %38 = vector.load %arg22[%c0_33, %c0_34, %c0_35] : memref<4x8x1xf32, #tpu.memory_space<vmem>>, vector<4x8x1xf32>
    tpu.vector_store %arg22[%c0_33, %c0_34, %c0_35], %19 {strides = array<i32>} : memref<4x8x1xf32, #tpu.memory_space<vmem>>, vector<4x8x1xf32>,
    %c0_i32_36 = arith.constant 0 : i32
    %39 = arith.cmpi eq, %arg2, %c0_i32_36 : i32
    %40 = arith.extui %39 : i1 to i32
    %c0_i32_37 = arith.constant 0 : i32
    %41 = arith.cmpi ne, %40, %c0_i32_37 : i32
    scf.if %41 {
      %c0_38 = arith.constant 0 : index
      %c0_39 = arith.constant 0 : index
      %c0_40 = arith.constant 0 : index
      %42 = vector.load %arg23[%c0_38, %c0_39, %c0_40] : memref<4x8x1xf32, #tpu.memory_space<vmem>>, vector<4x8x1xf32>
      %43 = tpu.reciprocal %42 {approx = true} : vector<4x8x1xf32> -> vector<4x8x1xf32>
      %c0_41 = arith.constant 0 : index
      %c0_42 = arith.constant 0 : index
      %c0_43 = arith.constant 0 : index
      %44 = vector.load %arg24[%c0_41, %c0_42, %c0_43] : memref<4x8x8xf32, #tpu.memory_space<vmem>>, vector<4x8x8xf32>
      %45 = vector.broadcast %43 : vector<4x8x1xf32> to vector<4x8x8xf32>
      %46 = arith.mulf %44, %45 : vector<4x8x8xf32>
      %47 = arith.truncf %46 : vector<4x8x8xf32> to vector<4x8x8xbf16>
      %48 = vector.extract_strided_slice %47 {offsets = [0, 0, 0], sizes = [1, 8, 8], strides = [1, 1, 1]} : vector<4x8x8xbf16> to vector<1x8x8xbf16>
      %49 = vector.shape_cast %48 : vector<1x8x8xbf16> to vector<8x8xbf16>
      %50 = vector.extract_strided_slice %47 {offsets = [1, 0, 0], sizes = [1, 8, 8], strides = [1, 1, 1]} : vector<4x8x8xbf16> to vector<1x8x8xbf16>
      %51 = vector.shape_cast %50 : vector<1x8x8xbf16> to vector<8x8xbf16>
      %52 = vector.extract_strided_slice %47 {offsets = [2, 0, 0], sizes = [1, 8, 8], strides = [1, 1, 1]} : vector<4x8x8xbf16> to vector<1x8x8xbf16>
      %53 = vector.shape_cast %52 : vector<1x8x8xbf16> to vector<8x8xbf16>
      %54 = vector.extract_strided_slice %47 {offsets = [3, 0, 0], sizes = [1, 8, 8], strides = [1, 1, 1]} : vector<4x8x8xbf16> to vector<1x8x8xbf16>
      %55 = vector.shape_cast %54 : vector<1x8x8xbf16> to vector<8x8xbf16>
      %56 = tpu.concatenate %49, %51, %53, %55 in 1 : vector<8x8xbf16>, vector<8x8xbf16>, vector<8x8xbf16>, vector<8x8xbf16> -> vector<8x32xbf16>
      %c0_44 = arith.constant 0 : index
      %c0_45 = arith.constant 0 : index
      %57 = vector.load %arg10[%c0_44, %c0_45] : memref<32x32xbf16, #tpu.memory_space<vmem>>, vector<32x32xbf16>
      %cst_46 = arith.constant dense<0.000000e+00> : vector<8x32xf32>
      %58 = tpu.matmul %56, %57, %cst_46 {dimension_numbers = #tpu.dot_dimension_numbers<[1], [0], [0], [1], [0, 0, 1, 1], [], []>} : vector<8x32xbf16>, vector<32x32xbf16>, vector<8x32xf32> -> vector<8x32xf32>
      %c0_47 = arith.constant 0 : index
      %c0_48 = arith.constant 0 : index
      %59 = vector.load %arg18[%c0_47, %c0_48] : memref<8x32xf32, #tpu.memory_space<vmem>>, vector<8x32xf32>
      %60 = arith.addf %58, %59 : vector<8x32xf32>
      %c0_49 = arith.constant 0 : index
      %c0_50 = arith.constant 0 : index
      %61 = vector.load %arg11[%c0_49, %c0_50] : memref<1x32xf32, #tpu.memory_space<vmem>>, vector<1x32xf32>
      %c0_51 = arith.constant 0 : index
      %c0_52 = arith.constant 0 : index
      %62 = vector.load %arg12[%c0_51, %c0_52] : memref<1x32xf32, #tpu.memory_space<vmem>>, vector<1x32xf32>
      %cst_53 = arith.constant dense<0.000000e+00> : vector<8xf32>
      %63 = vector.multi_reduction <add>, %60, %cst_53 [1] : vector<8x32xf32> to vector<8xf32>
      %64 = vector.shape_cast %63 : vector<8xf32> to vector<8x1xf32>
      %cst_54 = arith.constant 3.200000e+01 : f32
      %65 = vector.broadcast %cst_54 : f32 to vector<8x1xf32>
      %66 = arith.divf %64, %65 : vector<8x1xf32>
      %67 = vector.broadcast %66 : vector<8x1xf32> to vector<8x32xf32>
      %68 = arith.subf %60, %67 : vector<8x32xf32>
      %69 = arith.mulf %68, %68 : vector<8x32xf32>
      %cst_55 = arith.constant dense<0.000000e+00> : vector<8xf32>
      %70 = vector.multi_reduction <add>, %69, %cst_55 [1] : vector<8x32xf32> to vector<8xf32>
      %71 = vector.shape_cast %70 : vector<8xf32> to vector<8x1xf32>
      %cst_56 = arith.constant 3.200000e+01 : f32
      %72 = vector.broadcast %cst_56 : f32 to vector<8x1xf32>
      %73 = arith.divf %71, %72 : vector<8x1xf32>
      %74 = vector.broadcast %66 : vector<8x1xf32> to vector<8x32xf32>
      %75 = arith.subf %60, %74 : vector<8x32xf32>
      %cst_57 = arith.constant 9.99999974E-6 : f32
      %76 = vector.broadcast %cst_57 : f32 to vector<8x1xf32>
      %77 = arith.addf %73, %76 : vector<8x1xf32>
      %78 = math.rsqrt %77 : vector<8x1xf32>
      %79 = vector.broadcast %78 : vector<8x1xf32> to vector<8x32xf32>
      %80 = arith.mulf %75, %79 : vector<8x32xf32>
      %81 = vector.broadcast %61 : vector<1x32xf32> to vector<8x32xf32>
      %82 = arith.mulf %80, %81 : vector<8x32xf32>
      %83 = vector.broadcast %62 : vector<1x32xf32> to vector<8x32xf32>
      %84 = arith.addf %82, %83 : vector<8x32xf32>
      %85 = arith.truncf %84 : vector<8x32xf32> to vector<8x32xbf16>
      %c0_58 = arith.constant 0 : index
      %c0_59 = arith.constant 0 : index
      %86 = vector.load %arg13[%c0_58, %c0_59] : memref<32x128xbf16, #tpu.memory_space<vmem>>, vector<32x128xbf16>
      %cst_60 = arith.constant dense<0.000000e+00> : vector<8x128xf32>
      %87 = tpu.matmul %85, %86, %cst_60 {dimension_numbers = #tpu.dot_dimension_numbers<[1], [0], [0], [1], [0, 0, 1, 1], [], []>} : vector<8x32xbf16>, vector<32x128xbf16>, vector<8x128xf32> -> vector<8x128xf32>
      %c0_61 = arith.constant 0 : index
      %c0_62 = arith.constant 0 : index
      %88 = vector.load %arg14[%c0_61, %c0_62] : memref<1x128xf32, #tpu.memory_space<vmem>>, vector<1x128xf32>
      %89 = vector.broadcast %88 : vector<1x128xf32> to vector<8x128xf32>
      %90 = arith.addf %87, %89 : vector<8x128xf32>
      %cst_63 = arith.constant 0.000000e+00 : f32
      %91 = vector.broadcast %cst_63 : f32 to vector<8x128xf32>
      %92 = arith.maximumf %90, %91 : vector<8x128xf32>
      %93 = arith.truncf %92 : vector<8x128xf32> to vector<8x128xbf16>
      %c0_64 = arith.constant 0 : index
      %c0_65 = arith.constant 0 : index
      %94 = vector.load %arg15[%c0_64, %c0_65] : memref<128x32xbf16, #tpu.memory_space<vmem>>, vector<128x32xbf16>
      %cst_66 = arith.constant dense<0.000000e+00> : vector<8x32xf32>
      %95 = tpu.matmul %93, %94, %cst_66 {dimension_numbers = #tpu.dot_dimension_numbers<[1], [0], [0], [1], [0, 0, 1, 1], [], []>} : vector<8x128xbf16>, vector<128x32xbf16>, vector<8x32xf32> -> vector<8x32xf32>
      %c0_67 = arith.constant 0 : index
      %c0_68 = arith.constant 0 : index
      %96 = vector.load %arg16[%c0_67, %c0_68] : memref<1x32xf32, #tpu.memory_space<vmem>>, vector<1x32xf32>
      %97 = vector.broadcast %96 : vector<1x32xf32> to vector<8x32xf32>
      %98 = arith.addf %95, %97 : vector<8x32xf32>
      %99 = tpu.iota {dimensions = array<i32: 0>} : vector<8x1xi32>
      %c8_i32 = arith.constant 8 : i32
      %100 = arith.muli %arg1, %c8_i32 : i32
      %101 = vector.broadcast %100 : i32 to vector<8x1xi32>
      %102 = arith.addi %99, %101 : vector<8x1xi32>
      %103 = arith.index_cast %arg0 : i32 to index
      %104 = memref.load %arg3[%103] : memref<2xi32, #tpu.memory_space<smem>>
      %105 = vector.broadcast %104 : i32 to vector<8x1xi32>
      %106 = arith.cmpi slt, %102, %105 : vector<8x1xi32>
      %107 = arith.extui %106 : vector<8x1xi1> to vector<8x1xi32>
      %108 = arith.sitofp %107 : vector<8x1xi32> to vector<8x1xf32>
      %109 = vector.broadcast %108 : vector<8x1xf32> to vector<8x32xf32>
      %110 = arith.mulf %98, %109 : vector<8x32xf32>
      %111 = arith.addf %110, %84 : vector<8x32xf32>
      %c0_69 = arith.constant 0 : index
      %c0_70 = arith.constant 0 : index
      %c0_71 = arith.constant 0 : index
      %112 = vector.load %arg17[%c0_69, %c0_70, %c0_71] : memref<1x8x32xf32, #tpu.memory_space<vmem>>, vector<1x8x32xf32>
      %113 = vector.shape_cast %112 : vector<1x8x32xf32> to vector<8x32xf32>
      %114 = vector.shape_cast %111 : vector<8x32xf32> to vector<1x8x32xf32>
      tpu.vector_store %arg17[%c0_69, %c0_70, %c0_71], %114 {strides = array<i32>} : memref<1x8x32xf32, #tpu.memory_space<vmem>>, vector<1x8x32xf32>,
    } else {
    }
    return
  }
  func.func @transform_0(%arg0: i32, %arg1: i32, %arg2: i32, %arg3: memref<2xi32, #tpu.memory_space<smem>>) -> (i32, i32, i32) {
    %c0_i32 = arith.constant 0 : i32
    %c0_i32_0 = arith.constant 0 : i32
    return %arg0, %arg1, %c0_i32 : i32, i32, i32
  }
  func.func @transform_1(%arg0: i32, %arg1: i32, %arg2: i32, %arg3: memref<2xi32, #tpu.memory_space<smem>>) -> (i32, i32, i32) {
    %c0_i32 = arith.constant 0 : i32
    %0 = arith.cmpi eq, %arg1, %c0_i32 : i32
    %c0_i32_0 = arith.constant 0 : i32
    %1 = arith.select %0, %arg2, %c0_i32_0 : i32
    %c0_i32_1 = arith.constant 0 : i32
    %c0_i32_2 = arith.constant 0 : i32
    return %arg0, %1, %c0_i32_1 : i32, i32, i32
  }
  func.func @transform_2(%arg0: i32, %arg1: i32, %arg2: i32, %arg3: memref<2xi32, #tpu.memory_space<smem>>) -> (i32, i32) {
    %c0_i32 = arith.constant 0 : i32
    %c0_i32_0 = arith.constant 0 : i32
    %c0_i32_1 = arith.constant 0 : i32
    return %c0_i32, %c0_i32_0 : i32, i32
  }
  func.func @transform_3(%arg0: i32, %arg1: i32, %arg2: i32, %arg3: memref<2xi32, #tpu.memory_space<smem>>) -> (i32, i32) {
    %c0_i32 = arith.constant 0 : i32
    %c0_i32_0 = arith.constant 0 : i32
    %c0_i32_1 = arith.constant 0 : i32
    return %c0_i32, %c0_i32_0 : i32, i32
  }
  func.func @transform_4(%arg0: i32, %arg1: i32, %arg2: i32, %arg3: memref<2xi32, #tpu.memory_space<smem>>) -> (i32, i32) {
    %c0_i32 = arith.constant 0 : i32
    %c0_i32_0 = arith.constant 0 : i32
    %c0_i32_1 = arith.constant 0 : i32
    return %c0_i32, %c0_i32_0 : i32, i32
  }
  func.func @transform_5(%arg0: i32, %arg1: i32, %arg2: i32, %arg3: memref<2xi32, #tpu.memory_space<smem>>) -> (i32, i32) {
    %c0_i32 = arith.constant 0 : i32
    %c0_i32_0 = arith.constant 0 : i32
    %c0_i32_1 = arith.constant 0 : i32
    return %c0_i32, %c0_i32_0 : i32, i32
  }
  func.func @transform_6(%arg0: i32, %arg1: i32, %arg2: i32, %arg3: memref<2xi32, #tpu.memory_space<smem>>) -> (i32, i32) {
    %c0_i32 = arith.constant 0 : i32
    %c0_i32_0 = arith.constant 0 : i32
    %c0_i32_1 = arith.constant 0 : i32
    return %c0_i32, %c0_i32_0 : i32, i32
  }
  func.func @transform_7(%arg0: i32, %arg1: i32, %arg2: i32, %arg3: memref<2xi32, #tpu.memory_space<smem>>) -> (i32, i32) {
    %c0_i32 = arith.constant 0 : i32
    %c0_i32_0 = arith.constant 0 : i32
    %c0_i32_1 = arith.constant 0 : i32
    return %c0_i32, %c0_i32_0 : i32, i32
  }
  func.func @transform_8(%arg0: i32, %arg1: i32, %arg2: i32, %arg3: memref<2xi32, #tpu.memory_space<smem>>) -> (i32, i32) {
    %c0_i32 = arith.constant 0 : i32
    %c0_i32_0 = arith.constant 0 : i32
    %c0_i32_1 = arith.constant 0 : i32
    return %c0_i32, %c0_i32_0 : i32, i32
  }
  func.func @transform_9(%arg0: i32, %arg1: i32, %arg2: i32, %arg3: memref<2xi32, #tpu.memory_space<smem>>) -> (i32, i32) {
    %c0_i32 = arith.constant 0 : i32
    %c0_i32_0 = arith.constant 0 : i32
    %c0_i32_1 = arith.constant 0 : i32
    return %c0_i32, %c0_i32_0 : i32, i32
  }
  func.func @transform_10(%arg0: i32, %arg1: i32, %arg2: i32, %arg3: memref<2xi32, #tpu.memory_space<smem>>) -> (i32, i32) {
    %c0_i32 = arith.constant 0 : i32
    %c0_i32_0 = arith.constant 0 : i32
    %c0_i32_1 = arith.constant 0 : i32
    return %c0_i32, %c0_i32_0 : i32, i32
  }
  func.func @transform_11(%arg0: i32, %arg1: i32, %arg2: i32, %arg3: memref<2xi32, #tpu.memory_space<smem>>) -> (i32, i32) {
    %c0_i32 = arith.constant 0 : i32
    %c0_i32_0 = arith.constant 0 : i32
    %c0_i32_1 = arith.constant 0 : i32
    return %c0_i32, %c0_i32_0 : i32, i32
  }
  func.func @transform_12(%arg0: i32, %arg1: i32, %arg2: i32, %arg3: memref<2xi32, #tpu.memory_space<smem>>) -> (i32, i32) {
    %c0_i32 = arith.constant 0 : i32
    %c0_i32_0 = arith.constant 0 : i32
    %c0_i32_1 = arith.constant 0 : i32
    return %c0_i32, %c0_i32_0 : i32, i32
  }
  func.func @transform_13(%arg0: i32, %arg1: i32, %arg2: i32, %arg3: memref<2xi32, #tpu.memory_space<smem>>) -> (i32, i32, i32) {
    %c0_i32 = arith.constant 0 : i32
    %c0_i32_0 = arith.constant 0 : i32
    return %arg0, %arg1, %c0_i32 : i32, i32, i32
  }
}

</mosaic_0001>

<bundles_post_ra>
// kernel: tpu_custom_call.1
= control target key start
LH: loop header
LB: loop body
LE: loop exit
PB: predicated region body
PF: predicated region fallthrough
CT: control target
= control target key end

     0   :  { %s2272_s29 = smov [#allocation10]   ;;  %s2729_s0 = inlined_call_operand.hbm [shape: s32[2], index: 0, kind: input, shape index: {}]   ;;  %s2730_s1 = inlined_call_operand.vmem [shape: f32[2,8,32], index: 1, kind: input, shape index: {}]   ;;  %s2731_s2 = inlined_call_operand.vmem [shape: f32[2,8,32], index: 2, kind: input, shape index: {}]   ;;  %s2732_s3 = inlined_call_operand.vmem [shape: f32[1,32], index: 3, kind: input, shape index: {}]   ;;  %s2733_s4 = inlined_call_operand.vmem [shape: f32[1,32], index: 4, kind: input, shape index: {}]   ;;  %s2734_s5 = inlined_call_operand.vmem [shape: bf16[32,32], index: 5, kind: input, shape index: {}]   ;;  %s2735_s6 = inlined_call_operand.vmem [shape: bf16[32,64], index: 6, kind: input, shape index: {}]   ;;  %s2736_s7 = inlined_call_operand.vmem [shape: bf16[32,32], index: 7, kind: input, shape index: {}]   ;;  %s2737_s8 = inlined_call_operand.vmem [shape: f32[1,32], index: 8, kind: input, shape index: {}]   ;;  %s2738_s9 = inlined_call_operand.vmem [shape: f32[1,32], index: 9, kind: input, shape index: {}]   ;;  %s2739_s10 = inlined_call_operand.hbm [shape: bf16[32,128], index: 10, kind: input, shape index: {}]   ;;  %s2740_s11 = inlined_call_operand.vmem [shape: f32[1,128], index: 11, kind: input, shape index: {}]   ;;  %s2741_s12 = inlined_call_operand.vmem [shape: bf16[128,32], index: 12, kind: input, shape index: {}]   ;;  %s2742_s13 = inlined_call_operand.vmem [shape: f32[1,32], index: 13, kind: input, shape index: {}]   ;;  %s2743_s14 = inlined_call_operand.hbm [shape: f32[2,8,32], index: 14, kind: output, shape index: {}]  }
   0x1   :  { %20 = dma.hbm_to_smem %s2729_s0, 16, %s2272_s29, [#allocation9] }
   0x2   :  { %2238 = dma.done.wait [#allocation9], 16 }
   0x3   :  { %2239 = vsyncadd [#allocation9], 4294967280 }
   0x4   :  { %22 = sfence }
   0x5   :  { %23 = vsyncpa [#allocation12], 0 }
   0x6   :  { %24 = vsyncpa [#allocation13], 0 }
   0x7   :  { %26 = vsyncpa [#allocation13 + $0x1], 0  ;;  %s2369_s16 = smov 0   ;;  %s2371_s17 = smov 0  }
   0x8   :  { %s2373_s18 = smov 0   ;;  %s2375_s19 = smov 0  }
   0x9   :  { %s2377_s20 = smov 0   ;;  %s2379_s21 = smov 0  }
   0xa LB: > { %2748 = sst [smem:[#allocation18_spill]] %s2258_s18  ;;  %s1827_s0 = sadd.s32 4294967295, %s2270_s21   ;;  %s2270_s21 = sphi %s2379_s21, %s32_s21   ;;  %s2266_s20 = sphi %s2377_s20, %s2761_s20   ;;  %s2262_s19 = sphi %s2375_s19, %s2760_s19   ;;  %s2258_s18 = sphi %s2373_s18, %s2759_s18   ;;  %s2254_s17 = sphi %s2371_s17, %s2763_s17   ;;  %s2250_s16 = sphi %s2369_s16, %s2762_s16  }
   0xb   : > { %2749 = sst [smem:[#allocation19_spill]] %s2266_s20  ;;  %s1828_s22 = sadd.s32 4294967294, %s2270_s21  }
   0xc   : > { %s51_s23 = sadd.s32 1, %s2266_s20  ;;  %s351_s24 = sadd.s32 1, %s2258_s18 }
   0xd   : > { %p53_p0 = scmp.ge.s32.totalorder %s51_s23, 2  ;;  %p361_p1 = scmp.ne.s32.totalorder %s2258_s18, %s2254_s17 }
   0xe   : > { %p362_p2 = scmp.eq.s32.totalorder %s1827_s0, 1  ;;  %p367_p3 = scmp.ne.s32.totalorder %s2254_s17, %s2250_s16 }
   0xf   : > { %s2765_s23 = smov (%p53_p0, %s51_s23), 0  ;;  %p368_p5 = scmp.eq.s32.totalorder %s1828_s22, 1 }
  0x10   : > { %2750 = sst [smem:[#allocation20_spill]] %s2765_s23  ;;  %p2409_p4 = por %p362_p2, %p361_p1 }
  0x11   : > { %s346_s26 = ssub.s32 %s2266_s20, %s2765_s23  ;;  %p1829_p6 = scmp.ge.s32.totalorder %s2270_s21, 1 }
  0x12   : > { %p349_p7 = scmp.eq.s32.totalorder %s346_s26, 0  ;;  %p2416_p8 = por %p368_p5, %p367_p3 }
  0x13   : > { %p375_p9 = scmp.lt.s32.totalorder %s2270_s21, 3  ;;  %p2428_p11 = scmp.eq.s32.totalorder %s1827_s0, 0 }
  0x14   : > { %s2752_s27 = scalar_select %p2416_p8, 1, 0 }
  0x15   : > { %s2422_s28 = scalar_select %p349_p7, %s2258_s18, %s351_s24  }
  0x16   : > { %2753 = sst [smem:[#allocation21_spill]] %s2752_s27  ;;  %p2424_p10 = pnand %p1829_p6, %p375_p9 }
  0x17   : > { %2754 = sst [smem:[#allocation22_spill]] %s2422_s28  ;;  %s2273_s15 = smov [#allocation11]  }
  0x18   : > { %p2029_p12 = pneg %p2424_p10  ;;  %s408_s22 = sshll.u32 %s2273_s15, 4  ;;  %s409_s22 = int_to_ptr.vmem [resolvable:$true] %s408_s22 }
  0x19   : > { %s2173_s24 = scalar_lea.vmem %s409_s22, 256  ;;  %p2181_p5 = scmp.lt.s32.totalorder %s409_s22, %s409_s22 }
  0x1a   : > { %p2030_p13 = pnand %p2428_p11, %p2029_p12  ;;  %p2174_p1 = scmp.ne.s32.totalorder %s409_s22, %s2173_s24 }
  0x1b   : > { %p2182_p6 = scmp.lt.s32.totalorder %s2173_s24, %s2173_s24 }
  0x1c   : > { %p2164_p0 = pneg %p2030_p13 }
  0x1d   : > { %p2183_p7 = por %p2182_p6, %p2181_p5 }
  0x1e   : > { %p2176_p2 = pnand %p2174_p1, %p2164_p0 }
  0x20   : > { %p2177_p3 = pneg %p2176_p2 }
  0x22   : > { %p2184_p9 = pnand %p2183_p7, %p2177_p3 }
  0x24   : > { %2187 = shalt.err (!%p2184_p9)
}
  0x25   : > { %s2274_s0 = smov 64   ;;  %s2275_s26 = smov 4  }
  0x26   : > { %2032 = dma.hbm_to_vmem [thread:$0]  (!%p2030_p13), %s2739_s10, 256, %s409_s22, [#allocation12], %s2274_s0, %s2274_s0, %s2275_s26  }
  0x27   : > { %457 = sbr.rel (%p2424_p10) target bundleno = 2495 (0x9bf), region = 72 }
  0x2c   : > { %2241 = dma.done.wait (%p2428_p11), [#allocation12], 256  }
  0x2d   : > { %2243 = vsyncadd (%p2428_p11), [#allocation12], 4294967040  ;;  %p512_p12 = scmp.lt.s32.totalorder %s2262_s19, 1  ;;  %vm538_vm0 = vcmask 261120   ;;  %v2108_v14 = vld [vmem:[%s2735_s6 + $0x8] sm:$0xff]   ;;  %v2276_v15 = vmov 0.0  }
  0x2e   : > { %1923 = vmatprep.subr.bf16.mxu1 %v2276_v15  ;;  %vm2277_vm1 = vmmov 0   ;;  %v2109_v16 = vld [vmem:[%s2735_s6] sm:$0xff]   ;;  %1951 = vmatprep.subr.bf16.mxu0 %v2276_v15  ;;  %v2110_v31 = vld [vmem:[%s2734_s5 + $0x8] sm:$0xff]   ;;  %vm806_vm2 = vcmask 64512   ;;  %vm631_vm3 = vcmask 60416   ;;  %s2278_s18 = smov 112  }
  0x2f   : > { %s513_s15 = scalar_select %p512_p12, %s2262_s19, 1  ;;  %1927 = vmatprep.mubr.msk.bf16.mxu1 %vm2277_vm1, %v2276_v15  ;;  %1924 = vmatpush3.bf16.msra.mxu1 %v2108_v14  ;;  %v1884_v24 = vld [vmem:[%s2732_s3] ss:$0 sm:$0xff]  ;;  %807 = vst.msk [vmem:[#allocation8] sm:$0xff] %vm806_vm2, %v2276_v15  ;;  %808 = vst.msk [vmem:[#allocation8 + $0x8] sm:$0xff] %vm806_vm2, %v2276_v15  ;;  %vm797_vm4 = vcmask 7168  }
  0x30   : > { %1925 = vmatprep.subr.bf16.mxu1 %v2276_v15  ;;  %1953 = vmatprep.mubr.msk.bf16.mxu0 %vm2277_vm1, %v2276_v15  ;;  %v1885_v26 = vld [vmem:[%s2733_s4] ss:$0 sm:$0xff]  ;;  %809 = vst.msk [vmem:[#allocation8 + $0x10] sm:$0xff] %vm806_vm2, %v2276_v15  ;;  %810 = vst.msk [vmem:[#allocation8 + $0x18] sm:$0xff] %vm806_vm2, %v2276_v15  ;;  %s2280_s28 = smov 104   ;;  %s2283_s30 = smov 96  }
  0x31   : > { %s1835_s24 = sshll.u32 %s513_s15, 3  ;;  %v2111_v35 = vld [vmem:[%s2734_s5] sm:$0xff]   ;;  %802 = vst.msk [vmem:[#allocation7] sm:$0xff] %vm797_vm4, %v2276_v15  ;;  %803 = vst.msk [vmem:[#allocation7 + $0x8] sm:$0xff] %vm797_vm4, %v2276_v15  ;;  %s2284_s22 = smov 88   ;;  %vm1141_vm5 = vcmask 1043456  }
  0x32   : > { %s527_s27 = scalar_lea.vmem %s2731_s2, %s1835_s24  ;;  %s518_s29 = scalar_lea.vmem %s2730_s1, %s1835_s24  ;;  %804 = vst.msk [vmem:[#allocation7 + $0x10] sm:$0xff] %vm797_vm4, %v2276_v15  ;;  %805 = vst.msk [vmem:[#allocation7 + $0x18] sm:$0xff] %vm797_vm4, %v2276_v15  ;;  %vm1390_vm6 = vcmask 130048   ;;  %vm1393_vm7 = vcmask 195584  }
  0x33   : > { %v537_v0 = vld [vmem:[%s527_s27] sm:$0xff]  ;;  %1926 = vmatpush3.bf16.msra.mxu1 %v2109_v16  ;;  %s2279_s27 = smov 120   ;;  %s2285_s0 = smov 80  }
  0x34   : > { %v685_v1 = vld [vmem:[%s518_s29] sm:$0xff]  ;;  %v539_v2 = vsel %vm538_vm0, %v537_v0, 0.0  ;;  %1931 = vmatprep.subr.bf16.mxu1 %v2276_v15  ;;  %s2286_s26 = smov 72   ;;  %s2287_s29 = smov 8  }
  0x35   : > { %v687_v3 = vsel %vm538_vm0, %v685_v1, 0.0  ;;  %540 = vadd.xlane.f32.xlu0 %v539_v2 }
  0x39   : > { %688 = vadd.xlane.f32.xlu0 %v687_v3 }
  0xbe   : > { %v541_v4 = vpop.xlane.xlu0 %540 }
  0xbf   : > { %v543_v5 = vmul.f32 0.03125, %v541_v4  ;;  %v2281_v4 = vmov -inf  }
  0xc0   : > { %798 = vst.msk [vmem:[#allocation6] sm:$0xff] %vm797_vm4, %v2281_v4  ;;  %799 = vst.msk [vmem:[#allocation6 + $0x8] sm:$0xff] %vm797_vm4, %v2281_v4 }
  0xc1   : > { %v544_v6 = vsub.f32 %v537_v0, %v543_v5  ;;  %800 = vst.msk [vmem:[#allocation6 + $0x10] sm:$0xff] %vm797_vm4, %v2281_v4  ;;  %801 = vst.msk [vmem:[#allocation6 + $0x18] sm:$0xff] %vm797_vm4, %v2281_v4 }
  0xc2   : > { %v689_v7 = vpop.xlane.xlu0 %688 }
  0xc3   : > { %v691_v8 = vmul.f32 0.03125, %v689_v7  ;;  %v545_v9 = vmul.f32 %v544_v6, %v544_v6  ;;  %v2282_v7 = vmov 0  }
  0xc4   : > { %2106 = vset.pattern.permute.xlu0 %v2282_v7  ;;  %2107 = vset.pattern.permute.xlu1 %v2282_v7 }
  0xc5   : > { %v692_v10 = vsub.f32 %v685_v1, %v691_v8  ;;  %v546_v11 = vsel %vm538_vm0, %v545_v9, 0.0 }
  0xc6   : > { %547 = vadd.xlane.f32.xlu1 %v546_v11 }
  0xc7   : > { %v693_v12 = vmul.f32 %v692_v10, %v692_v10 }
  0xc9   : > { %v694_v13 = vsel %vm538_vm0, %v693_v12, 0.0 }
  0xca   : > { %695 = vadd.xlane.f32.xlu1 %v694_v13 }
 0x14f   : > { %v548_v17 = vpop.xlane.xlu1 %547 }
 0x150   : > { %v549_v18 = vmul.f32 0.03125, %v548_v17 }
 0x152   : > { %v550_v19 = vadd.f32 1e-05, %v549_v18 }
 0x153   : > { %v696_v20 = vpop.xlane.xlu1 %695 }
 0x154   : > { %2124 = vrsqrt.f32 %v550_v19  ;;  %v697_v21 = vmul.f32 0.03125, %v696_v20 }
 0x156   : > { %v698_v22 = vadd.f32 1e-05, %v697_v21 }
 0x158   : > { %2126 = vrsqrt.f32 %v698_v22 }
 0x161   : > { %v2125_v23 = vpop.eup %2124 }
 0x162   : > { %v552_v25 = vmul.f32 %v2125_v23, %v544_v6 }
 0x164   : > { %v559_v27 = vmul.f32 %v1884_v24, %v552_v25 }
 0x165   : > { %v2127_v28 = vpop.eup %2126 }
 0x166   : > { %v566_v29 = vadd.f32 %v1885_v26, %v559_v27  ;;  %v700_v30 = vmul.f32 %v2127_v28, %v692_v10  ;;  %v1015_v28 = vld [vmem:[#allocation6 + $0x10] sm:$0xff] }
 0x168   : > { %v567_v32 = vpack.c.bf16 %v566_v29, %v566_v29  ;;  %v707_v33 = vmul.f32 %v1884_v24, %v700_v30  ;;  %v2553_v24 = vld [vmem:[#allocation6] sm:$0xff]  ;;  %v2563_v29 = vld [vmem:[#allocation6 + $0x8] sm:$0xff] }
 0x16a   : > { %1928 = vmatmul.mubr.msk.bf16.vlgmr.msra.gmra.mxu1 %vm538_vm0, %v567_v32  ;;  %v714_v34 = vadd.f32 %v1885_v26, %v707_v33 }
 0x16b   : > { %1932 = vmatpush3.bf16.msra.mxu1 %v2110_v31  ;;  %1935 = vmatprep.mubr.msk.bf16.mxu1 %vm2277_vm1, %v2276_v15 }
 0x16c   : > { %715 = vst.msk [vmem:[#allocation2] sm:$0xff] %vm538_vm0, %v714_v34  ;;  %1933 = vmatprep.subr.bf16.mxu1 %v2276_v15  ;;  %v716_v36 = vpack.c.bf16 %v714_v34, %v714_v34 }
 0x16f   : > { %1934 = vmatpush3.bf16.msra.mxu1 %v2111_v35 }
 0x170   : > { %1939 = vmatprep.subr.bf16.mxu1 %v2276_v15 }
 0x172   : > { %1936 = vmatmul.mubr.msk.bf16.vlgmr.msra.gmra.mxu1 %vm538_vm0, %v716_v36  ;;  %v1016_v36 = vld [vmem:[#allocation6 + $0x18] sm:$0xff] }
 0x173   : > { %1941 = vmatprep.mubr.msk.bf16.mxu1 %vm2277_vm1, %v2276_v15 }
 0x22a   : > { %v621_v37 = vpop.f32.mrf.mxu1 }
 0x22b   : > { %v2500_v38 = vpack.c.bf16 %v621_v37, %v621_v37 }
 0x22c   : > { %v1929_v39 = vpop.f32.mrf.mxu1 }
 0x22d   : > { %632 = vst.msk [vmem:[#allocation4] sm:$0xf] %vm631_vm3, %v2500_v38  ;;  %655 = vrot.lane.b32.xlu1 %v2500_v38, %s2278_s18  ;;  %642 = vrot.lane.b32.xlu0 %v2500_v38, %s2279_s27 }
 0x22e   : > { %v624_v40 = vpop.f32.mrf.mxu1 }
 0x230   : > { %v1930_v41 = vpop.f32.mrf.mxu1 }
 0x231   : > { %668 = vrot.lane.b32.xlu1 %v2500_v38, %s2280_s28 }
 0x232   : > { %v770_v42 = vpop.f32.mrf.mxu1 }
 0x233   : > { %v776_v43 = vpack.c.bf16 %v770_v42, %v770_v42 }
 0x234   : > { %v1937_v44 = vpop.f32.mrf.mxu1  ;;  %v814_v45 = vld [vmem:[#allocation4] sm:$0xf] }
 0x235   : > { %778 = vst.msk [vmem:[#allocation3] sm:$0xf] %vm631_vm3, %v776_v43  ;;  %787 = vrot.lane.b32.xlu0 %v776_v43, %s2278_s18  ;;  %782 = vrot.lane.b32.xlu1 %v776_v43, %s2279_s27  ;;  %v833_v46 = vsel %vm806_vm2, %v814_v45, 0  ;;  %s2288_s18 = smov 16   ;;  %s2289_s27 = smov 24  }
 0x236   : > { %v773_v47 = vpop.f32.mrf.mxu1  ;;  %1940 = vmatpush3.bf16.xpose.msra.mxu1 %v833_v46 }
 0x237   : > { %1945 = vmatprep.subr.bf16.mxu1 %v2276_v15 }
 0x238   : > { %v1938_v48 = vpop.f32.mrf.mxu1 }
 0x239   : > { %792 = vrot.lane.b32.xlu1 %v776_v43, %s2280_s28 }
 0x23c   : > { %v824_v49 = vld [vmem:[#allocation3] sm:$0xf] }
 0x23d   : > { %1942 = vmatmul.mubr.msk.bf16.vlgmr.msra.gmra.mxu1 %vm806_vm2, %v824_v49 }
 0x23e   : > { %1947 = vmatprep.mubr.msk.bf16.mxu1 %vm2277_vm1, %v2276_v15 }
 0x29f   : > { %v656_v50 = vpop.permute.xlu1 %655  ;;  %v643_v51 = vpop.permute.xlu0 %642 }
 0x2a0   : > { %1843 = vst.msk [vmem:[#allocation4 + $0x8] sm:$0xf] %vm631_vm3, %v656_v50  ;;  %1841 = vst.msk [vmem:[#allocation4 + $0x4] sm:$0xf] %vm631_vm3, %v643_v51 }
 0x2a3   : > { %v669_v52 = vpop.permute.xlu1 %668 }
 0x2a4   : > { %1845 = vst.msk [vmem:[#allocation4 + $0xc] sm:$0xf] %vm631_vm3, %v669_v52 }
 0x2a7   : > { %v788_v53 = vpop.permute.xlu0 %787  ;;  %v783_v54 = vpop.permute.xlu1 %782  ;;  %v815_v55 = vld [vmem:[#allocation4 + $0x4] sm:$0xf]  ;;  %v816_v56 = vld [vmem:[#allocation4 + $0x8] sm:$0xf] }
 0x2a8   : > { %791 = vst.msk [vmem:[#allocation3 + $0x8] sm:$0xf] %vm631_vm3, %v788_v53  ;;  %786 = vst.msk [vmem:[#allocation3 + $0x4] sm:$0xf] %vm631_vm3, %v783_v54  ;;  %v879_v57 = vsel %vm806_vm2, %v815_v55, 0  ;;  %v925_v58 = vsel %vm806_vm2, %v816_v56, 0 }
 0x2a9   : > { %1946 = vmatpush3.bf16.xpose.msra.mxu1 %v879_v57  ;;  %1952 = vmatpush3.bf16.xpose.msra.mxu0 %v925_v58 }
 0x2aa   : > { %1957 = vmatprep.subr.bf16.mxu1 %v2276_v15  ;;  %1963 = vmatprep.subr.bf16.mxu0 %v2276_v15 }
 0x2ab   : > { %v793_v59 = vpop.permute.xlu1 %792  ;;  %v817_v60 = vld [vmem:[#allocation4 + $0xc] sm:$0xf] }
 0x2ac   : > { %796 = vst.msk [vmem:[#allocation3 + $0xc] sm:$0xf] %vm631_vm3, %v793_v59  ;;  %v971_v63 = vsel %vm806_vm2, %v817_v60, 0 }
 0x2af   : > { %v825_v61 = vld [vmem:[#allocation3 + $0x4] sm:$0xf]  ;;  %v826_v62 = vld [vmem:[#allocation3 + $0x8] sm:$0xf] }
 0x2b0   : > { %1948 = vmatmul.mubr.msk.bf16.vlgmr.msra.gmra.mxu1 %vm806_vm2, %v825_v61  ;;  %1954 = vmatmul.mubr.msk.bf16.vlgmr.msra.gmra.mxu0 %vm806_vm2, %v826_v62 }
 0x2b1   : > { %1958 = vmatpush3.bf16.xpose.msra.mxu1 %v971_v63  ;;  %1959 = vmatprep.mubr.msk.bf16.mxu1 %vm2277_vm1, %v2276_v15 }
 0x2b2   : > { %1965 = vmatprep.mubr.msk.bf16.mxu0 %vm2277_vm1, %v2276_v15  ;;  %1969 = vmatprep.subr.bf16.mxu1 %v2276_v15 }
 0x2b3   : > { %v827_v0 = vld [vmem:[#allocation3 + $0xc] sm:$0xf] }
 0x2b8   : > { %1960 = vmatmul.mubr.msk.bf16.vlgmr.msra.gmra.mxu1 %vm806_vm2, %v827_v0 }
 0x2b9   : > { %1971 = vmatprep.mubr.msk.bf16.mxu1 %vm2277_vm1, %v2276_v15 }
 0x2fd   : > { %v2534_v1 = vpop.f32.mrf.mxu1 }
 0x2fe   : > { %v1017_v2 = vsel %vm806_vm2, %v2534_v1, -inf }
 0x2ff   : > { %1018 = vmax.xlane.f32.xlu0 %v1017_v2  ;;  %v1943_v3 = vpop.f32.mrf.mxu1 }
 0x301   : > { %v872_v5 = vpop.f32.mrf.mxu1 }
 0x303   : > { %v1944_v6 = vpop.f32.mrf.mxu1 }
 0x370   : > { %v915_v8 = vpop.f32.mrf.mxu1  ;;  %v961_v9 = vpop.f32.mrf.mxu0 }
 0x371   : > { %v1023_v10 = vsel %vm806_vm2, %v961_v9, -inf  ;;  %v1020_v11 = vsel %vm806_vm2, %v915_v8, -inf }
 0x372   : > { %v1955_v12 = vpop.f32.mrf.mxu0  ;;  %1024 = vmax.xlane.f32.xlu0 %v1023_v10  ;;  %1021 = vmax.xlane.f32.xlu1 %v1020_v11  ;;  %v1949_v13 = vpop.f32.mrf.mxu1 }
 0x374   : > { %v918_v14 = vpop.f32.mrf.mxu1  ;;  %v964_v16 = vpop.f32.mrf.mxu0 }
 0x376   : > { %v1950_v17 = vpop.f32.mrf.mxu1  ;;  %v1956_v18 = vpop.f32.mrf.mxu0 }
 0x378   : > { %v1007_v19 = vpop.f32.mrf.mxu1 }
 0x379   : > { %v1026_v20 = vsel %vm806_vm2, %v1007_v19, -inf }
 0x37a   : > { %1027 = vmax.xlane.f32.xlu0 %v1026_v20  ;;  %v1961_v21 = vpop.f32.mrf.mxu1  ;;  %v1078_v20 = vld [vmem:[#allocation7 + $0x8] sm:$0xff] }
 0x37c   : > { %v1010_v22 = vpop.f32.mrf.mxu1 }
 0x37e   : > { %v1962_v23 = vpop.f32.mrf.mxu1 }
 0x388   : > { %v1019_v25 = vpop.xlane.xlu0 %1018 }
 0x389   : > { %v2556_v26 = vmax.f32 %v2553_v24, %v1019_v25  ;;  %v1077_v25 = vld [vmem:[#allocation7] sm:$0xff] }
 0x38b   : > { %v1033_v27 = vsub.f32 %v2553_v24, %v2556_v26  ;;  %1331 = vst.msk [vmem:[#allocation6] sm:$0xff] %vm797_vm4, %v2556_v26 }
 0x390   : > { %1047 = vperm.xlu0 %2106, %v2556_v26  }
 0x3fb   : > { %v1025_v30 = vpop.xlane.xlu0 %1024  ;;  %v1022_v31 = vpop.xlane.xlu1 %1021 }
 0x3fc   : > { %v1031_v32 = vmax.f32 %v1015_v28, %v1025_v30  ;;  %v2566_v33 = vmax.f32 %v2563_v29, %v1022_v31 }
 0x3fe   : > { %v1035_v34 = vsub.f32 %v1015_v28, %v1031_v32  ;;  %1333 = vst.msk [vmem:[#allocation6 + $0x10] sm:$0xff] %vm797_vm4, %v1031_v32  ;;  %v1034_v35 = vsub.f32 %v2563_v29, %v2566_v33  ;;  %1332 = vst.msk [vmem:[#allocation6 + $0x8] sm:$0xff] %vm797_vm4, %v2566_v33  ;;  %1052 = vperm.xlu1 %2107, %v2566_v33   ;;  %v1079_v28 = vld [vmem:[#allocation7 + $0x10] sm:$0xff] }
 0x400   : > { %v1041_v61 = vmul.f32 1.442695, %v1035_v34  ;;  %v1039_v11 = vmul.f32 1.442695, %v1034_v35  ;;  %v1080_v34 = vld [vmem:[#allocation7 + $0x18] sm:$0xff] }
 0x402   : > { %1057 = vperm.xlu1 %2107, %v1031_v32  }
 0x403   : > { %v1028_v37 = vpop.xlane.xlu0 %1027 }
 0x404   : > { %v1032_v39 = vmax.f32 %v1016_v36, %v1028_v37 }
 0x406   : > { %v1036_v40 = vsub.f32 %v1016_v36, %v1032_v39  ;;  %1334 = vst.msk [vmem:[#allocation6 + $0x18] sm:$0xff] %vm797_vm4, %v1032_v39  ;;  %1062 = vperm.xlu1 %2107, %v1032_v39  }
 0x408   : > { %v1043_v5 = vmul.f32 1.442695, %v1036_v40 }
 0x40a   : > { %636 = vrot.lane.b32.xlu1 %v2500_v38, %s2283_s30 }
 0x40b   : > { %v1048_v41 = vpop.permute.xlu0 %1047 }
 0x40c   : > { %v1065_v42 = vsub.f32 %v2534_v1, %v1048_v41 }
 0x40e   : > { %649 = vrot.lane.b32.xlu1 %v2500_v38, %s2284_s22  ;;  %v1069_v45 = vmul.f32 1.442695, %v1065_v42 }
 0x412   : > { %662 = vrot.lane.b32.xlu1 %v2500_v38, %s2285_s0  ;;  %s1879_s0 = sshll.u32 %s2262_s19, 7 }
 0x413   : > { %s2688_s23 = scalar_lea.hbm %s2743_s14, %s1879_s0 }
 0x416   : > { %675 = vrot.lane.b32.xlu1 %v2500_v38, %s2286_s26 }
 0x479   : > { %v1053_v43 = vpop.permute.xlu1 %1052 }
 0x47a   : > { %v1066_v44 = vsub.f32 %v915_v8, %v1053_v43 }
 0x47c   : > { %v1071_v46 = vmul.f32 1.442695, %v1066_v44 }
 0x47d   : > { %v1058_v47 = vpop.permute.xlu1 %1057 }
 0x47e   : > { %2128 = vpow2.f32 %v1071_v46  ;;  %v1067_v48 = vsub.f32 %v961_v9, %v1058_v47  ;;  %v1107_v46 = vld [vmem:[#allocation8 + $0x8] sm:$0xff] }
 0x47f   : > { %2130 = vpow2.f32 %v1069_v45 }
 0x480   : > { %v1073_v49 = vmul.f32 1.442695, %v1067_v48 }
 0x481   : > { %v1063_v50 = vpop.permute.xlu1 %1062 }
 0x482   : > { %2132 = vpow2.f32 %v1073_v49  ;;  %v1068_v51 = vsub.f32 %v1007_v19, %v1063_v50  ;;  %v1037_v19 = vmul.f32 1.442695, %v1033_v27 }
 0x484   : > { %v1075_v52 = vmul.f32 1.442695, %v1068_v51 }
 0x485   : > { %v637_v53 = vpop.permute.xlu1 %636 }
 0x486   : > { %2134 = vpow2.f32 %v1075_v52  ;;  %641 = vst.msk [vmem:[#allocation5] sm:$0xf] %vm631_vm3, %v637_v53  ;;  %v1108_v52 = vld [vmem:[#allocation8 + $0x10] sm:$0xff] }
 0x487   : > { %2136 = vpow2.f32 %v1041_v61 }
 0x488   : > { %2138 = vpow2.f32 %v1043_v5 }
 0x489   : > { %v650_v38 = vpop.permute.xlu1 %649  ;;  %2140 = vpow2.f32 %v1039_v11 }
 0x48a   : > { %1842 = vst.msk [vmem:[#allocation5 + $0x4] sm:$0xf] %vm631_vm3, %v650_v38  ;;  %2142 = vpow2.f32 %v1037_v19  ;;  %v1106_v19 = vld [vmem:[#allocation8] sm:$0xff] }
 0x48b   : > { %v2129_v54 = vpop.eup %2128 }
 0x48c   : > { %v1088_v55 = vsel %vm806_vm2, %v2129_v54, 0.0  ;;  %v2131_v56 = vpop.eup %2130  ;;  %v1135_v7 = vpack.c.bf16 %v2129_v54, %v2129_v54 }
 0x48d   : > { %1089 = vadd.xlane.f32.xlu1 %v1088_v55  ;;  %v663_v57 = vpop.permute.xlu1 %662  ;;  %v820_v58 = vld [vmem:[#allocation5] sm:$0xf]  ;;  %v1085_v63 = vsel %vm806_vm2, %v2131_v56, 0.0  ;;  %v1134_v0 = vpack.c.bf16 %v2131_v56, %v2131_v56 }
 0x48e   : > { %1844 = vst.msk [vmem:[#allocation5 + $0x8] sm:$0xf] %vm631_vm3, %v663_v57  ;;  %v1143_v59 = vsel %vm1141_vm5, %v820_v58, 0 }
 0x48f   : > { %v2133_v60 = vpop.eup %2132  ;;  %1964 = vmatpush3.bf16.msra.mxu0 %v1143_v59  ;;  %v1109_v59 = vld [vmem:[#allocation8 + $0x18] sm:$0xff] }
 0x490   : > { %v1091_v62 = vsel %vm806_vm2, %v2133_v60, 0.0  ;;  %1975 = vmatprep.subr.bf16.mxu0 %v2276_v15  ;;  %v1136_v10 = vpack.c.bf16 %v2133_v60, %v2133_v60 }
 0x491   : > { %1092 = vadd.xlane.f32.xlu0 %v1091_v62  ;;  %v676_v1 = vpop.permute.xlu1 %675  ;;  %1086 = vadd.xlane.f32.xlu1 %v1085_v63  ;;  %v821_v2 = vld [vmem:[#allocation5 + $0x4] sm:$0xf] }
 0x492   : > { %1846 = vst.msk [vmem:[#allocation5 + $0xc] sm:$0xf] %vm631_vm3, %v676_v1  ;;  %1966 = vmatmul.mubr.msk.bf16.vlgmr.msra.gmra.mxu0 %vm806_vm2, %v1134_v0  ;;  %v1189_v3 = vsel %vm1141_vm5, %v821_v2, 0 }
 0x493   : > { %v2135_v4 = vpop.eup %2134  ;;  %1970 = vmatpush3.bf16.msra.mxu1 %v1189_v3  ;;  %1977 = vmatprep.mubr.msk.bf16.mxu0 %vm2277_vm1, %v2276_v15 }
 0x494   : > { %v1094_v6 = vsel %vm806_vm2, %v2135_v4, 0.0  ;;  %1981 = vmatprep.subr.bf16.mxu1 %v2276_v15  ;;  %v1137_v14 = vpack.c.bf16 %v2135_v4, %v2135_v4  ;;  %v2137_v16 = vpop.eup %2136 }
 0x495   : > { %1095 = vadd.xlane.f32.xlu0 %v1094_v6  ;;  %v822_v8 = vld [vmem:[#allocation5 + $0x8] sm:$0xf]  ;;  %v2139_v17 = vpop.eup %2138  ;;  %v1083_v31 = vmul.f32 %v2137_v16, %v1079_v28 }
 0x496   : > { %1972 = vmatmul.mubr.msk.bf16.vlgmr.msra.gmra.mxu1 %vm806_vm2, %v1135_v7  ;;  %v1235_v9 = vsel %vm1141_vm5, %v822_v8, 0  ;;  %v2141_v18 = vpop.eup %2140  ;;  %v1084_v24 = vmul.f32 %v2139_v17, %v1080_v34 }
 0x497   : > { %1976 = vmatpush3.bf16.msra.mxu0 %v1235_v9  ;;  %1983 = vmatprep.mubr.msk.bf16.mxu1 %vm2277_vm1, %v2276_v15  ;;  %v1082_v21 = vmul.f32 %v2141_v18, %v1078_v20  ;;  %v2143_v22 = vpop.eup %2142  ;;  %v2112_v9 = vld [vmem:[%s2736_s7 + $0x8] sm:$0xff]  }
 0x498   : > { %1987 = vmatprep.subr.bf16.mxu0 %v2276_v15  ;;  %v1081_v30 = vmul.f32 %v2143_v22, %v1077_v25 }
 0x499   : > { %v823_v12 = vld [vmem:[#allocation5 + $0xc] sm:$0xf] }
 0x49a   : > { %1978 = vmatmul.mubr.msk.bf16.vlgmr.msra.gmra.mxu0 %vm806_vm2, %v1136_v10  ;;  %v1281_v13 = vsel %vm1141_vm5, %v823_v12, 0  ;;  %v2113_v10 = vld [vmem:[%s2736_s7] sm:$0xff]  }
 0x49b   : > { %1982 = vmatpush3.bf16.msra.mxu1 %v1281_v13  ;;  %1991 = vmatprep.mubr.msk.bf16.mxu0 %vm2277_vm1, %v2276_v15 }
 0x49c   : > { %1995 = vmatprep.subr.bf16.mxu1 %v2276_v15  ;;  %1988 = vmatpush3.bf16.msra.mxu0 %v2112_v9 }
 0x49d   : > { %1989 = vmatprep.subr.bf16.mxu0 %v2276_v15 }
 0x49e   : > { %1984 = vmatmul.mubr.msk.bf16.vlgmr.msra.gmra.mxu1 %vm806_vm2, %v1137_v14 }
 0x49f   : > { %1999 = vmatprep.mubr.msk.bf16.mxu1 %vm2277_vm1, %v2276_v15 }
 0x4a0   : > { %1990 = vmatpush3.bf16.msra.mxu0 %v2113_v10 }
 0x4a1   : > { %2003 = vmatprep.subr.bf16.mxu0 %v2276_v15 }
 0x4a2   : > { %1122 = vperm.xlu1 %2107, %v2137_v16  }
 0x4a6   : > { %1127 = vperm.xlu1 %2107, %v2139_v17  }
 0x4ab   : > { %1117 = vperm.xlu0 %2106, %v2141_v18  }
 0x516   : > { %v1090_v23 = vpop.xlane.xlu1 %1089 }
 0x517   : > { %v1098_v29 = vadd.f32 %v1090_v23, %v1082_v21 }
 0x519   : > { %1103 = vst.msk [vmem:[#allocation7 + $0x8] sm:$0xff] %vm797_vm4, %v1098_v29 }
 0x51a   : > { %v1087_v32 = vpop.xlane.xlu1 %1086  ;;  %v1093_v33 = vpop.xlane.xlu0 %1092 }
 0x51b   : > { %v1097_v35 = vadd.f32 %v1087_v32, %v1081_v30  ;;  %v1099_v36 = vadd.f32 %v1093_v33, %v1083_v31 }
 0x51d   : > { %1102 = vst.msk [vmem:[#allocation7] sm:$0xff] %vm797_vm4, %v1097_v35  ;;  %1104 = vst.msk [vmem:[#allocation7 + $0x10] sm:$0xff] %vm797_vm4, %v1099_v36 }
 0x51e   : > { %v1096_v26 = vpop.xlane.xlu0 %1095  ;;  %v1123_v49 = vpop.permute.xlu1 %1122 }
 0x51f   : > { %v1100_v27 = vadd.f32 %v1096_v26, %v1084_v24  ;;  %v1132_v57 = vmul.f32 %v1123_v49, %v1108_v52  ;;  %v2115_v52 = vld [vmem:[#allocation11] sm:$0xff]  }
 0x520   : > { %v1339_v37 = vld [vmem:[#allocation7 + $0x8] sm:$0xff] }
 0x521   : > { %1105 = vst.msk [vmem:[#allocation7 + $0x18] sm:$0xff] %vm797_vm4, %v1100_v27  ;;  %2144 = vrcp.f32 %v1339_v37 }
 0x522   : > { %v1128_v58 = vpop.permute.xlu1 %1127 }
 0x523   : > { %v1133_v1 = vmul.f32 %v1128_v58, %v1109_v59 }
 0x524   : > { %v1340_v39 = vld [vmem:[#allocation7 + $0x10] sm:$0xff]  ;;  %v1338_v41 = vld [vmem:[#allocation7] sm:$0xff] }
 0x525   : > { %2146 = vrcp.f32 %v1340_v39  ;;  %v1400_v39 = vld [vmem:[#allocation2] sm:$0xff] }
 0x526   : > { %v1118_v47 = vpop.permute.xlu0 %1117 }
 0x527   : > { %v1131_v51 = vmul.f32 %v1118_v47, %v1107_v46 }
 0x528   : > { %v1341_v40 = vld [vmem:[#allocation7 + $0x18] sm:$0xff] }
 0x529   : > { %2148 = vrcp.f32 %v1341_v40 }
 0x52a   : > { %2150 = vrcp.f32 %v1338_v41 }
 0x52e   : > { %v2145_v42 = vpop.eup %2144 }
 0x52f   : > { %1357 = vperm.xlu0 %2106, %v2145_v42  }
 0x532   : > { %v2147_v43 = vpop.eup %2146 }
 0x533   : > { %1362 = vperm.xlu1 %2107, %v2147_v43  }
 0x536   : > { %v2149_v44 = vpop.eup %2148 }
 0x537   : > { %1112 = vperm.xlu1 %2107, %v2143_v22   ;;  %1367 = vperm.xlu0 %2106, %v2149_v44   ;;  %v2151_v45 = vpop.eup %2150 }
 0x53b   : > { %1352 = vperm.xlu0 %2106, %v2151_v45  }
 0x552   : > { %v1179_v48 = vpop.f32.mrf.mxu0 }
 0x554   : > { %v1967_v50 = vpop.f32.mrf.mxu0 }
 0x556   : > { %v1182_v53 = vpop.f32.mrf.mxu0  ;;  %v1225_v38 = vpop.f32.mrf.mxu1 }
 0x557   : > { %v1324_v54 = vadd.f32 %v1225_v38, %v1131_v51  ;;  %v2114_v51 = vld [vmem:[#allocation11 + $0x8] sm:$0xff]   ;;  %v2116_v53 = vld [vmem:[%s2741_s12 + $0x38] sm:$0xff]   ;;  %v2117_v38 = vld [vmem:[%s2741_s12 + $0x30] sm:$0xff]  }
 0x558   : > { %v1968_v55 = vpop.f32.mrf.mxu0  ;;  %v1973_v56 = vpop.f32.mrf.mxu1  ;;  %1996 = vmatpush3.bf16.msra.mxu1 %v2114_v51 }
 0x559   : > { %1328 = vst.msk [vmem:[#allocation8 + $0x8] sm:$0xff] %vm806_vm2, %v1324_v54  ;;  %1997 = vmatprep.subr.bf16.mxu1 %v2276_v15  ;;  %v2118_v54 = vld [vmem:[%s2741_s12 + $0x28] sm:$0xff]   ;;  %v2119_v55 = vld [vmem:[%s2741_s12 + $0x20] sm:$0xff]   ;;  %v2120_v56 = vld [vmem:[%s2741_s12 + $0x18] sm:$0xff]  }
 0x55a   : > { %v1228_v60 = vpop.f32.mrf.mxu1  ;;  %v1271_v61 = vpop.f32.mrf.mxu0 }
 0x55b   : > { %v1325_v62 = vadd.f32 %v1271_v61, %v1132_v57  ;;  %v2121_v57 = vld [vmem:[%s2741_s12 + $0x10] sm:$0xff]  }
 0x55c   : > { %v1974_v63 = vpop.f32.mrf.mxu1  ;;  %v1979_v0 = vpop.f32.mrf.mxu0  ;;  %1998 = vmatpush3.bf16.msra.mxu1 %v2115_v52 }
 0x55d   : > { %1329 = vst.msk [vmem:[#allocation8 + $0x10] sm:$0xff] %vm806_vm2, %v1325_v62  ;;  %v1862_v62 = vld [vmem:[%s2737_s8] ss:$0 sm:$0xff] }
 0x55e   : > { %v1274_v2 = vpop.f32.mrf.mxu0  ;;  %v1317_v3 = vpop.f32.mrf.mxu1  ;;  %v1863_v0 = vld [vmem:[%s2738_s9] ss:$0 sm:$0xff] }
 0x55f   : > { %v1326_v4 = vadd.f32 %v1317_v3, %v1133_v1 }
 0x560   : > { %v1980_v5 = vpop.f32.mrf.mxu0  ;;  %v1985_v6 = vpop.f32.mrf.mxu1  ;;  %v1347_v12 = vld [vmem:[#allocation8 + $0x8] sm:$0xff] }
 0x561   : > { %1330 = vst.msk [vmem:[#allocation8 + $0x18] sm:$0xff] %vm806_vm2, %v1326_v4  ;;  %v2122_v4 = vld [vmem:[%s2741_s12 + $0x8] sm:$0xff]   ;;  %v2123_v5 = vld [vmem:[%s2741_s12] sm:$0xff]  }
 0x562   : > { %v1320_v7 = vpop.f32.mrf.mxu1  ;;  %v1864_v6 = vld [vmem:[%s2740_s11] ss:$0 sm:$0xff] }
 0x564   : > { %v1986_v8 = vpop.f32.mrf.mxu1  ;;  %v1348_v16 = vld [vmem:[#allocation8 + $0x10] sm:$0xff] }
 0x568   : > { %v1349_v23 = vld [vmem:[#allocation8 + $0x18] sm:$0xff] }
 0x5aa   : > { %v1358_v11 = vpop.permute.xlu0 %1357 }
 0x5ab   : > { %v1371_v13 = vmul.f32 %v1358_v11, %v1347_v12 }
 0x5ad   : > { %v1375_v14 = vpack.c.bf16 %v1371_v13, %v1371_v13 }
 0x5ae   : > { %v1363_v17 = vpop.permute.xlu1 %1362 }
 0x5af   : > { %v1372_v18 = vmul.f32 %v1363_v17, %v1348_v16  ;;  %1379 = vrot.lane.b32.xlu1 %v1375_v14, %s2287_s29  ;;  %v554_v14 = vlaneseq }
 0x5b1   : > { %v1376_v20 = vpack.c.bf16 %v1372_v18, %v1372_v18  ;;  %v555_v16 = vshrl.u32 %v554_v14, 7  ;;  %v1868_v18 = vld [vmem:[%s2742_s13] ss:$0 sm:$0xff] }
 0x5b2   : > { %v1113_v21 = vpop.permute.xlu1 %1112  ;;  %v1368_v22 = vpop.permute.xlu0 %1367 }
 0x5b3   : > { %v1130_v25 = vmul.f32 %v1113_v21, %v1106_v19  ;;  %v1373_v28 = vmul.f32 %v1368_v22, %v1349_v23  ;;  %1382 = vrot.lane.b32.xlu0 %v1376_v20, %s2288_s18  ;;  %s1671_s18 = sld [smem:[#allocation10 + %s2262_s19]]  ;;  %s2290_s19 = smov [#allocation14]  }
 0x5b5   : > { %v1323_v29 = vadd.f32 %v1179_v48, %v1130_v25  ;;  %v1377_v30 = vpack.c.bf16 %v1373_v28, %v1373_v28 }
 0x5b6   : > { %v1353_v32 = vpop.permute.xlu0 %1352 }
 0x5b7   : > { %1327 = vst.msk [vmem:[#allocation8] sm:$0xff] %vm806_vm2, %v1323_v29  ;;  %1385 = vrot.lane.b32.xlu1 %v1377_v30, %s2289_s27  ;;  %s509_s27 = sand.u32 1, %s2254_s17  }
 0x5b8   : > { %s1834_s28 = sshll.u32 %s509_s27, 3  ;;  %s1680_s29 = scalar_lea.sflag [#allocation13], %s509_s27 }
 0x5b9   : > { %v1672_v17 = vstv %s1671_s18  ;;  %s511_s26 = scalar_lea.vmem [#allocation14], %s1834_s28  ;;  %s2192_s28 = sshll.u32 %s2290_s19, 4  ;;  %s2193_s28 = int_to_ptr.vmem [resolvable:$false] %s2192_s28 }
 0x5ba   : > { %vm1673_vm8 = vcmp.lt.s32.totalorder %v555_v16, %v1672_v17  ;;  %s1694_s15 = sshll.u32 %s511_s26, 4  ;;  %s2194_s30 = scalar_lea.vmem %s2193_s28, 256  ;;  %s1695_s15 = int_to_ptr.vmem [resolvable:$true] %s1694_s15 }
 0x5bb   : > { %v1877_v20 = vsel %vm1673_vm8, 1.0, %v2276_v15  ;;  %s2188_s18 = scalar_lea.vmem %s1695_s15, 128  ;;  %p2195_p0 = scmp.lt.s32.totalorder %s1695_s15, %s2193_s28 }
 0x5bc   : > { %p2189_p10 = scmp.ne.s32.totalorder %s1695_s15, %s2188_s18  ;;  %p2196_p1 = scmp.lt.s32.totalorder %s2194_s30, %s2188_s18 }
 0x5be   : > { %v1346_v31 = vld [vmem:[#allocation8] sm:$0xff]  ;;  %p2190_p11 = pnand %p2189_p10, %p2409_p4  ;;  %p2197_p2 = por %p2196_p1, %p2195_p0 }
 0x5bf   : > { %v1370_v33 = vmul.f32 %v1353_v32, %v1346_v31 }
 0x5c0   : > { %p2191_p13 = pneg %p2190_p11 }
 0x5c1   : > { %v1374_v35 = vpack.c.bf16 %v1370_v33, %v1370_v33 }
 0x5c2   : > { %p2198_p3 = pnand %p2197_p2, %p2191_p13 }
 0x621   : > { %v1380_v34 = vpop.permute.xlu1 %1379 }
 0x622   : > { %v1389_v24 = vsel %vm806_vm2, %v1374_v35, %v1380_v34 }
 0x625   : > { %v1383_v36 = vpop.permute.xlu0 %1382 }
 0x626   : > { %v1392_v26 = vsel %vm1390_vm6, %v1389_v24, %v1383_v36 }
 0x629   : > { %v1386_v27 = vpop.permute.xlu1 %1385 }
 0x62a   : > { %v1395_v37 = vsel %vm1393_vm7, %v1392_v26, %v1386_v27 }
 0x62b   : > { %1992 = vmatmul.mubr.msk.bf16.vlgmr.msra.gmra.mxu0 %vm538_vm0, %v1395_v37 }
 0x62c   : > { %2019 = vmatprep.mubr.msk.bf16.mxu0 %vm2277_vm1, %v2276_v15  ;;  %2004 = vmatpush3.bf16.msra.mxu0 %v2116_v53 }
 0x62d   : > { %2005 = vmatprep.subr.bf16.mxu0 %v2276_v15 }
 0x630   : > { %2006 = vmatpush3.bf16.msra.mxu0 %v2117_v38 }
 0x631   : > { %2007 = vmatprep.subr.bf16.mxu0 %v2276_v15 }
 0x634   : > { %2008 = vmatpush3.bf16.msra.mxu0 %v2118_v54 }
 0x635   : > { %2009 = vmatprep.subr.bf16.mxu0 %v2276_v15 }
 0x638   : > { %2010 = vmatpush3.bf16.msra.mxu0 %v2119_v55 }
 0x639   : > { %2011 = vmatprep.subr.bf16.mxu0 %v2276_v15 }
 0x63c   : > { %2012 = vmatpush3.bf16.msra.mxu0 %v2120_v56 }
 0x63d   : > { %2013 = vmatprep.subr.bf16.mxu0 %v2276_v15 }
 0x640   : > { %2014 = vmatpush3.bf16.msra.mxu0 %v2121_v57 }
 0x641   : > { %2015 = vmatprep.subr.bf16.mxu0 %v2276_v15 }
 0x644   : > { %2016 = vmatpush3.bf16.msra.mxu0 %v2122_v4 }
 0x645   : > { %2017 = vmatprep.subr.bf16.mxu0 %v2276_v15 }
 0x648   : > { %2018 = vmatpush3.bf16.msra.mxu0 %v2123_v5 }
 0x6eb   : > { %v1450_v40 = vpop.f32.mrf.mxu0 }
 0x6ec   : > { %v1451_v41 = vadd.f32 %v1450_v40, %v1400_v39 }
 0x6ed   : > { %v1993_v42 = vpop.f32.mrf.mxu0 }
 0x6ee   : > { %v1458_v43 = vsel %vm538_vm0, %v1451_v41, 0.0 }
 0x6ef   : > { %1459 = vadd.xlane.f32.xlu0 %v1458_v43  ;;  %v1453_v44 = vpop.f32.mrf.mxu0 }
 0x6f1   : > { %v1994_v45 = vpop.f32.mrf.mxu0 }
 0x778   : > { %v1460_v46 = vpop.xlane.xlu0 %1459 }
 0x779   : > { %v1462_v47 = vmul.f32 0.03125, %v1460_v46 }
 0x77b   : > { %v1463_v48 = vsub.f32 %v1451_v41, %v1462_v47 }
 0x77d   : > { %v1464_v49 = vmul.f32 %v1463_v48, %v1463_v48 }
 0x77f   : > { %v1465_v50 = vsel %vm538_vm0, %v1464_v49, 0.0 }
 0x780   : > { %1466 = vadd.xlane.f32.xlu1 %v1465_v50 }
 0x809   : > { %v1467_v58 = vpop.xlane.xlu1 %1466 }
 0x80a   : > { %v1468_v59 = vmul.f32 0.03125, %v1467_v58 }
 0x80c   : > { %v1469_v60 = vadd.f32 1e-05, %v1468_v59 }
 0x80e   : > { %2152 = vrsqrt.f32 %v1469_v60 }
 0x81b   : > { %v2153_v61 = vpop.eup %2152 }
 0x81c   : > { %v1471_v63 = vmul.f32 %v2153_v61, %v1463_v48 }
 0x81e   : > { %v1478_v1 = vmul.f32 %v1862_v62, %v1471_v63 }
 0x820   : > { %v1485_v2 = vadd.f32 %v1863_v0, %v1478_v1 }
 0x822   : > { %v1486_v3 = vpack.c.bf16 %v1485_v2, %v1485_v2 }
 0x824   : > { %2000 = vmatmul.mubr.msk.bf16.vlgmr.msra.gmra.mxu1 %vm538_vm0, %v1486_v3 }
 0x8e4   : > { %v1547_v7 = vpop.f32.mrf.mxu1 }
 0x8e5   : > { %v1548_v8 = vadd.f32 %v1864_v6, %v1547_v7 }
 0x8e6   : > { %v2001_v9 = vpop.f32.mrf.mxu1 }
 0x8e7   : > { %v1553_v10 = vmax.f32 %v1548_v8, 0.0 }
 0x8e8   : > { %v1550_v11 = vpop.f32.mrf.mxu1 }
 0x8e9   : > { %v1554_v12 = vpack.c.bf16 %v1553_v10, %v1553_v10 }
 0x8ea   : > { %v2002_v13 = vpop.f32.mrf.mxu1 }
 0x8eb   : > { %2020 = vmatmul.mubr.bf16.vlgmr.msra.gmra.mxu0 %v1554_v12 }
 0x9ab   : > { %v1660_v19 = vpop.f32.mrf.mxu0 }
 0x9ac   : > { %v1661_v21 = vadd.f32 %v1868_v18, %v1660_v19 }
 0x9ad   : > { %v2021_v22 = vpop.f32.mrf.mxu0 }
 0x9ae   : > { %v1676_v23 = vmul.f32 %v1877_v20, %v1661_v21 }
 0x9af   : > { %v1663_v25 = vpop.f32.mrf.mxu0 }
 0x9b0   : > { %v1677_v28 = vadd.f32 %v1676_v23, %v1485_v2 }
 0x9b1   : > { %v2022_v29 = vpop.f32.mrf.mxu0 }
 0x9b2   : > { %1678 = vst.msk [vmem:[%s511_s26] sm:$0xff] %vm538_vm0, %v1677_v28 }
 0x9b3   : > { %2201 = shalt.err (!%p2198_p3)
}
 0x9b4   : > { %s2202_s22 = scalar_lea.hbm %s2688_s23, 128  ;;  %s2206_s26 = scalar_lea.hbm %s2743_s14, 256 }
 0x9b5   : > { %p2203_p5 = scmp.ne.s32.totalorder %s2688_s23, %s2202_s22  ;;  %p2207_p9 = scmp.lt.s32.totalorder %s2688_s23, %s2743_s14 }
 0x9b6   : > { %p2208_p12 = scmp.lt.s32.totalorder %s2206_s26, %s2202_s22 }
 0x9b7   : > { %p2204_p6 = pnand %p2203_p5, %p2409_p4 }
 0x9b8   : > { %p2209_p10 = por %p2208_p12, %p2207_p9 }
 0x9b9   : > { %p2205_p7 = pneg %p2204_p6 }
 0x9bb   : > { %p2210_p11 = pnand %p2209_p10, %p2205_p7 }
 0x9bd   : > { %2213 = shalt.err (!%p2210_p11)
}
 0x9be   : > { %2027 = dma.vmem_to_hbm [thread:$0]  (%p2409_p4), %s1695_s15, 128, %s2688_s23, %s1680_s29  }
 0x9bf PF: > { %p2039_p13 = scmp.ge.s32.totalorder %s2270_s21, 2  ;;  %s1706_s19 = sand.u32 1, %s2250_s16  }
 0x9c0   : > { %s1707_s28 = scalar_lea.sflag [#allocation13], %s1706_s19 }
 0x9c1   : > { %p2034_p0 = pnand %p2039_p13, %p2416_p8 }
 0x9c3   : > { %p2035_p1 = pneg %p2034_p0 }
 0x9c5   : > { %2245 = dma.done.wait (%p2035_p1), %s1707_s28, 128  }
 0x9c6   : > { %2247 = vsyncadd (%p2035_p1), %s1707_s28, 4294967168  ;;  %s32_s21 = sadd.s32 1, %s2270_s21   ;;  %s2758_s30 = sld [smem:[#allocation18_spill]] }
 0x9c7   : > { %p29_p2 = scmp.ge.s32.totalorder %s32_s21, 4   ;;  %s2759_s18 = sld [smem:[#allocation22_spill]] }
 0x9c8   : > { %s2760_s19 = sld [smem:[#allocation19_spill]]  ;;  %s2762_s16 = smov %s2254_s17 }
 0x9c9   : > { %s2761_s20 = sld [smem:[#allocation20_spill]]  ;;  %31 = sbr.rel (!%p29_p2) target bundleno = 10 (0xa), region = 140 }
 0x9cc   : > { %s2763_s17 = smov %s2758_s30 }
 0x9ce   :  { %1712 = vsyncpa [#allocation12], 1 }
 0x9cf   :  { %1714 = vsyncpa [#allocation12 + $0x1], 1 }
 0x9d0   :  { %1715 = vsyncpa [#allocation13], 1 }
 0x9d1   :  { %1717 = vsyncpa [#allocation13 + $0x1], 1 }

// kernel: tpu_custom_call.1
= control target key start
LH: loop header
LB: loop body
LE: loop exit
PB: predicated region body
PF: predicated region fallthrough
CT: control target
= control target key end

     0   :  { %s2272_s29 = smov [#allocation10]   ;;  %s2729_s0 = inlined_call_operand.hbm [shape: s32[2], index: 0, kind: input, shape index: {}]   ;;  %s2730_s1 = inlined_call_operand.vmem [shape: f32[2,8,32], index: 1, kind: input, shape index: {}]   ;;  %s2731_s2 = inlined_call_operand.vmem [shape: f32[2,8,32], index: 2, kind: input, shape index: {}]   ;;  %s2732_s3 = inlined_call_operand.vmem [shape: f32[1,32], index: 3, kind: input, shape index: {}]   ;;  %s2733_s4 = inlined_call_operand.vmem [shape: f32[1,32], index: 4, kind: input, shape index: {}]   ;;  %s2734_s5 = inlined_call_operand.vmem [shape: bf16[32,32], index: 5, kind: input, shape index: {}]   ;;  %s2735_s6 = inlined_call_operand.vmem [shape: bf16[32,64], index: 6, kind: input, shape index: {}]   ;;  %s2736_s7 = inlined_call_operand.vmem [shape: bf16[32,32], index: 7, kind: input, shape index: {}]   ;;  %s2737_s8 = inlined_call_operand.vmem [shape: f32[1,32], index: 8, kind: input, shape index: {}]   ;;  %s2738_s9 = inlined_call_operand.vmem [shape: f32[1,32], index: 9, kind: input, shape index: {}]   ;;  %s2739_s10 = inlined_call_operand.hbm [shape: bf16[32,128], index: 10, kind: input, shape index: {}]   ;;  %s2740_s11 = inlined_call_operand.vmem [shape: f32[1,128], index: 11, kind: input, shape index: {}]   ;;  %s2741_s12 = inlined_call_operand.vmem [shape: bf16[128,32], index: 12, kind: input, shape index: {}]   ;;  %s2742_s13 = inlined_call_operand.vmem [shape: f32[1,32], index: 13, kind: input, shape index: {}]   ;;  %s2743_s14 = inlined_call_operand.hbm [shape: f32[2,8,32], index: 14, kind: output, shape index: {}]  }
   0x1   :  { %20 = dma.hbm_to_smem %s2729_s0, 16, %s2272_s29, [#allocation9] }
   0x2   :  { %2238 = dma.done.wait [#allocation9], 16 }
   0x3   :  { %2239 = vsyncadd [#allocation9], 4294967280 }
   0x4   :  { %22 = sfence }
   0x5   :  { %23 = vsyncpa [#allocation12], 0 }
   0x6   :  { %24 = vsyncpa [#allocation13], 0 }
   0x7   :  { %26 = vsyncpa [#allocation13 + $0x1], 0  ;;  %s2369_s16 = smov 0   ;;  %s2371_s17 = smov 0  }
   0x8   :  { %s2373_s18 = smov 0   ;;  %s2375_s19 = smov 0  }
   0x9   :  { %s2377_s20 = smov 0   ;;  %s2379_s21 = smov 0  }
   0xa LB: > { %2748 = sst [smem:[#allocation18_spill]] %s2258_s18  ;;  %s1827_s0 = sadd.s32 4294967295, %s2270_s21   ;;  %s2270_s21 = sphi %s2379_s21, %s32_s21   ;;  %s2266_s20 = sphi %s2377_s20, %s2761_s20   ;;  %s2262_s19 = sphi %s2375_s19, %s2760_s19   ;;  %s2258_s18 = sphi %s2373_s18, %s2759_s18   ;;  %s2254_s17 = sphi %s2371_s17, %s2763_s17   ;;  %s2250_s16 = sphi %s2369_s16, %s2762_s16  }
   0xb   : > { %2749 = sst [smem:[#allocation19_spill]] %s2266_s20  ;;  %s1828_s22 = sadd.s32 4294967294, %s2270_s21  }
   0xc   : > { %s51_s23 = sadd.s32 1, %s2266_s20  ;;  %s351_s24 = sadd.s32 1, %s2258_s18 }
   0xd   : > { %p53_p0 = scmp.ge.s32.totalorder %s51_s23, 2  ;;  %p361_p1 = scmp.ne.s32.totalorder %s2258_s18, %s2254_s17 }
   0xe   : > { %p362_p2 = scmp.eq.s32.totalorder %s1827_s0, 1  ;;  %p367_p3 = scmp.ne.s32.totalorder %s2254_s17, %s2250_s16 }
   0xf   : > { %s2765_s23 = smov (%p53_p0, %s51_s23), 0  ;;  %p368_p5 = scmp.eq.s32.totalorder %s1828_s22, 1 }
  0x10   : > { %2750 = sst [smem:[#allocation20_spill]] %s2765_s23  ;;  %p2409_p4 = por %p362_p2, %p361_p1 }
  0x11   : > { %s346_s26 = ssub.s32 %s2266_s20, %s2765_s23  ;;  %p1829_p6 = scmp.ge.s32.totalorder %s2270_s21, 1 }
  0x12   : > { %p349_p7 = scmp.eq.s32.totalorder %s346_s26, 0  ;;  %p2416_p8 = por %p368_p5, %p367_p3 }
  0x13   : > { %p375_p9 = scmp.lt.s32.totalorder %s2270_s21, 3  ;;  %p2428_p11 = scmp.eq.s32.totalorder %s1827_s0, 0 }
  0x14   : > { %s2752_s27 = scalar_select %p2416_p8, 1, 0 }
  0x15   : > { %s2422_s28 = scalar_select %p349_p7, %s2258_s18, %s351_s24  }
  0x16   : > { %2753 = sst [smem:[#allocation21_spill]] %s2752_s27  ;;  %p2424_p10 = pnand %p1829_p6, %p375_p9 }
  0x17   : > { %2754 = sst [smem:[#allocation22_spill]] %s2422_s28  ;;  %s2273_s15 = smov [#allocation11]  }
  0x18   : > { %p2029_p12 = pneg %p2424_p10  ;;  %s408_s22 = sshll.u32 %s2273_s15, 4  ;;  %s409_s22 = int_to_ptr.vmem [resolvable:$true] %s408_s22 }
  0x19   : > { %s2173_s24 = scalar_lea.vmem %s409_s22, 256  ;;  %p2181_p5 = scmp.lt.s32.totalorder %s409_s22, %s409_s22 }
  0x1a   : > { %p2030_p13 = pnand %p2428_p11, %p2029_p12  ;;  %p2174_p1 = scmp.ne.s32.totalorder %s409_s22, %s2173_s24 }
  0x1b   : > { %p2182_p6 = scmp.lt.s32.totalorder %s2173_s24, %s2173_s24 }
  0x1c   : > { %p2164_p0 = pneg %p2030_p13 }
  0x1d   : > { %p2183_p7 = por %p2182_p6, %p2181_p5 }
  0x1e   : > { %p2176_p2 = pnand %p2174_p1, %p2164_p0 }
  0x20   : > { %p2177_p3 = pneg %p2176_p2 }
  0x22   : > { %p2184_p9 = pnand %p2183_p7, %p2177_p3 }
  0x24   : > { %2187 = shalt.err (!%p2184_p9)
}
  0x25   : > { %s2274_s0 = smov 64   ;;  %s2275_s26 = smov 4  }
  0x26   : > { %2032 = dma.hbm_to_vmem [thread:$0]  (!%p2030_p13), %s2739_s10, 256, %s409_s22, [#allocation12], %s2274_s0, %s2274_s0, %s2275_s26  }
  0x27   : > { %457 = sbr.rel (%p2424_p10) target bundleno = 2495 (0x9bf), region = 72 }
  0x2c   : > { %2241 = dma.done.wait (%p2428_p11), [#allocation12], 256  }
  0x2d   : > { %2243 = vsyncadd (%p2428_p11), [#allocation12], 4294967040  ;;  %p512_p12 = scmp.lt.s32.totalorder %s2262_s19, 1  ;;  %vm538_vm0 = vcmask 261120   ;;  %v2108_v14 = vld [vmem:[%s2735_s6 + $0x8] sm:$0xff]   ;;  %v2276_v15 = vmov 0.0  }
  0x2e   : > { %1923 = vmatprep.subr.bf16.mxu1 %v2276_v15  ;;  %vm2277_vm1 = vmmov 0   ;;  %v2109_v16 = vld [vmem:[%s2735_s6] sm:$0xff]   ;;  %1951 = vmatprep.subr.bf16.mxu0 %v2276_v15  ;;  %v2110_v31 = vld [vmem:[%s2734_s5 + $0x8] sm:$0xff]   ;;  %vm806_vm2 = vcmask 64512   ;;  %vm631_vm3 = vcmask 60416   ;;  %s2278_s18 = smov 112  }
  0x2f   : > { %s513_s15 = scalar_select %p512_p12, %s2262_s19, 1  ;;  %1927 = vmatprep.mubr.msk.bf16.mxu1 %vm2277_vm1, %v2276_v15  ;;  %1924 = vmatpush3.bf16.msra.mxu1 %v2108_v14  ;;  %v1884_v24 = vld [vmem:[%s2732_s3] ss:$0 sm:$0xff]  ;;  %807 = vst.msk [vmem:[#allocation8] sm:$0xff] %vm806_vm2, %v2276_v15  ;;  %808 = vst.msk [vmem:[#allocation8 + $0x8] sm:$0xff] %vm806_vm2, %v2276_v15  ;;  %vm797_vm4 = vcmask 7168  }
  0x30   : > { %1925 = vmatprep.subr.bf16.mxu1 %v2276_v15  ;;  %1953 = vmatprep.mubr.msk.bf16.mxu0 %vm2277_vm1, %v2276_v15  ;;  %v1885_v26 = vld [vmem:[%s2733_s4] ss:$0 sm:$0xff]  ;;  %809 = vst.msk [vmem:[#allocation8 + $0x10] sm:$0xff] %vm806_vm2, %v2276_v15  ;;  %810 = vst.msk [vmem:[#allocation8 + $0x18] sm:$0xff] %vm806_vm2, %v2276_v15  ;;  %s2280_s28 = smov 104   ;;  %s2283_s30 = smov 96  }
  0x31   : > { %s1835_s24 = sshll.u32 %s513_s15, 3  ;;  %v2111_v35 = vld [vmem:[%s2734_s5] sm:$0xff]   ;;  %802 = vst.msk [vmem:[#allocation7] sm:$0xff] %vm797_vm4, %v2276_v15  ;;  %803 = vst.msk [vmem:[#allocation7 + $0x8] sm:$0xff] %vm797_vm4, %v2276_v15  ;;  %s2284_s22 = smov 88   ;;  %vm1141_vm5 = vcmask 1043456  }
  0x32   : > { %s527_s27 = scalar_lea.vmem %s2731_s2, %s1835_s24  ;;  %s518_s29 = scalar_lea.vmem %s2730_s1, %s1835_s24  ;;  %804 = vst.msk [vmem:[#allocation7 + $0x10] sm:$0xff] %vm797_vm4, %v2276_v15  ;;  %805 = vst.msk [vmem:[#allocation7 + $0x18] sm:$0xff] %vm797_vm4, %v2276_v15  ;;  %vm1390_vm6 = vcmask 130048   ;;  %vm1393_vm7 = vcmask 195584  }
  0x33   : > { %v537_v0 = vld [vmem:[%s527_s27] sm:$0xff]  ;;  %1926 = vmatpush3.bf16.msra.mxu1 %v2109_v16  ;;  %s2279_s27 = smov 120   ;;  %s2285_s0 = smov 80  }
  0x34   : > { %v685_v1 = vld [vmem:[%s518_s29] sm:$0xff]  ;;  %v539_v2 = vsel %vm538_vm0, %v537_v0, 0.0  ;;  %1931 = vmatprep.subr.bf16.mxu1 %v2276_v15  ;;  %s2286_s26 = smov 72   ;;  %s2287_s29 = smov 8  }
  0x35   : > { %v687_v3 = vsel %vm538_vm0, %v685_v1, 0.0  ;;  %540 = vadd.xlane.f32.xlu0 %v539_v2 }
  0x39   : > { %688 = vadd.xlane.f32.xlu0 %v687_v3 }
  0xbe   : > { %v541_v4 = vpop.xlane.xlu0 %540 }
  0xbf   : > { %v543_v5 = vmul.f32 0.03125, %v541_v4  ;;  %v2281_v4 = vmov -inf  }
  0xc0   : > { %798 = vst.msk [vmem:[#allocation6] sm:$0xff] %vm797_vm4, %v2281_v4  ;;  %799 = vst.msk [vmem:[#allocation6 + $0x8] sm:$0xff] %vm797_vm4, %v2281_v4 }
  0xc1   : > { %v544_v6 = vsub.f32 %v537_v0, %v543_v5  ;;  %800 = vst.msk [vmem:[#allocation6 + $0x10] sm:$0xff] %vm797_vm4, %v2281_v4  ;;  %801 = vst.msk [vmem:[#allocation6 + $0x18] sm:$0xff] %vm797_vm4, %v2281_v4 }
  0xc2   : > { %v689_v7 = vpop.xlane.xlu0 %688 }
  0xc3   : > { %v691_v8 = vmul.f32 0.03125, %v689_v7  ;;  %v545_v9 = vmul.f32 %v544_v6, %v544_v6  ;;  %v2282_v7 = vmov 0  }
  0xc4   : > { %2106 = vset.pattern.permute.xlu0 %v2282_v7  ;;  %2107 = vset.pattern.permute.xlu1 %v2282_v7 }
  0xc5   : > { %v692_v10 = vsub.f32 %v685_v1, %v691_v8  ;;  %v546_v11 = vsel %vm538_vm0, %v545_v9, 0.0 }
  0xc6   : > { %547 = vadd.xlane.f32.xlu1 %v546_v11 }
  0xc7   : > { %v693_v12 = vmul.f32 %v692_v10, %v692_v10 }
  0xc9   : > { %v694_v13 = vsel %vm538_vm0, %v693_v12, 0.0 }
  0xca   : > { %695 = vadd.xlane.f32.xlu1 %v694_v13 }
 0x14f   : > { %v548_v17 = vpop.xlane.xlu1 %547 }
 0x150   : > { %v549_v18 = vmul.f32 0.03125, %v548_v17 }
 0x152   : > { %v550_v19 = vadd.f32 1e-05, %v549_v18 }
 0x153   : > { %v696_v20 = vpop.xlane.xlu1 %695 }
 0x154   : > { %2124 = vrsqrt.f32 %v550_v19  ;;  %v697_v21 = vmul.f32 0.03125, %v696_v20 }
 0x156   : > { %v698_v22 = vadd.f32 1e-05, %v697_v21 }
 0x158   : > { %2126 = vrsqrt.f32 %v698_v22 }
 0x161   : > { %v2125_v23 = vpop.eup %2124 }
 0x162   : > { %v552_v25 = vmul.f32 %v2125_v23, %v544_v6 }
 0x164   : > { %v559_v27 = vmul.f32 %v1884_v24, %v552_v25 }
 0x165   : > { %v2127_v28 = vpop.eup %2126 }
 0x166   : > { %v566_v29 = vadd.f32 %v1885_v26, %v559_v27  ;;  %v700_v30 = vmul.f32 %v2127_v28, %v692_v10  ;;  %v1015_v28 = vld [vmem:[#allocation6 + $0x10] sm:$0xff] }
 0x168   : > { %v567_v32 = vpack.c.bf16 %v566_v29, %v566_v29  ;;  %v707_v33 = vmul.f32 %v1884_v24, %v700_v30  ;;  %v2553_v24 = vld [vmem:[#allocation6] sm:$0xff]  ;;  %v2563_v29 = vld [vmem:[#allocation6 + $0x8] sm:$0xff] }
 0x16a   : > { %1928 = vmatmul.mubr.msk.bf16.vlgmr.msra.gmra.mxu1 %vm538_vm0, %v567_v32  ;;  %v714_v34 = vadd.f32 %v1885_v26, %v707_v33 }
 0x16b   : > { %1932 = vmatpush3.bf16.msra.mxu1 %v2110_v31  ;;  %1935 = vmatprep.mubr.msk.bf16.mxu1 %vm2277_vm1, %v2276_v15 }
 0x16c   : > { %715 = vst.msk [vmem:[#allocation2] sm:$0xff] %vm538_vm0, %v714_v34  ;;  %1933 = vmatprep.subr.bf16.mxu1 %v2276_v15  ;;  %v716_v36 = vpack.c.bf16 %v714_v34, %v714_v34 }
 0x16f   : > { %1934 = vmatpush3.bf16.msra.mxu1 %v2111_v35 }
 0x170   : > { %1939 = vmatprep.subr.bf16.mxu1 %v2276_v15 }
 0x172   : > { %1936 = vmatmul.mubr.msk.bf16.vlgmr.msra.gmra.mxu1 %vm538_vm0, %v716_v36  ;;  %v1016_v36 = vld [vmem:[#allocation6 + $0x18] sm:$0xff] }
 0x173   : > { %1941 = vmatprep.mubr.msk.bf16.mxu1 %vm2277_vm1, %v2276_v15 }
 0x22a   : > { %v621_v37 = vpop.f32.mrf.mxu1 }
 0x22b   : > { %v2500_v38 = vpack.c.bf16 %v621_v37, %v621_v37 }
 0x22c   : > { %v1929_v39 = vpop.f32.mrf.mxu1 }
 0x22d   : > { %632 = vst.msk [vmem:[#allocation4] sm:$0xf] %vm631_vm3, %v2500_v38  ;;  %655 = vrot.lane.b32.xlu1 %v2500_v38, %s2278_s18  ;;  %642 = vrot.lane.b32.xlu0 %v2500_v38, %s2279_s27 }
 0x22e   : > { %v624_v40 = vpop.f32.mrf.mxu1 }
 0x230   : > { %v1930_v41 = vpop.f32.mrf.mxu1 }
 0x231   : > { %668 = vrot.lane.b32.xlu1 %v2500_v38, %s2280_s28 }
 0x232   : > { %v770_v42 = vpop.f32.mrf.mxu1 }
 0x233   : > { %v776_v43 = vpack.c.bf16 %v770_v42, %v770_v42 }
 0x234   : > { %v1937_v44 = vpop.f32.mrf.mxu1  ;;  %v814_v45 = vld [vmem:[#allocation4] sm:$0xf] }
 0x235   : > { %778 = vst.msk [vmem:[#allocation3] sm:$0xf] %vm631_vm3, %v776_v43  ;;  %787 = vrot.lane.b32.xlu0 %v776_v43, %s2278_s18  ;;  %782 = vrot.lane.b32.xlu1 %v776_v43, %s2279_s27  ;;  %v833_v46 = vsel %vm806_vm2, %v814_v45, 0  ;;  %s2288_s18 = smov 16   ;;  %s2289_s27 = smov 24  }
 0x236   : > { %v773_v47 = vpop.f32.mrf.mxu1  ;;  %1940 = vmatpush3.bf16.xpose.msra.mxu1 %v833_v46 }
 0x237   : > { %1945 = vmatprep.subr.bf16.mxu1 %v2276_v15 }
 0x238   : > { %v1938_v48 = vpop.f32.mrf.mxu1 }
 0x239   : > { %792 = vrot.lane.b32.xlu1 %v776_v43, %s2280_s28 }
 0x23c   : > { %v824_v49 = vld [vmem:[#allocation3] sm:$0xf] }
 0x23d   : > { %1942 = vmatmul.mubr.msk.bf16.vlgmr.msra.gmra.mxu1 %vm806_vm2, %v824_v49 }
 0x23e   : > { %1947 = vmatprep.mubr.msk.bf16.mxu1 %vm2277_vm1, %v2276_v15 }
 0x29f   : > { %v656_v50 = vpop.permute.xlu1 %655  ;;  %v643_v51 = vpop.permute.xlu0 %642 }
 0x2a0   : > { %1843 = vst.msk [vmem:[#allocation4 + $0x8] sm:$0xf] %vm631_vm3, %v656_v50  ;;  %1841 = vst.msk [vmem:[#allocation4 + $0x4] sm:$0xf] %vm631_vm3, %v643_v51 }
 0x2a3   : > { %v669_v52 = vpop.permute.xlu1 %668 }
 0x2a4   : > { %1845 = vst.msk [vmem:[#allocation4 + $0xc] sm:$0xf] %vm631_vm3, %v669_v52 }
 0x2a7   : > { %v788_v53 = vpop.permute.xlu0 %787  ;;  %v783_v54 = vpop.permute.xlu1 %782  ;;  %v815_v55 = vld [vmem:[#allocation4 + $0x4] sm:$0xf]  ;;  %v816_v56 = vld [vmem:[#allocation4 + $0x8] sm:$0xf] }
 0x2a8   : > { %791 = vst.msk [vmem:[#allocation3 + $0x8] sm:$0xf] %vm631_vm3, %v788_v53  ;;  %786 = vst.msk [vmem:[#allocation3 + $0x4] sm:$0xf] %vm631_vm3, %v783_v54  ;;  %v879_v57 = vsel %vm806_vm2, %v815_v55, 0  ;;  %v925_v58 = vsel %vm806_vm2, %v816_v56, 0 }
 0x2a9   : > { %1946 = vmatpush3.bf16.xpose.msra.mxu1 %v879_v57  ;;  %1952 = vmatpush3.bf16.xpose.msra.mxu0 %v925_v58 }
 0x2aa   : > { %1957 = vmatprep.subr.bf16.mxu1 %v2276_v15  ;;  %1963 = vmatprep.subr.bf16.mxu0 %v2276_v15 }
 0x2ab   : > { %v793_v59 = vpop.permute.xlu1 %792  ;;  %v817_v60 = vld [vmem:[#allocation4 + $0xc] sm:$0xf] }
 0x2ac   : > { %796 = vst.msk [vmem:[#allocation3 + $0xc] sm:$0xf] %vm631_vm3, %v793_v59  ;;  %v971_v63 = vsel %vm806_vm2, %v817_v60, 0 }
 0x2af   : > { %v825_v61 = vld [vmem:[#allocation3 + $0x4] sm:$0xf]  ;;  %v826_v62 = vld [vmem:[#allocation3 + $0x8] sm:$0xf] }
 0x2b0   : > { %1948 = vmatmul.mubr.msk.bf16.vlgmr.msra.gmra.mxu1 %vm806_vm2, %v825_v61  ;;  %1954 = vmatmul.mubr.msk.bf16.vlgmr.msra.gmra.mxu0 %vm806_vm2, %v826_v62 }
 0x2b1   : > { %1958 = vmatpush3.bf16.xpose.msra.mxu1 %v971_v63  ;;  %1959 = vmatprep.mubr.msk.bf16.mxu1 %vm2277_vm1, %v2276_v15 }
 0x2b2   : > { %1965 = vmatprep.mubr.msk.bf16.mxu0 %vm2277_vm1, %v2276_v15  ;;  %1969 = vmatprep.subr.bf16.mxu1 %v2276_v15 }
 0x2b3   : > { %v827_v0 = vld [vmem:[#allocation3 + $0xc] sm:$0xf] }
 0x2b8   : > { %1960 = vmatmul.mubr.msk.bf16.vlgmr.msra.gmra.mxu1 %vm806_vm2, %v827_v0 }
 0x2b9   : > { %1971 = vmatprep.mubr.msk.bf16.mxu1 %vm2277_vm1, %v2276_v15 }
 0x2fd   : > { %v2534_v1 = vpop.f32.mrf.mxu1 }
 0x2fe   : > { %v1017_v2 = vsel %vm806_vm2, %v2534_v1, -inf }
 0x2ff   : > { %1018 = vmax.xlane.f32.xlu0 %v1017_v2  ;;  %v1943_v3 = vpop.f32.mrf.mxu1 }
 0x301   : > { %v872_v5 = vpop.f32.mrf.mxu1 }
 0x303   : > { %v1944_v6 = vpop.f32.mrf.mxu1 }
 0x370   : > { %v915_v8 = vpop.f32.mrf.mxu1  ;;  %v961_v9 = vpop.f32.mrf.mxu0 }
 0x371   : > { %v1023_v10 = vsel %vm806_vm2, %v961_v9, -inf  ;;  %v1020_v11 = vsel %vm806_vm2, %v915_v8, -inf }
 0x372   : > { %v1955_v12 = vpop.f32.mrf.mxu0  ;;  %1024 = vmax.xlane.f32.xlu0 %v1023_v10  ;;  %1021 = vmax.xlane.f32.xlu1 %v1020_v11  ;;  %v1949_v13 = vpop.f32.mrf.mxu1 }
 0x374   : > { %v918_v14 = vpop.f32.mrf.mxu1  ;;  %v964_v16 = vpop.f32.mrf.mxu0 }
 0x376   : > { %v1950_v17 = vpop.f32.mrf.mxu1  ;;  %v1956_v18 = vpop.f32.mrf.mxu0 }
 0x378   : > { %v1007_v19 = vpop.f32.mrf.mxu1 }
 0x379   : > { %v1026_v20 = vsel %vm806_vm2, %v1007_v19, -inf }
 0x37a   : > { %1027 = vmax.xlane.f32.xlu0 %v1026_v20  ;;  %v1961_v21 = vpop.f32.mrf.mxu1  ;;  %v1078_v20 = vld [vmem:[#allocation7 + $0x8] sm:$0xff] }
 0x37c   : > { %v1010_v22 = vpop.f32.mrf.mxu1 }
 0x37e   : > { %v1962_v23 = vpop.f32.mrf.mxu1 }
 0x388   : > { %v1019_v25 = vpop.xlane.xlu0 %1018 }
 0x389   : > { %v2556_v26 = vmax.f32 %v2553_v24, %v1019_v25  ;;  %v1077_v25 = vld [vmem:[#allocation7] sm:$0xff] }
 0x38b   : > { %v1033_v27 = vsub.f32 %v2553_v24, %v2556_v26  ;;  %1331 = vst.msk [vmem:[#allocation6] sm:$0xff] %vm797_vm4, %v2556_v26 }
 0x390   : > { %1047 = vperm.xlu0 %2106, %v2556_v26  }
 0x3fb   : > { %v1025_v30 = vpop.xlane.xlu0 %1024  ;;  %v1022_v31 = vpop.xlane.xlu1 %1021 }
 0x3fc   : > { %v1031_v32 = vmax.f32 %v1015_v28, %v1025_v30  ;;  %v2566_v33 = vmax.f32 %v2563_v29, %v1022_v31 }
 0x3fe   : > { %v1035_v34 = vsub.f32 %v1015_v28, %v1031_v32  ;;  %1333 = vst.msk [vmem:[#allocation6 + $0x10] sm:$0xff] %vm797_vm4, %v1031_v32  ;;  %v1034_v35 = vsub.f32 %v2563_v29, %v2566_v33  ;;  %1332 = vst.msk [vmem:[#allocation6 + $0x8] sm:$0xff] %vm797_vm4, %v2566_v33  ;;  %1052 = vperm.xlu1 %2107, %v2566_v33   ;;  %v1079_v28 = vld [vmem:[#allocation7 + $0x10] sm:$0xff] }
 0x400   : > { %v1041_v61 = vmul.f32 1.442695, %v1035_v34  ;;  %v1039_v11 = vmul.f32 1.442695, %v1034_v35  ;;  %v1080_v34 = vld [vmem:[#allocation7 + $0x18] sm:$0xff] }
 0x402   : > { %1057 = vperm.xlu1 %2107, %v1031_v32  }
 0x403   : > { %v1028_v37 = vpop.xlane.xlu0 %1027 }
 0x404   : > { %v1032_v39 = vmax.f32 %v1016_v36, %v1028_v37 }
 0x406   : > { %v1036_v40 = vsub.f32 %v1016_v36, %v1032_v39  ;;  %1334 = vst.msk [vmem:[#allocation6 + $0x18] sm:$0xff] %vm797_vm4, %v1032_v39  ;;  %1062 = vperm.xlu1 %2107, %v1032_v39  }
 0x408   : > { %v1043_v5 = vmul.f32 1.442695, %v1036_v40 }
 0x40a   : > { %636 = vrot.lane.b32.xlu1 %v2500_v38, %s2283_s30 }
 0x40b   : > { %v1048_v41 = vpop.permute.xlu0 %1047 }
 0x40c   : > { %v1065_v42 = vsub.f32 %v2534_v1, %v1048_v41 }
 0x40e   : > { %649 = vrot.lane.b32.xlu1 %v2500_v38, %s2284_s22  ;;  %v1069_v45 = vmul.f32 1.442695, %v1065_v42 }
 0x412   : > { %662 = vrot.lane.b32.xlu1 %v2500_v38, %s2285_s0  ;;  %s1879_s0 = sshll.u32 %s2262_s19, 7 }
 0x413   : > { %s2688_s23 = scalar_lea.hbm %s2743_s14, %s1879_s0 }
 0x416   : > { %675 = vrot.lane.b32.xlu1 %v2500_v38, %s2286_s26 }
 0x479   : > { %v1053_v43 = vpop.permute.xlu1 %1052 }
 0x47a   : > { %v1066_v44 = vsub.f32 %v915_v8, %v1053_v43 }
 0x47c   : > { %v1071_v46 = vmul.f32 1.442695, %v1066_v44 }
 0x47d   : > { %v1058_v47 = vpop.permute.xlu1 %1057 }
 0x47e   : > { %2128 = vpow2.f32 %v1071_v46  ;;  %v1067_v48 = vsub.f32 %v961_v9, %v1058_v47  ;;  %v1107_v46 = vld [vmem:[#allocation8 + $0x8] sm:$0xff] }
 0x47f   : > { %2130 = vpow2.f32 %v1069_v45 }
 0x480   : > { %v1073_v49 = vmul.f32 1.442695, %v1067_v48 }
 0x481   : > { %v1063_v50 = vpop.permute.xlu1 %1062 }
 0x482   : > { %2132 = vpow2.f32 %v1073_v49  ;;  %v1068_v51 = vsub.f32 %v1007_v19, %v1063_v50  ;;  %v1037_v19 = vmul.f32 1.442695, %v1033_v27 }
 0x484   : > { %v1075_v52 = vmul.f32 1.442695, %v1068_v51 }
 0x485   : > { %v637_v53 = vpop.permute.xlu1 %636 }
 0x486   : > { %2134 = vpow2.f32 %v1075_v52  ;;  %641 = vst.msk [vmem:[#allocation5] sm:$0xf] %vm631_vm3, %v637_v53  ;;  %v1108_v52 = vld [vmem:[#allocation8 + $0x10] sm:$0xff] }
 0x487   : > { %2136 = vpow2.f32 %v1041_v61 }
 0x488   : > { %2138 = vpow2.f32 %v1043_v5 }
 0x489   : > { %v650_v38 = vpop.permute.xlu1 %649  ;;  %2140 = vpow2.f32 %v1039_v11 }
 0x48a   : > { %1842 = vst.msk [vmem:[#allocation5 + $0x4] sm:$0xf] %vm631_vm3, %v650_v38  ;;  %2142 = vpow2.f32 %v1037_v19  ;;  %v1106_v19 = vld [vmem:[#allocation8] sm:$0xff] }
 0x48b   : > { %v2129_v54 = vpop.eup %2128 }
 0x48c   : > { %v1088_v55 = vsel %vm806_vm2, %v2129_v54, 0.0  ;;  %v2131_v56 = vpop.eup %2130  ;;  %v1135_v7 = vpack.c.bf16 %v2129_v54, %v2129_v54 }
 0x48d   : > { %1089 = vadd.xlane.f32.xlu1 %v1088_v55  ;;  %v663_v57 = vpop.permute.xlu1 %662  ;;  %v820_v58 = vld [vmem:[#allocation5] sm:$0xf]  ;;  %v1085_v63 = vsel %vm806_vm2, %v2131_v56, 0.0  ;;  %v1134_v0 = vpack.c.bf16 %v2131_v56, %v2131_v56 }
 0x48e   : > { %1844 = vst.msk [vmem:[#allocation5 + $0x8] sm:$0xf] %vm631_vm3, %v663_v57  ;;  %v1143_v59 = vsel %vm1141_vm5, %v820_v58, 0 }
 0x48f   : > { %v2133_v60 = vpop.eup %2132  ;;  %1964 = vmatpush3.bf16.msra.mxu0 %v1143_v59  ;;  %v1109_v59 = vld [vmem:[#allocation8 + $0x18] sm:$0xff] }
 0x490   : > { %v1091_v62 = vsel %vm806_vm2, %v2133_v60, 0.0  ;;  %1975 = vmatprep.subr.bf16.mxu0 %v2276_v15  ;;  %v1136_v10 = vpack.c.bf16 %v2133_v60, %v2133_v60 }
 0x491   : > { %1092 = vadd.xlane.f32.xlu0 %v1091_v62  ;;  %v676_v1 = vpop.permute.xlu1 %675  ;;  %1086 = vadd.xlane.f32.xlu1 %v1085_v63  ;;  %v821_v2 = vld [vmem:[#allocation5 + $0x4] sm:$0xf] }
 0x492   : > { %1846 = vst.msk [vmem:[#allocation5 + $0xc] sm:$0xf] %vm631_vm3, %v676_v1  ;;  %1966 = vmatmul.mubr.msk.bf16.vlgmr.msra.gmra.mxu0 %vm806_vm2, %v1134_v0  ;;  %v1189_v3 = vsel %vm1141_vm5, %v821_v2, 0 }
 0x493   : > { %v2135_v4 = vpop.eup %2134  ;;  %1970 = vmatpush3.bf16.msra.mxu1 %v1189_v3  ;;  %1977 = vmatprep.mubr.msk.bf16.mxu0 %vm2277_vm1, %v2276_v15 }
 0x494   : > { %v1094_v6 = vsel %vm806_vm2, %v2135_v4, 0.0  ;;  %1981 = vmatprep.subr.bf16.mxu1 %v2276_v15  ;;  %v1137_v14 = vpack.c.bf16 %v2135_v4, %v2135_v4  ;;  %v2137_v16 = vpop.eup %2136 }
 0x495   : > { %1095 = vadd.xlane.f32.xlu0 %v1094_v6  ;;  %v822_v8 = vld [vmem:[#allocation5 + $0x8] sm:$0xf]  ;;  %v2139_v17 = vpop.eup %2138  ;;  %v1083_v31 = vmul.f32 %v2137_v16, %v1079_v28 }
 0x496   : > { %1972 = vmatmul.mubr.msk.bf16.vlgmr.msra.gmra.mxu1 %vm806_vm2, %v1135_v7  ;;  %v1235_v9 = vsel %vm1141_vm5, %v822_v8, 0  ;;  %v2141_v18 = vpop.eup %2140  ;;  %v1084_v24 = vmul.f32 %v2139_v17, %v1080_v34 }
 0x497   : > { %1976 = vmatpush3.bf16.msra.mxu0 %v1235_v9  ;;  %1983 = vmatprep.mubr.msk.bf16.mxu1 %vm2277_vm1, %v2276_v15  ;;  %v1082_v21 = vmul.f32 %v2141_v18, %v1078_v20  ;;  %v2143_v22 = vpop.eup %2142  ;;  %v2112_v9 = vld [vmem:[%s2736_s7 + $0x8] sm:$0xff]  }
 0x498   : > { %1987 = vmatprep.subr.bf16.mxu0 %v2276_v15  ;;  %v1081_v30 = vmul.f32 %v2143_v22, %v1077_v25 }
 0x499   : > { %v823_v12 = vld [vmem:[#allocation5 + $0xc] sm:$0xf] }
 0x49a   : > { %1978 = vmatmul.mubr.msk.bf16.vlgmr.msra.gmra.mxu0 %vm806_vm2, %v1136_v10  ;;  %v1281_v13 = vsel %vm1141_vm5, %v823_v12, 0  ;;  %v2113_v10 = vld [vmem:[%s2736_s7] sm:$0xff]  }
 0x49b   : > { %1982 = vmatpush3.bf16.msra.mxu1 %v1281_v13  ;;  %1991 = vmatprep.mubr.msk.bf16.mxu0 %vm2277_vm1, %v2276_v15 }
 0x49c   : > { %1995 = vmatprep.subr.bf16.mxu1 %v2276_v15  ;;  %1988 = vmatpush3.bf16.msra.mxu0 %v2112_v9 }
 0x49d   : > { %1989 = vmatprep.subr.bf16.mxu0 %v2276_v15 }
 0x49e   : > { %1984 = vmatmul.mubr.msk.bf16.vlgmr.msra.gmra.mxu1 %vm806_vm2, %v1137_v14 }
 0x49f   : > { %1999 = vmatprep.mubr.msk.bf16.mxu1 %vm2277_vm1, %v2276_v15 }
 0x4a0   : > { %1990 = vmatpush3.bf16.msra.mxu0 %v2113_v10 }
 0x4a1   : > { %2003 = vmatprep.subr.bf16.mxu0 %v2276_v15 }
 0x4a2   : > { %1122 = vperm.xlu1 %2107, %v2137_v16  }
 0x4a6   : > { %1127 = vperm.xlu1 %2107, %v2139_v17  }
 0x4ab   : > { %1117 = vperm.xlu0 %2106, %v2141_v18  }
 0x516   : > { %v1090_v23 = vpop.xlane.xlu1 %1089 }
 0x517   : > { %v1098_v29 = vadd.f32 %v1090_v23, %v1082_v21 }
 0x519   : > { %1103 = vst.msk [vmem:[#allocation7 + $0x8] sm:$0xff] %vm797_vm4, %v1098_v29 }
 0x51a   : > { %v1087_v32 = vpop.xlane.xlu1 %1086  ;;  %v1093_v33 = vpop.xlane.xlu0 %1092 }
 0x51b   : > { %v1097_v35 = vadd.f32 %v1087_v32, %v1081_v30  ;;  %v1099_v36 = vadd.f32 %v1093_v33, %v1083_v31 }
 0x51d   : > { %1102 = vst.msk [vmem:[#allocation7] sm:$0xff] %vm797_vm4, %v1097_v35  ;;  %1104 = vst.msk [vmem:[#allocation7 + $0x10] sm:$0xff] %vm797_vm4, %v1099_v36 }
 0x51e   : > { %v1096_v26 = vpop.xlane.xlu0 %1095  ;;  %v1123_v49 = vpop.permute.xlu1 %1122 }
 0x51f   : > { %v1100_v27 = vadd.f32 %v1096_v26, %v1084_v24  ;;  %v1132_v57 = vmul.f32 %v1123_v49, %v1108_v52  ;;  %v2115_v52 = vld [vmem:[#allocation11] sm:$0xff]  }
 0x520   : > { %v1339_v37 = vld [vmem:[#allocation7 + $0x8] sm:$0xff] }
 0x521   : > { %1105 = vst.msk [vmem:[#allocation7 + $0x18] sm:$0xff] %vm797_vm4, %v1100_v27  ;;  %2144 = vrcp.f32 %v1339_v37 }
 0x522   : > { %v1128_v58 = vpop.permute.xlu1 %1127 }
 0x523   : > { %v1133_v1 = vmul.f32 %v1128_v58, %v1109_v59 }
 0x524   : > { %v1340_v39 = vld [vmem:[#allocation7 + $0x10] sm:$0xff]  ;;  %v1338_v41 = vld [vmem:[#allocation7] sm:$0xff] }
 0x525   : > { %2146 = vrcp.f32 %v1340_v39  ;;  %v1400_v39 = vld [vmem:[#allocation2] sm:$0xff] }
 0x526   : > { %v1118_v47 = vpop.permute.xlu0 %1117 }
 0x527   : > { %v1131_v51 = vmul.f32 %v1118_v47, %v1107_v46 }
 0x528   : > { %v1341_v40 = vld [vmem:[#allocation7 + $0x18] sm:$0xff] }
 0x529   : > { %2148 = vrcp.f32 %v1341_v40 }
 0x52a   : > { %2150 = vrcp.f32 %v1338_v41 }
 0x52e   : > { %v2145_v42 = vpop.eup %2144 }
 0x52f   : > { %1357 = vperm.xlu0 %2106, %v2145_v42  }
 0x532   : > { %v2147_v43 = vpop.eup %2146 }
 0x533   : > { %1362 = vperm.xlu1 %2107, %v2147_v43  }
 0x536   : > { %v2149_v44 = vpop.eup %2148 }
 0x537   : > { %1112 = vperm.xlu1 %2107, %v2143_v22   ;;  %1367 = vperm.xlu0 %2106, %v2149_v44   ;;  %v2151_v45 = vpop.eup %2150 }
 0x53b   : > { %1352 = vperm.xlu0 %2106, %v2151_v45  }
 0x552   : > { %v1179_v48 = vpop.f32.mrf.mxu0 }
 0x554   : > { %v1967_v50 = vpop.f32.mrf.mxu0 }
 0x556   : > { %v1182_v53 = vpop.f32.mrf.mxu0  ;;  %v1225_v38 = vpop.f32.mrf.mxu1 }
 0x557   : > { %v1324_v54 = vadd.f32 %v1225_v38, %v1131_v51  ;;  %v2114_v51 = vld [vmem:[#allocation11 + $0x8] sm:$0xff]   ;;  %v2116_v53 = vld [vmem:[%s2741_s12 + $0x38] sm:$0xff]   ;;  %v2117_v38 = vld [vmem:[%s2741_s12 + $0x30] sm:$0xff]  }
 0x558   : > { %v1968_v55 = vpop.f32.mrf.mxu0  ;;  %v1973_v56 = vpop.f32.mrf.mxu1  ;;  %1996 = vmatpush3.bf16.msra.mxu1 %v2114_v51 }
 0x559   : > { %1328 = vst.msk [vmem:[#allocation8 + $0x8] sm:$0xff] %vm806_vm2, %v1324_v54  ;;  %1997 = vmatprep.subr.bf16.mxu1 %v2276_v15  ;;  %v2118_v54 = vld [vmem:[%s2741_s12 + $0x28] sm:$0xff]   ;;  %v2119_v55 = vld [vmem:[%s2741_s12 + $0x20] sm:$0xff]   ;;  %v2120_v56 = vld [vmem:[%s2741_s12 + $0x18] sm:$0xff]  }
 0x55a   : > { %v1228_v60 = vpop.f32.mrf.mxu1  ;;  %v1271_v61 = vpop.f32.mrf.mxu0 }
 0x55b   : > { %v1325_v62 = vadd.f32 %v1271_v61, %v1132_v57  ;;  %v2121_v57 = vld [vmem:[%s2741_s12 + $0x10] sm:$0xff]  }
 0x55c   : > { %v1974_v63 = vpop.f32.mrf.mxu1  ;;  %v1979_v0 = vpop.f32.mrf.mxu0  ;;  %1998 = vmatpush3.bf16.msra.mxu1 %v2115_v52 }
 0x55d   : > { %1329 = vst.msk [vmem:[#allocation8 + $0x10] sm:$0xff] %vm806_vm2, %v1325_v62  ;;  %v1862_v62 = vld [vmem:[%s2737_s8] ss:$0 sm:$0xff] }
 0x55e   : > { %v1274_v2 = vpop.f32.mrf.mxu0  ;;  %v1317_v3 = vpop.f32.mrf.mxu1  ;;  %v1863_v0 = vld [vmem:[%s2738_s9] ss:$0 sm:$0xff] }
 0x55f   : > { %v1326_v4 = vadd.f32 %v1317_v3, %v1133_v1 }
 0x560   : > { %v1980_v5 = vpop.f32.mrf.mxu0  ;;  %v1985_v6 = vpop.f32.mrf.mxu1  ;;  %v1347_v12 = vld [vmem:[#allocation8 + $0x8] sm:$0xff] }
 0x561   : > { %1330 = vst.msk [vmem:[#allocation8 + $0x18] sm:$0xff] %vm806_vm2, %v1326_v4  ;;  %v2122_v4 = vld [vmem:[%s2741_s12 + $0x8] sm:$0xff]   ;;  %v2123_v5 = vld [vmem:[%s2741_s12] sm:$0xff]  }
 0x562   : > { %v1320_v7 = vpop.f32.mrf.mxu1  ;;  %v1864_v6 = vld [vmem:[%s2740_s11] ss:$0 sm:$0xff] }
 0x564   : > { %v1986_v8 = vpop.f32.mrf.mxu1  ;;  %v1348_v16 = vld [vmem:[#allocation8 + $0x10] sm:$0xff] }
 0x568   : > { %v1349_v23 = vld [vmem:[#allocation8 + $0x18] sm:$0xff] }
 0x5aa   : > { %v1358_v11 = vpop.permute.xlu0 %1357 }
 0x5ab   : > { %v1371_v13 = vmul.f32 %v1358_v11, %v1347_v12 }
 0x5ad   : > { %v1375_v14 = vpack.c.bf16 %v1371_v13, %v1371_v13 }
 0x5ae   : > { %v1363_v17 = vpop.permute.xlu1 %1362 }
 0x5af   : > { %v1372_v18 = vmul.f32 %v1363_v17, %v1348_v16  ;;  %1379 = vrot.lane.b32.xlu1 %v1375_v14, %s2287_s29  ;;  %v554_v14 = vlaneseq }
 0x5b1   : > { %v1376_v20 = vpack.c.bf16 %v1372_v18, %v1372_v18  ;;  %v555_v16 = vshrl.u32 %v554_v14, 7  ;;  %v1868_v18 = vld [vmem:[%s2742_s13] ss:$0 sm:$0xff] }
 0x5b2   : > { %v1113_v21 = vpop.permute.xlu1 %1112  ;;  %v1368_v22 = vpop.permute.xlu0 %1367 }
 0x5b3   : > { %v1130_v25 = vmul.f32 %v1113_v21, %v1106_v19  ;;  %v1373_v28 = vmul.f32 %v1368_v22, %v1349_v23  ;;  %1382 = vrot.lane.b32.xlu0 %v1376_v20, %s2288_s18  ;;  %s1671_s18 = sld [smem:[#allocation10 + %s2262_s19]]  ;;  %s2290_s19 = smov [#allocation14]  }
 0x5b5   : > { %v1323_v29 = vadd.f32 %v1179_v48, %v1130_v25  ;;  %v1377_v30 = vpack.c.bf16 %v1373_v28, %v1373_v28 }
 0x5b6   : > { %v1353_v32 = vpop.permute.xlu0 %1352 }
 0x5b7   : > { %1327 = vst.msk [vmem:[#allocation8] sm:$0xff] %vm806_vm2, %v1323_v29  ;;  %1385 = vrot.lane.b32.xlu1 %v1377_v30, %s2289_s27  ;;  %s509_s27 = sand.u32 1, %s2254_s17  }
 0x5b8   : > { %s1834_s28 = sshll.u32 %s509_s27, 3  ;;  %s1680_s29 = scalar_lea.sflag [#allocation13], %s509_s27 }
 0x5b9   : > { %v1672_v17 = vstv %s1671_s18  ;;  %s511_s26 = scalar_lea.vmem [#allocation14], %s1834_s28  ;;  %s2192_s28 = sshll.u32 %s2290_s19, 4  ;;  %s2193_s28 = int_to_ptr.vmem [resolvable:$false] %s2192_s28 }
 0x5ba   : > { %vm1673_vm8 = vcmp.lt.s32.totalorder %v555_v16, %v1672_v17  ;;  %s1694_s15 = sshll.u32 %s511_s26, 4  ;;  %s2194_s30 = scalar_lea.vmem %s2193_s28, 256  ;;  %s1695_s15 = int_to_ptr.vmem [resolvable:$true] %s1694_s15 }
 0x5bb   : > { %v1877_v20 = vsel %vm1673_vm8, 1.0, %v2276_v15  ;;  %s2188_s18 = scalar_lea.vmem %s1695_s15, 128  ;;  %p2195_p0 = scmp.lt.s32.totalorder %s1695_s15, %s2193_s28 }
 0x5bc   : > { %p2189_p10 = scmp.ne.s32.totalorder %s1695_s15, %s2188_s18  ;;  %p2196_p1 = scmp.lt.s32.totalorder %s2194_s30, %s2188_s18 }
 0x5be   : > { %v1346_v31 = vld [vmem:[#allocation8] sm:$0xff]  ;;  %p2190_p11 = pnand %p2189_p10, %p2409_p4  ;;  %p2197_p2 = por %p2196_p1, %p2195_p0 }
 0x5bf   : > { %v1370_v33 = vmul.f32 %v1353_v32, %v1346_v31 }
 0x5c0   : > { %p2191_p13 = pneg %p2190_p11 }
 0x5c1   : > { %v1374_v35 = vpack.c.bf16 %v1370_v33, %v1370_v33 }
 0x5c2   : > { %p2198_p3 = pnand %p2197_p2, %p2191_p13 }
 0x621   : > { %v1380_v34 = vpop.permute.xlu1 %1379 }
 0x622   : > { %v1389_v24 = vsel %vm806_vm2, %v1374_v35, %v1380_v34 }
 0x625   : > { %v1383_v36 = vpop.permute.xlu0 %1382 }
 0x626   : > { %v1392_v26 = vsel %vm1390_vm6, %v1389_v24, %v1383_v36 }
 0x629   : > { %v1386_v27 = vpop.permute.xlu1 %1385 }
 0x62a   : > { %v1395_v37 = vsel %vm1393_vm7, %v1392_v26, %v1386_v27 }
 0x62b   : > { %1992 = vmatmul.mubr.msk.bf16.vlgmr.msra.gmra.mxu0 %vm538_vm0, %v1395_v37 }
 0x62c   : > { %2019 = vmatprep.mubr.msk.bf16.mxu0 %vm2277_vm1, %v2276_v15  ;;  %2004 = vmatpush3.bf16.msra.mxu0 %v2116_v53 }
 0x62d   : > { %2005 = vmatprep.subr.bf16.mxu0 %v2276_v15 }
 0x630   : > { %2006 = vmatpush3.bf16.msra.mxu0 %v2117_v38 }
 0x631   : > { %2007 = vmatprep.subr.bf16.mxu0 %v2276_v15 }
 0x634   : > { %2008 = vmatpush3.bf16.msra.mxu0 %v2118_v54 }
 0x635   : > { %2009 = vmatprep.subr.bf16.mxu0 %v2276_v15 }
 0x638   : > { %2010 = vmatpush3.bf16.msra.mxu0 %v2119_v55 }
 0x639   : > { %2011 = vmatprep.subr.bf16.mxu0 %v2276_v15 }
 0x63c   : > { %2012 = vmatpush3.bf16.msra.mxu0 %v2120_v56 }
 0x63d   : > { %2013 = vmatprep.subr.bf16.mxu0 %v2276_v15 }
 0x640   : > { %2014 = vmatpush3.bf16.msra.mxu0 %v2121_v57 }
 0x641   : > { %2015 = vmatprep.subr.bf16.mxu0 %v2276_v15 }
 0x644   : > { %2016 = vmatpush3.bf16.msra.mxu0 %v2122_v4 }
 0x645   : > { %2017 = vmatprep.subr.bf16.mxu0 %v2276_v15 }
 0x648   : > { %2018 = vmatpush3.bf16.msra.mxu0 %v2123_v5 }
 0x6eb   : > { %v1450_v40 = vpop.f32.mrf.mxu0 }
 0x6ec   : > { %v1451_v41 = vadd.f32 %v1450_v40, %v1400_v39 }
 0x6ed   : > { %v1993_v42 = vpop.f32.mrf.mxu0 }
 0x6ee   : > { %v1458_v43 = vsel %vm538_vm0, %v1451_v41, 0.0 }
 0x6ef   : > { %1459 = vadd.xlane.f32.xlu0 %v1458_v43  ;;  %v1453_v44 = vpop.f32.mrf.mxu0 }
 0x6f1   : > { %v1994_v45 = vpop.f32.mrf.mxu0 }
 0x778   : > { %v1460_v46 = vpop.xlane.xlu0 %1459 }
 0x779   : > { %v1462_v47 = vmul.f32 0.03125, %v1460_v46 }
 0x77b   : > { %v1463_v48 = vsub.f32 %v1451_v41, %v1462_v47 }
 0x77d   : > { %v1464_v49 = vmul.f32 %v1463_v48, %v1463_v48 }
 0x77f   : > { %v1465_v50 = vsel %vm538_vm0, %v1464_v49, 0.0 }
 0x780   : > { %1466 = vadd.xlane.f32.xlu1 %v1465_v50 }
 0x809   : > { %v1467_v58 = vpop.xlane.xlu1 %1466 }
 0x80a   : > { %v1468_v59 = vmul.f32 0.03125, %v1467_v58 }
 0x80c   : > { %v1469_v60 = vadd.f32 1e-05, %v1468_v59 }
 0x80e   : > { %2152 = vrsqrt.f32 %v1469_v60 }
 0x81b   : > { %v2153_v61 = vpop.eup %2152 }
 0x81c   : > { %v1471_v63 = vmul.f32 %v2153_v61, %v1463_v48 }
 0x81e   : > { %v1478_v1 = vmul.f32 %v1862_v62, %v1471_v63 }
 0x820   : > { %v1485_v2 = vadd.f32 %v1863_v0, %v1478_v1 }
 0x822   : > { %v1486_v3 = vpack.c.bf16 %v1485_v2, %v1485_v2 }
 0x824   : > { %2000 = vmatmul.mubr.msk.bf16.vlgmr.msra.gmra.mxu1 %vm538_vm0, %v1486_v3 }
 0x8e4   : > { %v1547_v7 = vpop.f32.mrf.mxu1 }
 0x8e5   : > { %v1548_v8 = vadd.f32 %v1864_v6, %v1547_v7 }
 0x8e6   : > { %v2001_v9 = vpop.f32.mrf.mxu1 }
 0x8e7   : > { %v1553_v10 = vmax.f32 %v1548_v8, 0.0 }
 0x8e8   : > { %v1550_v11 = vpop.f32.mrf.mxu1 }
 0x8e9   : > { %v1554_v12 = vpack.c.bf16 %v1553_v10, %v1553_v10 }
 0x8ea   : > { %v2002_v13 = vpop.f32.mrf.mxu1 }
 0x8eb   : > { %2020 = vmatmul.mubr.bf16.vlgmr.msra.gmra.mxu0 %v1554_v12 }
 0x9ab   : > { %v1660_v19 = vpop.f32.mrf.mxu0 }
 0x9ac   : > { %v1661_v21 = vadd.f32 %v1868_v18, %v1660_v19 }
 0x9ad   : > { %v2021_v22 = vpop.f32.mrf.mxu0 }
 0x9ae   : > { %v1676_v23 = vmul.f32 %v1877_v20, %v1661_v21 }
 0x9af   : > { %v1663_v25 = vpop.f32.mrf.mxu0 }
 0x9b0   : > { %v1677_v28 = vadd.f32 %v1676_v23, %v1485_v2 }
 0x9b1   : > { %v2022_v29 = vpop.f32.mrf.mxu0 }
 0x9b2   : > { %1678 = vst.msk [vmem:[%s511_s26] sm:$0xff] %vm538_vm0, %v1677_v28 }
 0x9b3   : > { %2201 = shalt.err (!%p2198_p3)
}
 0x9b4   : > { %s2202_s22 = scalar_lea.hbm %s2688_s23, 128  ;;  %s2206_s26 = scalar_lea.hbm %s2743_s14, 256 }
 0x9b5   : > { %p2203_p5 = scmp.ne.s32.totalorder %s2688_s23, %s2202_s22  ;;  %p2207_p9 = scmp.lt.s32.totalorder %s2688_s23, %s2743_s14 }
 0x9b6   : > { %p2208_p12 = scmp.lt.s32.totalorder %s2206_s26, %s2202_s22 }
 0x9b7   : > { %p2204_p6 = pnand %p2203_p5, %p2409_p4 }
 0x9b8   : > { %p2209_p10 = por %p2208_p12, %p2207_p9 }
 0x9b9   : > { %p2205_p7 = pneg %p2204_p6 }
 0x9bb   : > { %p2210_p11 = pnand %p2209_p10, %p2205_p7 }
 0x9bd   : > { %2213 = shalt.err (!%p2210_p11)
}
 0x9be   : > { %2027 = dma.vmem_to_hbm [thread:$0]  (%p2409_p4), %s1695_s15, 128, %s2688_s23, %s1680_s29  }
 0x9bf PF: > { %p2039_p13 = scmp.ge.s32.totalorder %s2270_s21, 2  ;;  %s1706_s19 = sand.u32 1, %s2250_s16  }
 0x9c0   : > { %s1707_s28 = scalar_lea.sflag [#allocation13], %s1706_s19 }
 0x9c1   : > { %p2034_p0 = pnand %p2039_p13, %p2416_p8 }
 0x9c3   : > { %p2035_p1 = pneg %p2034_p0 }
 0x9c5   : > { %2245 = dma.done.wait (%p2035_p1), %s1707_s28, 128  }
 0x9c6   : > { %2247 = vsyncadd (%p2035_p1), %s1707_s28, 4294967168  ;;  %s32_s21 = sadd.s32 1, %s2270_s21   ;;  %s2758_s30 = sld [smem:[#allocation18_spill]] }
 0x9c7   : > { %p29_p2 = scmp.ge.s32.totalorder %s32_s21, 4   ;;  %s2759_s18 = sld [smem:[#allocation22_spill]] }
 0x9c8   : > { %s2760_s19 = sld [smem:[#allocation19_spill]]  ;;  %s2762_s16 = smov %s2254_s17 }
 0x9c9   : > { %s2761_s20 = sld [smem:[#allocation20_spill]]  ;;  %31 = sbr.rel (!%p29_p2) target bundleno = 10 (0xa), region = 140 }
 0x9cc   : > { %s2763_s17 = smov %s2758_s30 }
 0x9ce   :  { %1712 = vsyncpa [#allocation12], 1 }
 0x9cf   :  { %1714 = vsyncpa [#allocation12 + $0x1], 1 }
 0x9d0   :  { %1715 = vsyncpa [#allocation13], 1 }
 0x9d1   :  { %1717 = vsyncpa [#allocation13 + $0x1], 1 }

</bundles_post_ra>
